<compile_context>
chip_gen: v6e
topology: v6e:2x2x1
jax: 0.10.0
libtpu: 0.0.40
codegen_flags: <defaults>
</compile_context>

<pallas_src>
import functools
import math

import jax
import jax.numpy as jnp
from jax import lax
from jax.experimental import pallas as pl
from jax.experimental.pallas import tpu as pltpu


def _silu(x):
    # exact x * sigmoid(x) (keep gating path close to torch.nn.SiLU)
    return x / (1.0 + jnp.exp(-x))


def _softplus(x):
    # matches torch.nn.functional.softplus (threshold = 20)
    return jnp.where(x > 20.0, x, jnp.log1p(jnp.exp(jnp.minimum(x, 20.0))))


def _mxu_nt(x, w_bf16):
    # nn.Linear convention: x @ w.T.  bf16 MXU operands, f32 accumulation.
    return lax.dot_general(x.astype(jnp.bfloat16), w_bf16,
                           (((1,), (1,)), ((), ())),
                           preferred_element_type=jnp.float32)


def _mm_f32(x, w):
    # small f32 matmul (dt_proj) — full precision on the dt path.
    return lax.dot_general(x, w, (((1,), (1,)), ((), ())),
                           preferred_element_type=jnp.float32)


def mamba_kernel(
    hs_ref, w_inx_ref, w_inz_ref,
    convw_f_ref, convb_f_ref, convw_r_ref, convb_r_ref,
    w_xproj_ref, w_dt_ref, dt_bias_ref, a_logT_ref, d_param_ref,
    w_yout_ref, w_out_ref,
    out_ref,
    xf_sc, xr_sc,
    dA_f_sc, dA_r_sc, dbu_f_sc, dbu_r_sc,
    st_f_sc, st_r_sc, y_sc,
    *, L, d, N, K, R, Lc, DC,
):
    n_chunks = L // Lc
    n_dc = d // DC
    unroll = min(8, Lc)

    # ---- in_proj, x_fwd rows only (x_rvse rows are dead; z rows done later) ----
    x_fwd = _mxu_nt(hs_ref[...], w_inx_ref[...])             # (L, d) f32

    # ---- causal depthwise conv: masked sublane rolls, no pad/concat copies -----
    rows = lax.broadcasted_iota(jnp.int32, (L, 1), 0)

    def causal_conv(xin, w_ref, b_ref):
        # out[l] = b + sum_{j=0..K-1} w[K-1-j] * x[l-j]   with x[l<0] = 0
        w = w_ref[...]                                       # (K, d)
        acc = b_ref[...] + xin * w[K - 1:K, :]
        for j in range(1, K):                                # K is small & static
            shifted = pltpu.roll(xin, shift=j, axis=0)       # shifted[l] = x[l-j]
            acc = acc + jnp.where(rows >= j, shifted, 0.0) * w[K - 1 - j:K - j, :]
        return acc

    xf_sc[...] = _silu(causal_conv(x_fwd, convw_f_ref, convb_f_ref))
    # reference quirk: the "reverse" conv consumes the *forward* conv output.
    xr_sc[...] = _silu(causal_conv(xf_sc[...], convw_r_ref, convb_r_ref))

    # ---- constants hoisted out of the chunk loop -------------------------------
    A_T = -jnp.exp(a_logT_ref[...])                          # (N, d)
    dt_bias = dt_bias_ref[...]                               # (1, d)
    d_param = d_param_ref[...]                               # (1, d)
    w_xp = w_xproj_ref[...]                                  # (RP, d) bf16
    w_dt = w_dt_ref[...]                                     # (d, R)  f32
    # anti-identity (row-flip) matrix: flips the reverse-stream chunk rows with
    # one small MXU matmul so its stores stay full aligned tiles.
    pr = lax.broadcasted_iota(jnp.int32, (Lc, Lc), 0)
    pc = lax.broadcasted_iota(jnp.int32, (Lc, Lc), 1)
    p_flip = (pr + pc == Lc - 1).astype(jnp.float32)         # (Lc, Lc)

    st_f_sc[...] = jnp.zeros_like(st_f_sc)
    st_r_sc[...] = jnp.zeros_like(st_r_sc)

    def stream_coeffs(x_c, dA_ref, dbu_ref):
        # Vectorized per-chunk coefficient precompute: all transcendentals and
        # broadcasts happen here, off the serial scan path.
        x_dbl = _mxu_nt(x_c, w_xp)                           # (Lc, RP) f32
        dt_c = _mm_f32(x_dbl[:, :R], w_dt)                   # (Lc, d)
        delta = _softplus(dt_c + dt_bias)                    # (Lc, d)
        b_m = x_dbl[:, R:R + N]                              # (Lc, N)
        c_m = x_dbl[:, R + N:R + 2 * N]                      # (Lc, N)
        dA_ref[...] = jnp.exp(delta[:, None, :] * A_T[None, :, :])     # (Lc,N,d)
        dbu_ref[...] = (delta * x_c)[:, None, :] * b_m[:, :, None]     # (Lc,N,d)
        du = x_c * d_param                                   # (Lc, d)  D-skip
        return c_m, du

    def scan_stream(dA_ref, dbu_ref, st_ref):
        # Serial selective scan: one FMA per step per d sub-block.  The state is
        # written back over dbu (it becomes the "h" buffer for the post-pass).
        for j in range(n_dc):
            if n_dc == 1:
                dA_j, dbu_j, st_j = dA_ref, dbu_ref, st_ref
            else:
                js = j * DC
                dA_j = dA_ref.at[:, :, js:js + DC]
                dbu_j = dbu_ref.at[:, :, js:js + DC]
                st_j = st_ref.at[:, js:js + DC]

            def step(l, s, dA_j=dA_j, dbu_j=dbu_j):
                s = dA_j[l] * s + dbu_j[l]                   # (N, DC)
                dbu_j[l] = s                                 # full-tile store
                return s

            st_j[...] = lax.fori_loop(0, Lc, step, st_j[...], unroll=unroll)

    def chunk_body(c, carry):
        c0 = c * Lc
        if Lc % 8 == 0:
            c0 = pl.multiple_of(c0, 8)

        xf_c = xf_sc[pl.ds(c0, Lc), :]                       # (Lc, d)
        xr_c = xr_sc[pl.ds(c0, Lc), :]

        c_f, du_f = stream_coeffs(xf_c, dA_f_sc, dbu_f_sc)
        c_r, du_r = stream_coeffs(xr_c, dA_r_sc, dbu_r_sc)

        scan_stream(dA_f_sc, dbu_f_sc, st_f_sc)
        scan_stream(dA_r_sc, dbu_r_sc, st_r_sc)

        # vectorized post-pass: C-contraction over N + D-skip, then stores.
        y_f = jnp.sum(dbu_f_sc[...] * c_f[:, :, None], axis=1) + du_f   # (Lc, d)
        y_r = jnp.sum(dbu_r_sc[...] * c_r[:, :, None], axis=1) + du_r   # (Lc, d)
        y_r_flip = jnp.dot(p_flip, y_r, preferred_element_type=jnp.float32)

        r0 = L - Lc - c0
        if Lc % 8 == 0 and L % 8 == 0:
            r0 = pl.multiple_of(r0, 8)
        y_sc[pl.ds(c0, Lc), 0:d] = y_f                       # forward stream
        y_sc[pl.ds(r0, Lc), d:2 * d] = y_r_flip              # flipped reverse
        return carry

    lax.fori_loop(0, n_chunks, chunk_body, 0)

    # ---- y_out, SiLU(z) gating, out_proj (full L, lane-dense) ------------------
    z = _mxu_nt(hs_ref[...], w_inz_ref[...])                 # (L, 2d) f32
    y_g = _mxu_nt(y_sc[...], w_yout_ref[...]) * _silu(z)     # (L, 2d) f32
    out_ref[...] = _mxu_nt(y_g, w_out_ref[...])              # (L, D) f32


def _round_up(x, m):
    return ((x + m - 1) // m) * m


def _pick_seq_chunk(L, target):
    target = max(1, min(L, int(target)))
    if L % 8 == 0 and target >= 8:
        c = (target // 8) * 8
        while c >= 8:
            if L % c == 0:
                return c
            c -= 8
        return 8
    c = target
    while c > 1:
        if L % c == 0:
            return c
        c -= 1
    return 1


def _pick_d_chunk(d):
    # bound live vregs in the serial scan body (state is (N, DC) per stream)
    for dc in (512, 256, 128):
        if d % dc == 0 and d > dc:
            return dc
    return d


def make_params(key, d_model, d_state=16, d_conv=4, expand=2):
    d_inner = expand * d_model
    d = d_inner // 2
    R = math.ceil(d_model / 16)
    N = d_state
    K = d_conv

    keys = jax.random.split(key, 10)

    def u(k, shape, scale):
        return jax.random.uniform(k, shape, jnp.float32, -1.0, 1.0) * scale

    p = {}
    p["w_in"] = u(keys[0], (2 * d_inner, d_model), 1.0 / math.sqrt(d_model))
    # depthwise conv weights stored tap-major (K, d) for channel-last layout
    p["convw_f"] = u(keys[1], (K, d), 1.0 / math.sqrt(K))
    p["convb_f"] = u(keys[2], (1, d), 1.0 / math.sqrt(K))
    p["convw_r"] = u(keys[3], (K, d), 1.0 / math.sqrt(K))
    p["convb_r"] = u(keys[4], (1, d), 1.0 / math.sqrt(K))
    p["w_xproj"] = u(keys[5], (R + 2 * N, d), 1.0 / math.sqrt(d))
    dt_init_std = R ** (-0.5)
    p["w_dt"] = u(keys[6], (d, R), dt_init_std)
    # dt_proj.bias init exactly as in the module
    dt_min, dt_max, dt_init_floor = 1e-3, 1e-1, 1e-4
    dt = jnp.exp(jax.random.uniform(keys[7], (d,), jnp.float32)
                 * (math.log(dt_max) - math.log(dt_min)) + math.log(dt_min))
    dt = jnp.maximum(dt, dt_init_floor)
    inv_dt = dt + jnp.log(-jnp.expm1(-dt))
    p["dt_bias"] = inv_dt.reshape(1, d).astype(jnp.float32)
    p["a_log"] = jnp.log(jnp.broadcast_to(
        jnp.arange(1, N + 1, dtype=jnp.float32), (d, N)))
    p["d_param"] = jnp.ones((1, d), jnp.float32)
    p["w_yout"] = u(keys[8], (d_inner, d_inner), 1.0 / math.sqrt(d_inner))
    p["w_out"] = u(keys[9], (d_model, d_inner), 1.0 / math.sqrt(d_inner))
    return p, dict(d=d, N=N, K=K, R=R)


def mamba_forward(hidden_states, params, dims):
    # lengths=None / mask=None path of Mamba.forward
    B, L, D = hidden_states.shape
    d, N, K, R = dims["d"], dims["N"], dims["K"], dims["R"]

    # --- VMEM-capacity-driven sequence chunk for the scan buffers (v7x: 64 MiB) -
    try:
        info = pltpu.get_tpu_info()
        vmem_cap = int(getattr(info, "vmem_capacity_bytes", 64 * 1024 * 1024))
    except Exception:
        vmem_cap = 64 * 1024 * 1024
    scan_budget = max(2 * 1024 * 1024, vmem_cap // 4)
    # 4 chunk buffers (dA / dBu per stream), f32, N*d per sequence row
    lc_target = scan_budget // (4 * 4 * N * d)
    Lc = _pick_seq_chunk(L, min(256, max(8, lc_target)))
    DC = _pick_d_chunk(d)

    # Drop the dead x_rvse rows of in_proj (never consumed in the reference
    # forward); split x_fwd / z rows so z isn't held live through the scan.
    w_inx = params["w_in"][:d].astype(jnp.bfloat16)              # (d, D)
    w_inz = params["w_in"][2 * d:].astype(jnp.bfloat16)          # (2d, D)
    # Pad x_proj output width to a lane-dense multiple of 128 (zero rows).
    RP = _round_up(R + 2 * N, 128)
    w_xproj = jnp.zeros((RP, d), jnp.float32).at[:R + 2 * N].set(
        params["w_xproj"]).astype(jnp.bfloat16)
    w_yout = params["w_yout"].astype(jnp.bfloat16)
    w_out = params["w_out"].astype(jnp.bfloat16)
    a_log_t = params["a_log"].T                                   # (N, d)
    hs_bf16 = hidden_states.astype(jnp.bfloat16)                  # MXU operand only

    kernel = functools.partial(mamba_kernel, L=L, d=d, N=N, K=K, R=R, Lc=Lc, DC=DC)

    def _full(x):
        nd = x.ndim
        return pl.BlockSpec(x.shape, lambda b, nd=nd: (0,) * nd)

    args = (hs_bf16, w_inx, w_inz,
            params["convw_f"], params["convb_f"],
            params["convw_r"], params["convb_r"],
            w_xproj, params["w_dt"], params["dt_bias"],
            a_log_t, params["d_param"], w_yout, w_out)

    in_specs = [pl.BlockSpec((None, L, D), lambda b: (b, 0, 0))]
    in_specs += [_full(a) for a in args[1:]]

    vmem_limit = int(min(max(vmem_cap - 4 * 1024 * 1024, 32 * 1024 * 1024),
                         100 * 1024 * 1024))

    return pl.pallas_call(
        kernel,
        out_shape=jax.ShapeDtypeStruct((B, L, D), jnp.float32),
        grid=(B,),
        in_specs=in_specs,
        out_specs=pl.BlockSpec((None, L, D), lambda b: (b, 0, 0)),
        scratch_shapes=[
            pltpu.VMEM((L, d), jnp.float32),       # xf: SiLU(conv_fwd)
            pltpu.VMEM((L, d), jnp.float32),       # xr: SiLU(conv_rvse)
            pltpu.VMEM((Lc, N, d), jnp.float32),   # dA  forward chunk
            pltpu.VMEM((Lc, N, d), jnp.float32),   # dA  reverse chunk
            pltpu.VMEM((Lc, N, d), jnp.float32),   # dBu forward chunk (-> h)
            pltpu.VMEM((Lc, N, d), jnp.float32),   # dBu reverse chunk (-> h)
            pltpu.VMEM((N, d), jnp.float32),       # carried scan state, fwd
            pltpu.VMEM((N, d), jnp.float32),       # carried scan state, rvse
            pltpu.VMEM((L, 2 * d), jnp.float32),   # y: [fwd | flipped rvse]
        ],
        compiler_params=pltpu.CompilerParams(
            dimension_semantics=("parallel",),     # megacore over batch (v7x)
            vmem_limit_bytes=vmem_limit),
    )(*args)


if __name__ == "__main__":
    key = jax.random.PRNGKey(0)
    B, L, d_model = 2, 8, 32
    k_x, k_p = jax.random.split(key)
    hidden_states = jax.random.normal(k_x, (B, L, d_model), jnp.float32)
    params, dims = make_params(k_p, d_model)
    out = mamba_forward(hidden_states, params, dims)
    out = jax.block_until_ready(out)
    assert out.shape == (B, L, d_model)
    assert bool(jnp.all(jnp.isfinite(out)))
    print("KERNEL_OK")
</pallas_src>

<mosaic_0001>
module attributes {stable_mosaic.version = 11 : i64} {
  func.func @mamba_kernel(%arg0: i32, %arg1: memref<1x8x32xbf16, #tpu.memory_space<vmem>>, %arg2: memref<32x32xbf16, #tpu.memory_space<vmem>>, %arg3: memref<64x32xbf16, #tpu.memory_space<vmem>>, %arg4: memref<4x32xf32, #tpu.memory_space<vmem>>, %arg5: memref<1x32xf32, #tpu.memory_space<vmem>>, %arg6: memref<4x32xf32, #tpu.memory_space<vmem>>, %arg7: memref<1x32xf32, #tpu.memory_space<vmem>>, %arg8: memref<128x32xbf16, #tpu.memory_space<vmem>>, %arg9: memref<32x2xf32, #tpu.memory_space<vmem>>, %arg10: memref<1x32xf32, #tpu.memory_space<vmem>>, %arg11: memref<16x32xf32, #tpu.memory_space<vmem>>, %arg12: memref<1x32xf32, #tpu.memory_space<vmem>>, %arg13: memref<64x64xbf16, #tpu.memory_space<vmem>>, %arg14: memref<32x64xbf16, #tpu.memory_space<vmem>>, %arg15: memref<1x8x32xf32, #tpu.memory_space<vmem>>, %arg16: memref<8x32xf32, #tpu.memory_space<vmem>>, %arg17: memref<8x32xf32, #tpu.memory_space<vmem>>, %arg18: memref<8x16x32xf32, #tpu.memory_space<vmem>>, %arg19: memref<8x16x32xf32, #tpu.memory_space<vmem>>, %arg20: memref<8x16x32xf32, #tpu.memory_space<vmem>>, %arg21: memref<8x16x32xf32, #tpu.memory_space<vmem>>, %arg22: memref<16x32xf32, #tpu.memory_space<vmem>>, %arg23: memref<16x32xf32, #tpu.memory_space<vmem>>, %arg24: memref<8x64xf32, #tpu.memory_space<vmem>>) attributes {dimension_semantics = [#tpu.dimension_semantics<parallel>], iteration_bounds = array<i64: 2>, scalar_prefetch = 0 : i64, scratch_operands = 9 : i64, tpu.core_type = #tpu.core_type<tc>, window_params = [{transform_indices = @transform_0, window_bounds = array<i64: 1, 8, 32>}, {pipeline_mode = #tpu.pipeline_mode<synchronous>, transform_indices = @transform_1, window_bounds = array<i64: 32, 32>}, {pipeline_mode = #tpu.pipeline_mode<synchronous>, transform_indices = @transform_2, window_bounds = array<i64: 64, 32>}, {pipeline_mode = #tpu.pipeline_mode<synchronous>, transform_indices = @transform_3, window_bounds = array<i64: 4, 32>}, {pipeline_mode = #tpu.pipeline_mode<synchronous>, transform_indices = @transform_4, window_bounds = array<i64: 1, 32>}, {pipeline_mode = #tpu.pipeline_mode<synchronous>, transform_indices = @transform_5, window_bounds = array<i64: 4, 32>}, {pipeline_mode = #tpu.pipeline_mode<synchronous>, transform_indices = @transform_6, window_bounds = array<i64: 1, 32>}, {pipeline_mode = #tpu.pipeline_mode<synchronous>, transform_indices = @transform_7, window_bounds = array<i64: 128, 32>}, {pipeline_mode = #tpu.pipeline_mode<synchronous>, transform_indices = @transform_8, window_bounds = array<i64: 32, 2>}, {pipeline_mode = #tpu.pipeline_mode<synchronous>, transform_indices = @transform_9, window_bounds = array<i64: 1, 32>}, {pipeline_mode = #tpu.pipeline_mode<synchronous>, transform_indices = @transform_10, window_bounds = array<i64: 16, 32>}, {pipeline_mode = #tpu.pipeline_mode<synchronous>, transform_indices = @transform_11, window_bounds = array<i64: 1, 32>}, {pipeline_mode = #tpu.pipeline_mode<synchronous>, transform_indices = @transform_12, window_bounds = array<i64: 64, 64>}, {pipeline_mode = #tpu.pipeline_mode<synchronous>, transform_indices = @transform_13, window_bounds = array<i64: 32, 64>}, {transform_indices = @transform_14, window_bounds = array<i64: 1, 8, 32>}]} {
    %c0 = arith.constant 0 : index
    %c0_0 = arith.constant 0 : index
    %c0_1 = arith.constant 0 : index
    %0 = vector.load %arg1[%c0, %c0_0, %c0_1] : memref<1x8x32xbf16, #tpu.memory_space<vmem>>, vector<1x8x32xbf16>
    %1 = vector.shape_cast %0 : vector<1x8x32xbf16> to vector<8x32xbf16>
    %c0_2 = arith.constant 0 : index
    %c0_3 = arith.constant 0 : index
    %2 = vector.load %arg2[%c0_2, %c0_3] : memref<32x32xbf16, #tpu.memory_space<vmem>>, vector<32x32xbf16>
    %cst = arith.constant dense<0.000000e+00> : vector<8x32xf32>
    %3 = tpu.matmul %1, %2, %cst {dimension_numbers = #tpu.dot_dimension_numbers<[1], [1], [0], [0], [0, 0, 1, 0], [], []>} : vector<8x32xbf16>, vector<32x32xbf16>, vector<8x32xf32> -> vector<8x32xf32>
    %4 = tpu.iota {dimensions = array<i32: 0>} : vector<8x1xi32>
    %c0_4 = arith.constant 0 : index
    %c0_5 = arith.constant 0 : index
    %5 = vector.load %arg4[%c0_4, %c0_5] : memref<4x32xf32, #tpu.memory_space<vmem>>, vector<4x32xf32>
    %c0_6 = arith.constant 0 : index
    %c0_7 = arith.constant 0 : index
    %6 = vector.load %arg5[%c0_6, %c0_7] : memref<1x32xf32, #tpu.memory_space<vmem>>, vector<1x32xf32>
    %7 = vector.extract_strided_slice %5 {offsets = [3, 0], sizes = [1, 32], strides = [1, 1]} : vector<4x32xf32> to vector<1x32xf32>
    %8 = vector.broadcast %7 : vector<1x32xf32> to vector<8x32xf32>
    %9 = arith.mulf %3, %8 : vector<8x32xf32>
    %10 = vector.broadcast %6 : vector<1x32xf32> to vector<8x32xf32>
    %11 = arith.addf %10, %9 : vector<8x32xf32>
    %c1_i32 = arith.constant 1 : i32
    %12 = tpu.dynamic_rotate %3 by %c1_i32 dim 0 : vector<8x32xf32>, i32 -> vector<8x32xf32>
    %c1_i32_8 = arith.constant 1 : i32
    %13 = vector.broadcast %c1_i32_8 : i32 to vector<8x1xi32>
    %14 = arith.cmpi sge, %4, %13 : vector<8x1xi32>
    %cst_9 = arith.constant 0.000000e+00 : f32
    %15 = vector.shape_cast %14 : vector<8x1xi1> to vector<8x1xi1>
    %16 = vector.broadcast %15 : vector<8x1xi1> to vector<8x32xi1>
    %17 = vector.broadcast %cst_9 : f32 to vector<8x32xf32>
    %18 = arith.select %16, %12, %17 : vector<8x32xi1>, vector<8x32xf32>
    %19 = vector.extract_strided_slice %5 {offsets = [2, 0], sizes = [1, 32], strides = [1, 1]} : vector<4x32xf32> to vector<1x32xf32>
    %20 = vector.broadcast %19 : vector<1x32xf32> to vector<8x32xf32>
    %21 = arith.mulf %18, %20 : vector<8x32xf32>
    %22 = arith.addf %11, %21 : vector<8x32xf32>
    %c2_i32 = arith.constant 2 : i32
    %23 = tpu.dynamic_rotate %3 by %c2_i32 dim 0 : vector<8x32xf32>, i32 -> vector<8x32xf32>
    %c2_i32_10 = arith.constant 2 : i32
    %24 = vector.broadcast %c2_i32_10 : i32 to vector<8x1xi32>
    %25 = arith.cmpi sge, %4, %24 : vector<8x1xi32>
    %cst_11 = arith.constant 0.000000e+00 : f32
    %26 = vector.shape_cast %25 : vector<8x1xi1> to vector<8x1xi1>
    %27 = vector.broadcast %26 : vector<8x1xi1> to vector<8x32xi1>
    %28 = vector.broadcast %cst_11 : f32 to vector<8x32xf32>
    %29 = arith.select %27, %23, %28 : vector<8x32xi1>, vector<8x32xf32>
    %30 = vector.extract_strided_slice %5 {offsets = [1, 0], sizes = [1, 32], strides = [1, 1]} : vector<4x32xf32> to vector<1x32xf32>
    %31 = vector.broadcast %30 : vector<1x32xf32> to vector<8x32xf32>
    %32 = arith.mulf %29, %31 : vector<8x32xf32>
    %33 = arith.addf %22, %32 : vector<8x32xf32>
    %c3_i32 = arith.constant 3 : i32
    %34 = tpu.dynamic_rotate %3 by %c3_i32 dim 0 : vector<8x32xf32>, i32 -> vector<8x32xf32>
    %c3_i32_12 = arith.constant 3 : i32
    %35 = vector.broadcast %c3_i32_12 : i32 to vector<8x1xi32>
    %36 = arith.cmpi sge, %4, %35 : vector<8x1xi32>
    %cst_13 = arith.constant 0.000000e+00 : f32
    %37 = vector.shape_cast %36 : vector<8x1xi1> to vector<8x1xi1>
    %38 = vector.broadcast %37 : vector<8x1xi1> to vector<8x32xi1>
    %39 = vector.broadcast %cst_13 : f32 to vector<8x32xf32>
    %40 = arith.select %38, %34, %39 : vector<8x32xi1>, vector<8x32xf32>
    %41 = vector.extract_strided_slice %5 {offsets = [0, 0], sizes = [1, 32], strides = [1, 1]} : vector<4x32xf32> to vector<1x32xf32>
    %42 = vector.broadcast %41 : vector<1x32xf32> to vector<8x32xf32>
    %43 = arith.mulf %40, %42 : vector<8x32xf32>
    %44 = arith.addf %33, %43 : vector<8x32xf32>
    %cst_14 = arith.constant 0.000000e+00 : f32
    %45 = vector.broadcast %cst_14 : f32 to vector<8x32xf32>
    %46 = arith.subf %45, %44 : vector<8x32xf32>
    %47 = math.exp %46 : vector<8x32xf32>
    %cst_15 = arith.constant 1.000000e+00 : f32
    %48 = vector.broadcast %cst_15 : f32 to vector<8x32xf32>
    %49 = arith.addf %48, %47 : vector<8x32xf32>
    %50 = arith.divf %44, %49 : vector<8x32xf32>
    %c0_16 = arith.constant 0 : index
    %c0_17 = arith.constant 0 : index
    %51 = vector.load %arg16[%c0_16, %c0_17] : memref<8x32xf32, #tpu.memory_space<vmem>>, vector<8x32xf32>
    tpu.vector_store %arg16[%c0_16, %c0_17], %50 {strides = array<i32>} : memref<8x32xf32, #tpu.memory_space<vmem>>, vector<8x32xf32>,
    %c0_18 = arith.constant 0 : index
    %c0_19 = arith.constant 0 : index
    %52 = vector.load %arg16[%c0_18, %c0_19] : memref<8x32xf32, #tpu.memory_space<vmem>>, vector<8x32xf32>
    %c0_20 = arith.constant 0 : index
    %c0_21 = arith.constant 0 : index
    %53 = vector.load %arg6[%c0_20, %c0_21] : memref<4x32xf32, #tpu.memory_space<vmem>>, vector<4x32xf32>
    %c0_22 = arith.constant 0 : index
    %c0_23 = arith.constant 0 : index
    %54 = vector.load %arg7[%c0_22, %c0_23] : memref<1x32xf32, #tpu.memory_space<vmem>>, vector<1x32xf32>
    %55 = vector.extract_strided_slice %53 {offsets = [3, 0], sizes = [1, 32], strides = [1, 1]} : vector<4x32xf32> to vector<1x32xf32>
    %56 = vector.broadcast %55 : vector<1x32xf32> to vector<8x32xf32>
    %57 = arith.mulf %52, %56 : vector<8x32xf32>
    %58 = vector.broadcast %54 : vector<1x32xf32> to vector<8x32xf32>
    %59 = arith.addf %58, %57 : vector<8x32xf32>
    %c1_i32_24 = arith.constant 1 : i32
    %60 = tpu.dynamic_rotate %52 by %c1_i32_24 dim 0 : vector<8x32xf32>, i32 -> vector<8x32xf32>
    %c1_i32_25 = arith.constant 1 : i32
    %61 = vector.broadcast %c1_i32_25 : i32 to vector<8x1xi32>
    %62 = arith.cmpi sge, %4, %61 : vector<8x1xi32>
    %cst_26 = arith.constant 0.000000e+00 : f32
    %63 = vector.shape_cast %62 : vector<8x1xi1> to vector<8x1xi1>
    %64 = vector.broadcast %63 : vector<8x1xi1> to vector<8x32xi1>
    %65 = vector.broadcast %cst_26 : f32 to vector<8x32xf32>
    %66 = arith.select %64, %60, %65 : vector<8x32xi1>, vector<8x32xf32>
    %67 = vector.extract_strided_slice %53 {offsets = [2, 0], sizes = [1, 32], strides = [1, 1]} : vector<4x32xf32> to vector<1x32xf32>
    %68 = vector.broadcast %67 : vector<1x32xf32> to vector<8x32xf32>
    %69 = arith.mulf %66, %68 : vector<8x32xf32>
    %70 = arith.addf %59, %69 : vector<8x32xf32>
    %c2_i32_27 = arith.constant 2 : i32
    %71 = tpu.dynamic_rotate %52 by %c2_i32_27 dim 0 : vector<8x32xf32>, i32 -> vector<8x32xf32>
    %c2_i32_28 = arith.constant 2 : i32
    %72 = vector.broadcast %c2_i32_28 : i32 to vector<8x1xi32>
    %73 = arith.cmpi sge, %4, %72 : vector<8x1xi32>
    %cst_29 = arith.constant 0.000000e+00 : f32
    %74 = vector.shape_cast %73 : vector<8x1xi1> to vector<8x1xi1>
    %75 = vector.broadcast %74 : vector<8x1xi1> to vector<8x32xi1>
    %76 = vector.broadcast %cst_29 : f32 to vector<8x32xf32>
    %77 = arith.select %75, %71, %76 : vector<8x32xi1>, vector<8x32xf32>
    %78 = vector.extract_strided_slice %53 {offsets = [1, 0], sizes = [1, 32], strides = [1, 1]} : vector<4x32xf32> to vector<1x32xf32>
    %79 = vector.broadcast %78 : vector<1x32xf32> to vector<8x32xf32>
    %80 = arith.mulf %77, %79 : vector<8x32xf32>
    %81 = arith.addf %70, %80 : vector<8x32xf32>
    %c3_i32_30 = arith.constant 3 : i32
    %82 = tpu.dynamic_rotate %52 by %c3_i32_30 dim 0 : vector<8x32xf32>, i32 -> vector<8x32xf32>
    %c3_i32_31 = arith.constant 3 : i32
    %83 = vector.broadcast %c3_i32_31 : i32 to vector<8x1xi32>
    %84 = arith.cmpi sge, %4, %83 : vector<8x1xi32>
    %cst_32 = arith.constant 0.000000e+00 : f32
    %85 = vector.shape_cast %84 : vector<8x1xi1> to vector<8x1xi1>
    %86 = vector.broadcast %85 : vector<8x1xi1> to vector<8x32xi1>
    %87 = vector.broadcast %cst_32 : f32 to vector<8x32xf32>
    %88 = arith.select %86, %82, %87 : vector<8x32xi1>, vector<8x32xf32>
    %89 = vector.extract_strided_slice %53 {offsets = [0, 0], sizes = [1, 32], strides = [1, 1]} : vector<4x32xf32> to vector<1x32xf32>
    %90 = vector.broadcast %89 : vector<1x32xf32> to vector<8x32xf32>
    %91 = arith.mulf %88, %90 : vector<8x32xf32>
    %92 = arith.addf %81, %91 : vector<8x32xf32>
    %cst_33 = arith.constant 0.000000e+00 : f32
    %93 = vector.broadcast %cst_33 : f32 to vector<8x32xf32>
    %94 = arith.subf %93, %92 : vector<8x32xf32>
    %95 = math.exp %94 : vector<8x32xf32>
    %cst_34 = arith.constant 1.000000e+00 : f32
    %96 = vector.broadcast %cst_34 : f32 to vector<8x32xf32>
    %97 = arith.addf %96, %95 : vector<8x32xf32>
    %98 = arith.divf %92, %97 : vector<8x32xf32>
    %c0_35 = arith.constant 0 : index
    %c0_36 = arith.constant 0 : index
    %99 = vector.load %arg17[%c0_35, %c0_36] : memref<8x32xf32, #tpu.memory_space<vmem>>, vector<8x32xf32>
    tpu.vector_store %arg17[%c0_35, %c0_36], %98 {strides = array<i32>} : memref<8x32xf32, #tpu.memory_space<vmem>>, vector<8x32xf32>,
    %c0_37 = arith.constant 0 : index
    %c0_38 = arith.constant 0 : index
    %100 = vector.load %arg11[%c0_37, %c0_38] : memref<16x32xf32, #tpu.memory_space<vmem>>, vector<16x32xf32>
    %101 = math.exp %100 : vector<16x32xf32>
    %cst_39 = arith.constant 0.000000e+00 : f32
    %102 = vector.broadcast %cst_39 : f32 to vector<16x32xf32>
    %103 = arith.subf %102, %101 : vector<16x32xf32>
    %c0_40 = arith.constant 0 : index
    %c0_41 = arith.constant 0 : index
    %104 = vector.load %arg10[%c0_40, %c0_41] : memref<1x32xf32, #tpu.memory_space<vmem>>, vector<1x32xf32>
    %c0_42 = arith.constant 0 : index
    %c0_43 = arith.constant 0 : index
    %105 = vector.load %arg12[%c0_42, %c0_43] : memref<1x32xf32, #tpu.memory_space<vmem>>, vector<1x32xf32>
    %c0_44 = arith.constant 0 : index
    %c0_45 = arith.constant 0 : index
    %106 = vector.load %arg8[%c0_44, %c0_45] : memref<128x32xbf16, #tpu.memory_space<vmem>>, vector<128x32xbf16>
    %c0_46 = arith.constant 0 : index
    %c0_47 = arith.constant 0 : index
    %107 = vector.load %arg9[%c0_46, %c0_47] : memref<32x2xf32, #tpu.memory_space<vmem>>, vector<32x2xf32>
    %108 = tpu.iota {dimensions = array<i32: 0>} : vector<8x8xi32>
    %109 = tpu.iota {dimensions = array<i32: 1>} : vector<8x8xi32>
    %110 = arith.addi %108, %109 : vector<8x8xi32>
    %c7_i32 = arith.constant 7 : i32
    %111 = vector.broadcast %c7_i32 : i32 to vector<8x8xi32>
    %112 = arith.cmpi eq, %110, %111 : vector<8x8xi32>
    %113 = arith.extui %112 : vector<8x8xi1> to vector<8x8xi32>
    %114 = arith.sitofp %113 : vector<8x8xi32> to vector<8x8xf32>
    %cst_48 = arith.constant 0.000000e+00 : f32
    %115 = vector.broadcast %cst_48 : f32 to vector<16x32xf32>
    %c0_49 = arith.constant 0 : index
    %c0_50 = arith.constant 0 : index
    %116 = vector.load %arg22[%c0_49, %c0_50] : memref<16x32xf32, #tpu.memory_space<vmem>>, vector<16x32xf32>
    tpu.vector_store %arg22[%c0_49, %c0_50], %115 {strides = array<i32>} : memref<16x32xf32, #tpu.memory_space<vmem>>, vector<16x32xf32>,
    %cst_51 = arith.constant 0.000000e+00 : f32
    %117 = vector.broadcast %cst_51 : f32 to vector<16x32xf32>
    %c0_52 = arith.constant 0 : index
    %c0_53 = arith.constant 0 : index
    %118 = vector.load %arg23[%c0_52, %c0_53] : memref<16x32xf32, #tpu.memory_space<vmem>>, vector<16x32xf32>
    tpu.vector_store %arg23[%c0_52, %c0_53], %117 {strides = array<i32>} : memref<16x32xf32, #tpu.memory_space<vmem>>, vector<16x32xf32>,
    %c0_i32 = arith.constant 0 : i32
    %c8_i32 = arith.constant 8 : i32
    %119 = arith.muli %c0_i32, %c8_i32 : i32
    %120 = tpu.assume_multiple %119, 8 : i32
    %121 = arith.index_cast %120 : i32 to index
    %c0_54 = arith.constant 0 : index
    %122 = vector.load %arg16[%121, %c0_54] : memref<8x32xf32, #tpu.memory_space<vmem>>, vector<8x32xf32>
    %123 = arith.index_cast %120 : i32 to index
    %c0_55 = arith.constant 0 : index
    %124 = vector.load %arg17[%123, %c0_55] : memref<8x32xf32, #tpu.memory_space<vmem>>, vector<8x32xf32>
    %125 = arith.truncf %122 : vector<8x32xf32> to vector<8x32xbf16>
    %cst_56 = arith.constant dense<0.000000e+00> : vector<8x128xf32>
    %126 = tpu.matmul %125, %106, %cst_56 {dimension_numbers = #tpu.dot_dimension_numbers<[1], [1], [0], [0], [0, 0, 1, 0], [], []>} : vector<8x32xbf16>, vector<128x32xbf16>, vector<8x128xf32> -> vector<8x128xf32>
    %127 = vector.extract_strided_slice %126 {offsets = [0, 0], sizes = [8, 2], strides = [1, 1]} : vector<8x128xf32> to vector<8x2xf32>
    %cst_57 = arith.constant dense<0.000000e+00> : vector<8x32xf32>
    %128 = tpu.matmul %127, %107, %cst_57 {dimension_numbers = #tpu.dot_dimension_numbers<[1], [1], [0], [0], [0, 0, 1, 0], [], []>} : vector<8x2xf32>, vector<32x2xf32>, vector<8x32xf32> -> vector<8x32xf32>
    %129 = vector.broadcast %104 : vector<1x32xf32> to vector<8x32xf32>
    %130 = arith.addf %128, %129 : vector<8x32xf32>
    %cst_58 = arith.constant 2.000000e+01 : f32
    %131 = vector.broadcast %cst_58 : f32 to vector<8x32xf32>
    %132 = arith.cmpf ogt, %130, %131 : vector<8x32xf32>
    %cst_59 = arith.constant 2.000000e+01 : f32
    %133 = vector.broadcast %cst_59 : f32 to vector<8x32xf32>
    %134 = arith.minimumf %130, %133 : vector<8x32xf32>
    %135 = math.exp %134 : vector<8x32xf32>
    %136 = math.log1p %135 : vector<8x32xf32>
    %137 = arith.select %132, %130, %136 : vector<8x32xi1>, vector<8x32xf32>
    %138 = vector.extract_strided_slice %126 {offsets = [0, 2], sizes = [8, 16], strides = [1, 1]} : vector<8x128xf32> to vector<8x16xf32>
    %139 = vector.extract_strided_slice %126 {offsets = [0, 18], sizes = [8, 16], strides = [1, 1]} : vector<8x128xf32> to vector<8x16xf32>
    %140 = vector.shape_cast %137 : vector<8x32xf32> to vector<8x1x32xf32>
    %141 = vector.shape_cast %103 : vector<16x32xf32> to vector<1x16x32xf32>
    %142 = vector.broadcast %140 : vector<8x1x32xf32> to vector<8x16x32xf32>
    %143 = vector.broadcast %141 : vector<1x16x32xf32> to vector<8x16x32xf32>
    %144 = arith.mulf %142, %143 : vector<8x16x32xf32>
    %145 = math.exp %144 : vector<8x16x32xf32>
    %c0_60 = arith.constant 0 : index
    %c0_61 = arith.constant 0 : index
    %c0_62 = arith.constant 0 : index
    %146 = vector.load %arg18[%c0_60, %c0_61, %c0_62] : memref<8x16x32xf32, #tpu.memory_space<vmem>>, vector<8x16x32xf32>
    tpu.vector_store %arg18[%c0_60, %c0_61, %c0_62], %145 {strides = array<i32>} : memref<8x16x32xf32, #tpu.memory_space<vmem>>, vector<8x16x32xf32>,
    %147 = arith.mulf %137, %122 : vector<8x32xf32>
    %148 = vector.shape_cast %147 : vector<8x32xf32> to vector<8x1x32xf32>
    %149 = vector.shape_cast %138 : vector<8x16xf32> to vector<8x16x1xf32>
    %150 = vector.broadcast %148 : vector<8x1x32xf32> to vector<8x16x32xf32>
    %151 = vector.broadcast %149 : vector<8x16x1xf32> to vector<8x16x32xf32>
    %152 = arith.mulf %150, %151 : vector<8x16x32xf32>
    %c0_63 = arith.constant 0 : index
    %c0_64 = arith.constant 0 : index
    %c0_65 = arith.constant 0 : index
    %153 = vector.load %arg20[%c0_63, %c0_64, %c0_65] : memref<8x16x32xf32, #tpu.memory_space<vmem>>, vector<8x16x32xf32>
    tpu.vector_store %arg20[%c0_63, %c0_64, %c0_65], %152 {strides = array<i32>} : memref<8x16x32xf32, #tpu.memory_space<vmem>>, vector<8x16x32xf32>,
    %154 = vector.broadcast %105 : vector<1x32xf32> to vector<8x32xf32>
    %155 = arith.mulf %122, %154 : vector<8x32xf32>
    %156 = arith.truncf %124 : vector<8x32xf32> to vector<8x32xbf16>
    %cst_66 = arith.constant dense<0.000000e+00> : vector<8x128xf32>
    %157 = tpu.matmul %156, %106, %cst_66 {dimension_numbers = #tpu.dot_dimension_numbers<[1], [1], [0], [0], [0, 0, 1, 0], [], []>} : vector<8x32xbf16>, vector<128x32xbf16>, vector<8x128xf32> -> vector<8x128xf32>
    %158 = vector.extract_strided_slice %157 {offsets = [0, 0], sizes = [8, 2], strides = [1, 1]} : vector<8x128xf32> to vector<8x2xf32>
    %cst_67 = arith.constant dense<0.000000e+00> : vector<8x32xf32>
    %159 = tpu.matmul %158, %107, %cst_67 {dimension_numbers = #tpu.dot_dimension_numbers<[1], [1], [0], [0], [0, 0, 1, 0], [], []>} : vector<8x2xf32>, vector<32x2xf32>, vector<8x32xf32> -> vector<8x32xf32>
    %160 = vector.broadcast %104 : vector<1x32xf32> to vector<8x32xf32>
    %161 = arith.addf %159, %160 : vector<8x32xf32>
    %cst_68 = arith.constant 2.000000e+01 : f32
    %162 = vector.broadcast %cst_68 : f32 to vector<8x32xf32>
    %163 = arith.cmpf ogt, %161, %162 : vector<8x32xf32>
    %cst_69 = arith.constant 2.000000e+01 : f32
    %164 = vector.broadcast %cst_69 : f32 to vector<8x32xf32>
    %165 = arith.minimumf %161, %164 : vector<8x32xf32>
    %166 = math.exp %165 : vector<8x32xf32>
    %167 = math.log1p %166 : vector<8x32xf32>
    %168 = arith.select %163, %161, %167 : vector<8x32xi1>, vector<8x32xf32>
    %169 = vector.extract_strided_slice %157 {offsets = [0, 2], sizes = [8, 16], strides = [1, 1]} : vector<8x128xf32> to vector<8x16xf32>
    %170 = vector.extract_strided_slice %157 {offsets = [0, 18], sizes = [8, 16], strides = [1, 1]} : vector<8x128xf32> to vector<8x16xf32>
    %171 = vector.shape_cast %168 : vector<8x32xf32> to vector<8x1x32xf32>
    %172 = vector.shape_cast %103 : vector<16x32xf32> to vector<1x16x32xf32>
    %173 = vector.broadcast %171 : vector<8x1x32xf32> to vector<8x16x32xf32>
    %174 = vector.broadcast %172 : vector<1x16x32xf32> to vector<8x16x32xf32>
    %175 = arith.mulf %173, %174 : vector<8x16x32xf32>
    %176 = math.exp %175 : vector<8x16x32xf32>
    %c0_70 = arith.constant 0 : index
    %c0_71 = arith.constant 0 : index
    %c0_72 = arith.constant 0 : index
    %177 = vector.load %arg19[%c0_70, %c0_71, %c0_72] : memref<8x16x32xf32, #tpu.memory_space<vmem>>, vector<8x16x32xf32>
    tpu.vector_store %arg19[%c0_70, %c0_71, %c0_72], %176 {strides = array<i32>} : memref<8x16x32xf32, #tpu.memory_space<vmem>>, vector<8x16x32xf32>,
    %178 = arith.mulf %168, %124 : vector<8x32xf32>
    %179 = vector.shape_cast %178 : vector<8x32xf32> to vector<8x1x32xf32>
    %180 = vector.shape_cast %169 : vector<8x16xf32> to vector<8x16x1xf32>
    %181 = vector.broadcast %179 : vector<8x1x32xf32> to vector<8x16x32xf32>
    %182 = vector.broadcast %180 : vector<8x16x1xf32> to vector<8x16x32xf32>
    %183 = arith.mulf %181, %182 : vector<8x16x32xf32>
    %c0_73 = arith.constant 0 : index
    %c0_74 = arith.constant 0 : index
    %c0_75 = arith.constant 0 : index
    %184 = vector.load %arg21[%c0_73, %c0_74, %c0_75] : memref<8x16x32xf32, #tpu.memory_space<vmem>>, vector<8x16x32xf32>
    tpu.vector_store %arg21[%c0_73, %c0_74, %c0_75], %183 {strides = array<i32>} : memref<8x16x32xf32, #tpu.memory_space<vmem>>, vector<8x16x32xf32>,
    %185 = vector.broadcast %105 : vector<1x32xf32> to vector<8x32xf32>
    %186 = arith.mulf %124, %185 : vector<8x32xf32>
    %c0_76 = arith.constant 0 : index
    %c0_77 = arith.constant 0 : index
    %187 = vector.load %arg22[%c0_76, %c0_77] : memref<16x32xf32, #tpu.memory_space<vmem>>, vector<16x32xf32>
    %c0_i32_78 = arith.constant 0 : i32
    %188 = arith.index_cast %c0_i32_78 : i32 to index
    %c0_79 = arith.constant 0 : index
    %c0_80 = arith.constant 0 : index
    %189 = vector.load %arg18[%188, %c0_79, %c0_80] : memref<8x16x32xf32, #tpu.memory_space<vmem>>, vector<1x16x32xf32>
    %190 = vector.shape_cast %189 : vector<1x16x32xf32> to vector<16x32xf32>
    %191 = arith.mulf %190, %187 : vector<16x32xf32>
    %192 = arith.index_cast %c0_i32_78 : i32 to index
    %c0_81 = arith.constant 0 : index
    %c0_82 = arith.constant 0 : index
    %193 = vector.load %arg20[%192, %c0_81, %c0_82] : memref<8x16x32xf32, #tpu.memory_space<vmem>>, vector<1x16x32xf32>
    %194 = vector.shape_cast %193 : vector<1x16x32xf32> to vector<16x32xf32>
    %195 = arith.addf %191, %194 : vector<16x32xf32>
    %196 = arith.index_cast %c0_i32_78 : i32 to index
    %c0_83 = arith.constant 0 : index
    %c0_84 = arith.constant 0 : index
    %197 = vector.load %arg20[%196, %c0_83, %c0_84] : memref<8x16x32xf32, #tpu.memory_space<vmem>>, vector<1x16x32xf32>
    %198 = vector.shape_cast %197 : vector<1x16x32xf32> to vector<16x32xf32>
    %199 = vector.shape_cast %195 : vector<16x32xf32> to vector<1x16x32xf32>
    tpu.vector_store %arg20[%196, %c0_83, %c0_84], %199 {strides = array<i32>} : memref<8x16x32xf32, #tpu.memory_space<vmem>>, vector<1x16x32xf32>,
    %c1_i32_85 = arith.constant 1 : i32
    %200 = arith.index_cast %c1_i32_85 : i32 to index
    %c0_86 = arith.constant 0 : index
    %c0_87 = arith.constant 0 : index
    %201 = vector.load %arg18[%200, %c0_86, %c0_87] : memref<8x16x32xf32, #tpu.memory_space<vmem>>, vector<1x16x32xf32>
    %202 = vector.shape_cast %201 : vector<1x16x32xf32> to vector<16x32xf32>
    %203 = arith.mulf %202, %195 : vector<16x32xf32>
    %204 = arith.index_cast %c1_i32_85 : i32 to index
    %c0_88 = arith.constant 0 : index
    %c0_89 = arith.constant 0 : index
    %205 = vector.load %arg20[%204, %c0_88, %c0_89] : memref<8x16x32xf32, #tpu.memory_space<vmem>>, vector<1x16x32xf32>
    %206 = vector.shape_cast %205 : vector<1x16x32xf32> to vector<16x32xf32>
    %207 = arith.addf %203, %206 : vector<16x32xf32>
    %208 = arith.index_cast %c1_i32_85 : i32 to index
    %c0_90 = arith.constant 0 : index
    %c0_91 = arith.constant 0 : index
    %209 = vector.load %arg20[%208, %c0_90, %c0_91] : memref<8x16x32xf32, #tpu.memory_space<vmem>>, vector<1x16x32xf32>
    %210 = vector.shape_cast %209 : vector<1x16x32xf32> to vector<16x32xf32>
    %211 = vector.shape_cast %207 : vector<16x32xf32> to vector<1x16x32xf32>
    tpu.vector_store %arg20[%208, %c0_90, %c0_91], %211 {strides = array<i32>} : memref<8x16x32xf32, #tpu.memory_space<vmem>>, vector<1x16x32xf32>,
    %c2_i32_92 = arith.constant 2 : i32
    %212 = arith.index_cast %c2_i32_92 : i32 to index
    %c0_93 = arith.constant 0 : index
    %c0_94 = arith.constant 0 : index
    %213 = vector.load %arg18[%212, %c0_93, %c0_94] : memref<8x16x32xf32, #tpu.memory_space<vmem>>, vector<1x16x32xf32>
    %214 = vector.shape_cast %213 : vector<1x16x32xf32> to vector<16x32xf32>
    %215 = arith.mulf %214, %207 : vector<16x32xf32>
    %216 = arith.index_cast %c2_i32_92 : i32 to index
    %c0_95 = arith.constant 0 : index
    %c0_96 = arith.constant 0 : index
    %217 = vector.load %arg20[%216, %c0_95, %c0_96] : memref<8x16x32xf32, #tpu.memory_space<vmem>>, vector<1x16x32xf32>
    %218 = vector.shape_cast %217 : vector<1x16x32xf32> to vector<16x32xf32>
    %219 = arith.addf %215, %218 : vector<16x32xf32>
    %220 = arith.index_cast %c2_i32_92 : i32 to index
    %c0_97 = arith.constant 0 : index
    %c0_98 = arith.constant 0 : index
    %221 = vector.load %arg20[%220, %c0_97, %c0_98] : memref<8x16x32xf32, #tpu.memory_space<vmem>>, vector<1x16x32xf32>
    %222 = vector.shape_cast %221 : vector<1x16x32xf32> to vector<16x32xf32>
    %223 = vector.shape_cast %219 : vector<16x32xf32> to vector<1x16x32xf32>
    tpu.vector_store %arg20[%220, %c0_97, %c0_98], %223 {strides = array<i32>} : memref<8x16x32xf32, #tpu.memory_space<vmem>>, vector<1x16x32xf32>,
    %c3_i32_99 = arith.constant 3 : i32
    %224 = arith.index_cast %c3_i32_99 : i32 to index
    %c0_100 = arith.constant 0 : index
    %c0_101 = arith.constant 0 : index
    %225 = vector.load %arg18[%224, %c0_100, %c0_101] : memref<8x16x32xf32, #tpu.memory_space<vmem>>, vector<1x16x32xf32>
    %226 = vector.shape_cast %225 : vector<1x16x32xf32> to vector<16x32xf32>
    %227 = arith.mulf %226, %219 : vector<16x32xf32>
    %228 = arith.index_cast %c3_i32_99 : i32 to index
    %c0_102 = arith.constant 0 : index
    %c0_103 = arith.constant 0 : index
    %229 = vector.load %arg20[%228, %c0_102, %c0_103] : memref<8x16x32xf32, #tpu.memory_space<vmem>>, vector<1x16x32xf32>
    %230 = vector.shape_cast %229 : vector<1x16x32xf32> to vector<16x32xf32>
    %231 = arith.addf %227, %230 : vector<16x32xf32>
    %232 = arith.index_cast %c3_i32_99 : i32 to index
    %c0_104 = arith.constant 0 : index
    %c0_105 = arith.constant 0 : index
    %233 = vector.load %arg20[%232, %c0_104, %c0_105] : memref<8x16x32xf32, #tpu.memory_space<vmem>>, vector<1x16x32xf32>
    %234 = vector.shape_cast %233 : vector<1x16x32xf32> to vector<16x32xf32>
    %235 = vector.shape_cast %231 : vector<16x32xf32> to vector<1x16x32xf32>
    tpu.vector_store %arg20[%232, %c0_104, %c0_105], %235 {strides = array<i32>} : memref<8x16x32xf32, #tpu.memory_space<vmem>>, vector<1x16x32xf32>,
    %c4_i32 = arith.constant 4 : i32
    %236 = arith.index_cast %c4_i32 : i32 to index
    %c0_106 = arith.constant 0 : index
    %c0_107 = arith.constant 0 : index
    %237 = vector.load %arg18[%236, %c0_106, %c0_107] : memref<8x16x32xf32, #tpu.memory_space<vmem>>, vector<1x16x32xf32>
    %238 = vector.shape_cast %237 : vector<1x16x32xf32> to vector<16x32xf32>
    %239 = arith.mulf %238, %231 : vector<16x32xf32>
    %240 = arith.index_cast %c4_i32 : i32 to index
    %c0_108 = arith.constant 0 : index
    %c0_109 = arith.constant 0 : index
    %241 = vector.load %arg20[%240, %c0_108, %c0_109] : memref<8x16x32xf32, #tpu.memory_space<vmem>>, vector<1x16x32xf32>
    %242 = vector.shape_cast %241 : vector<1x16x32xf32> to vector<16x32xf32>
    %243 = arith.addf %239, %242 : vector<16x32xf32>
    %244 = arith.index_cast %c4_i32 : i32 to index
    %c0_110 = arith.constant 0 : index
    %c0_111 = arith.constant 0 : index
    %245 = vector.load %arg20[%244, %c0_110, %c0_111] : memref<8x16x32xf32, #tpu.memory_space<vmem>>, vector<1x16x32xf32>
    %246 = vector.shape_cast %245 : vector<1x16x32xf32> to vector<16x32xf32>
    %247 = vector.shape_cast %243 : vector<16x32xf32> to vector<1x16x32xf32>
    tpu.vector_store %arg20[%244, %c0_110, %c0_111], %247 {strides = array<i32>} : memref<8x16x32xf32, #tpu.memory_space<vmem>>, vector<1x16x32xf32>,
    %c5_i32 = arith.constant 5 : i32
    %248 = arith.index_cast %c5_i32 : i32 to index
    %c0_112 = arith.constant 0 : index
    %c0_113 = arith.constant 0 : index
    %249 = vector.load %arg18[%248, %c0_112, %c0_113] : memref<8x16x32xf32, #tpu.memory_space<vmem>>, vector<1x16x32xf32>
    %250 = vector.shape_cast %249 : vector<1x16x32xf32> to vector<16x32xf32>
    %251 = arith.mulf %250, %243 : vector<16x32xf32>
    %252 = arith.index_cast %c5_i32 : i32 to index
    %c0_114 = arith.constant 0 : index
    %c0_115 = arith.constant 0 : index
    %253 = vector.load %arg20[%252, %c0_114, %c0_115] : memref<8x16x32xf32, #tpu.memory_space<vmem>>, vector<1x16x32xf32>
    %254 = vector.shape_cast %253 : vector<1x16x32xf32> to vector<16x32xf32>
    %255 = arith.addf %251, %254 : vector<16x32xf32>
    %256 = arith.index_cast %c5_i32 : i32 to index
    %c0_116 = arith.constant 0 : index
    %c0_117 = arith.constant 0 : index
    %257 = vector.load %arg20[%256, %c0_116, %c0_117] : memref<8x16x32xf32, #tpu.memory_space<vmem>>, vector<1x16x32xf32>
    %258 = vector.shape_cast %257 : vector<1x16x32xf32> to vector<16x32xf32>
    %259 = vector.shape_cast %255 : vector<16x32xf32> to vector<1x16x32xf32>
    tpu.vector_store %arg20[%256, %c0_116, %c0_117], %259 {strides = array<i32>} : memref<8x16x32xf32, #tpu.memory_space<vmem>>, vector<1x16x32xf32>,
    %c6_i32 = arith.constant 6 : i32
    %260 = arith.index_cast %c6_i32 : i32 to index
    %c0_118 = arith.constant 0 : index
    %c0_119 = arith.constant 0 : index
    %261 = vector.load %arg18[%260, %c0_118, %c0_119] : memref<8x16x32xf32, #tpu.memory_space<vmem>>, vector<1x16x32xf32>
    %262 = vector.shape_cast %261 : vector<1x16x32xf32> to vector<16x32xf32>
    %263 = arith.mulf %262, %255 : vector<16x32xf32>
    %264 = arith.index_cast %c6_i32 : i32 to index
    %c0_120 = arith.constant 0 : index
    %c0_121 = arith.constant 0 : index
    %265 = vector.load %arg20[%264, %c0_120, %c0_121] : memref<8x16x32xf32, #tpu.memory_space<vmem>>, vector<1x16x32xf32>
    %266 = vector.shape_cast %265 : vector<1x16x32xf32> to vector<16x32xf32>
    %267 = arith.addf %263, %266 : vector<16x32xf32>
    %268 = arith.index_cast %c6_i32 : i32 to index
    %c0_122 = arith.constant 0 : index
    %c0_123 = arith.constant 0 : index
    %269 = vector.load %arg20[%268, %c0_122, %c0_123] : memref<8x16x32xf32, #tpu.memory_space<vmem>>, vector<1x16x32xf32>
    %270 = vector.shape_cast %269 : vector<1x16x32xf32> to vector<16x32xf32>
    %271 = vector.shape_cast %267 : vector<16x32xf32> to vector<1x16x32xf32>
    tpu.vector_store %arg20[%268, %c0_122, %c0_123], %271 {strides = array<i32>} : memref<8x16x32xf32, #tpu.memory_space<vmem>>, vector<1x16x32xf32>,
    %c7_i32_124 = arith.constant 7 : i32
    %272 = arith.index_cast %c7_i32_124 : i32 to index
    %c0_125 = arith.constant 0 : index
    %c0_126 = arith.constant 0 : index
    %273 = vector.load %arg18[%272, %c0_125, %c0_126] : memref<8x16x32xf32, #tpu.memory_space<vmem>>, vector<1x16x32xf32>
    %274 = vector.shape_cast %273 : vector<1x16x32xf32> to vector<16x32xf32>
    %275 = arith.mulf %274, %267 : vector<16x32xf32>
    %276 = arith.index_cast %c7_i32_124 : i32 to index
    %c0_127 = arith.constant 0 : index
    %c0_128 = arith.constant 0 : index
    %277 = vector.load %arg20[%276, %c0_127, %c0_128] : memref<8x16x32xf32, #tpu.memory_space<vmem>>, vector<1x16x32xf32>
    %278 = vector.shape_cast %277 : vector<1x16x32xf32> to vector<16x32xf32>
    %279 = arith.addf %275, %278 : vector<16x32xf32>
    %280 = arith.index_cast %c7_i32_124 : i32 to index
    %c0_129 = arith.constant 0 : index
    %c0_130 = arith.constant 0 : index
    %281 = vector.load %arg20[%280, %c0_129, %c0_130] : memref<8x16x32xf32, #tpu.memory_space<vmem>>, vector<1x16x32xf32>
    %282 = vector.shape_cast %281 : vector<1x16x32xf32> to vector<16x32xf32>
    %283 = vector.shape_cast %279 : vector<16x32xf32> to vector<1x16x32xf32>
    tpu.vector_store %arg20[%280, %c0_129, %c0_130], %283 {strides = array<i32>} : memref<8x16x32xf32, #tpu.memory_space<vmem>>, vector<1x16x32xf32>,
    %c8_i32_131 = arith.constant 8 : i32
    %c0_132 = arith.constant 0 : index
    %c0_133 = arith.constant 0 : index
    %284 = vector.load %arg22[%c0_132, %c0_133] : memref<16x32xf32, #tpu.memory_space<vmem>>, vector<16x32xf32>
    tpu.vector_store %arg22[%c0_132, %c0_133], %279 {strides = array<i32>} : memref<16x32xf32, #tpu.memory_space<vmem>>, vector<16x32xf32>,
    %c0_134 = arith.constant 0 : index
    %c0_135 = arith.constant 0 : index
    %285 = vector.load %arg23[%c0_134, %c0_135] : memref<16x32xf32, #tpu.memory_space<vmem>>, vector<16x32xf32>
    %c0_i32_136 = arith.constant 0 : i32
    %286 = arith.index_cast %c0_i32_136 : i32 to index
    %c0_137 = arith.constant 0 : index
    %c0_138 = arith.constant 0 : index
    %287 = vector.load %arg19[%286, %c0_137, %c0_138] : memref<8x16x32xf32, #tpu.memory_space<vmem>>, vector<1x16x32xf32>
    %288 = vector.shape_cast %287 : vector<1x16x32xf32> to vector<16x32xf32>
    %289 = arith.mulf %288, %285 : vector<16x32xf32>
    %290 = arith.index_cast %c0_i32_136 : i32 to index
    %c0_139 = arith.constant 0 : index
    %c0_140 = arith.constant 0 : index
    %291 = vector.load %arg21[%290, %c0_139, %c0_140] : memref<8x16x32xf32, #tpu.memory_space<vmem>>, vector<1x16x32xf32>
    %292 = vector.shape_cast %291 : vector<1x16x32xf32> to vector<16x32xf32>
    %293 = arith.addf %289, %292 : vector<16x32xf32>
    %294 = arith.index_cast %c0_i32_136 : i32 to index
    %c0_141 = arith.constant 0 : index
    %c0_142 = arith.constant 0 : index
    %295 = vector.load %arg21[%294, %c0_141, %c0_142] : memref<8x16x32xf32, #tpu.memory_space<vmem>>, vector<1x16x32xf32>
    %296 = vector.shape_cast %295 : vector<1x16x32xf32> to vector<16x32xf32>
    %297 = vector.shape_cast %293 : vector<16x32xf32> to vector<1x16x32xf32>
    tpu.vector_store %arg21[%294, %c0_141, %c0_142], %297 {strides = array<i32>} : memref<8x16x32xf32, #tpu.memory_space<vmem>>, vector<1x16x32xf32>,
    %c1_i32_143 = arith.constant 1 : i32
    %298 = arith.index_cast %c1_i32_143 : i32 to index
    %c0_144 = arith.constant 0 : index
    %c0_145 = arith.constant 0 : index
    %299 = vector.load %arg19[%298, %c0_144, %c0_145] : memref<8x16x32xf32, #tpu.memory_space<vmem>>, vector<1x16x32xf32>
    %300 = vector.shape_cast %299 : vector<1x16x32xf32> to vector<16x32xf32>
    %301 = arith.mulf %300, %293 : vector<16x32xf32>
    %302 = arith.index_cast %c1_i32_143 : i32 to index
    %c0_146 = arith.constant 0 : index
    %c0_147 = arith.constant 0 : index
    %303 = vector.load %arg21[%302, %c0_146, %c0_147] : memref<8x16x32xf32, #tpu.memory_space<vmem>>, vector<1x16x32xf32>
    %304 = vector.shape_cast %303 : vector<1x16x32xf32> to vector<16x32xf32>
    %305 = arith.addf %301, %304 : vector<16x32xf32>
    %306 = arith.index_cast %c1_i32_143 : i32 to index
    %c0_148 = arith.constant 0 : index
    %c0_149 = arith.constant 0 : index
    %307 = vector.load %arg21[%306, %c0_148, %c0_149] : memref<8x16x32xf32, #tpu.memory_space<vmem>>, vector<1x16x32xf32>
    %308 = vector.shape_cast %307 : vector<1x16x32xf32> to vector<16x32xf32>
    %309 = vector.shape_cast %305 : vector<16x32xf32> to vector<1x16x32xf32>
    tpu.vector_store %arg21[%306, %c0_148, %c0_149], %309 {strides = array<i32>} : memref<8x16x32xf32, #tpu.memory_space<vmem>>, vector<1x16x32xf32>,
    %c2_i32_150 = arith.constant 2 : i32
    %310 = arith.index_cast %c2_i32_150 : i32 to index
    %c0_151 = arith.constant 0 : index
    %c0_152 = arith.constant 0 : index
    %311 = vector.load %arg19[%310, %c0_151, %c0_152] : memref<8x16x32xf32, #tpu.memory_space<vmem>>, vector<1x16x32xf32>
    %312 = vector.shape_cast %311 : vector<1x16x32xf32> to vector<16x32xf32>
    %313 = arith.mulf %312, %305 : vector<16x32xf32>
    %314 = arith.index_cast %c2_i32_150 : i32 to index
    %c0_153 = arith.constant 0 : index
    %c0_154 = arith.constant 0 : index
    %315 = vector.load %arg21[%314, %c0_153, %c0_154] : memref<8x16x32xf32, #tpu.memory_space<vmem>>, vector<1x16x32xf32>
    %316 = vector.shape_cast %315 : vector<1x16x32xf32> to vector<16x32xf32>
    %317 = arith.addf %313, %316 : vector<16x32xf32>
    %318 = arith.index_cast %c2_i32_150 : i32 to index
    %c0_155 = arith.constant 0 : index
    %c0_156 = arith.constant 0 : index
    %319 = vector.load %arg21[%318, %c0_155, %c0_156] : memref<8x16x32xf32, #tpu.memory_space<vmem>>, vector<1x16x32xf32>
    %320 = vector.shape_cast %319 : vector<1x16x32xf32> to vector<16x32xf32>
    %321 = vector.shape_cast %317 : vector<16x32xf32> to vector<1x16x32xf32>
    tpu.vector_store %arg21[%318, %c0_155, %c0_156], %321 {strides = array<i32>} : memref<8x16x32xf32, #tpu.memory_space<vmem>>, vector<1x16x32xf32>,
    %c3_i32_157 = arith.constant 3 : i32
    %322 = arith.index_cast %c3_i32_157 : i32 to index
    %c0_158 = arith.constant 0 : index
    %c0_159 = arith.constant 0 : index
    %323 = vector.load %arg19[%322, %c0_158, %c0_159] : memref<8x16x32xf32, #tpu.memory_space<vmem>>, vector<1x16x32xf32>
    %324 = vector.shape_cast %323 : vector<1x16x32xf32> to vector<16x32xf32>
    %325 = arith.mulf %324, %317 : vector<16x32xf32>
    %326 = arith.index_cast %c3_i32_157 : i32 to index
    %c0_160 = arith.constant 0 : index
    %c0_161 = arith.constant 0 : index
    %327 = vector.load %arg21[%326, %c0_160, %c0_161] : memref<8x16x32xf32, #tpu.memory_space<vmem>>, vector<1x16x32xf32>
    %328 = vector.shape_cast %327 : vector<1x16x32xf32> to vector<16x32xf32>
    %329 = arith.addf %325, %328 : vector<16x32xf32>
    %330 = arith.index_cast %c3_i32_157 : i32 to index
    %c0_162 = arith.constant 0 : index
    %c0_163 = arith.constant 0 : index
    %331 = vector.load %arg21[%330, %c0_162, %c0_163] : memref<8x16x32xf32, #tpu.memory_space<vmem>>, vector<1x16x32xf32>
    %332 = vector.shape_cast %331 : vector<1x16x32xf32> to vector<16x32xf32>
    %333 = vector.shape_cast %329 : vector<16x32xf32> to vector<1x16x32xf32>
    tpu.vector_store %arg21[%330, %c0_162, %c0_163], %333 {strides = array<i32>} : memref<8x16x32xf32, #tpu.memory_space<vmem>>, vector<1x16x32xf32>,
    %c4_i32_164 = arith.constant 4 : i32
    %334 = arith.index_cast %c4_i32_164 : i32 to index
    %c0_165 = arith.constant 0 : index
    %c0_166 = arith.constant 0 : index
    %335 = vector.load %arg19[%334, %c0_165, %c0_166] : memref<8x16x32xf32, #tpu.memory_space<vmem>>, vector<1x16x32xf32>
    %336 = vector.shape_cast %335 : vector<1x16x32xf32> to vector<16x32xf32>
    %337 = arith.mulf %336, %329 : vector<16x32xf32>
    %338 = arith.index_cast %c4_i32_164 : i32 to index
    %c0_167 = arith.constant 0 : index
    %c0_168 = arith.constant 0 : index
    %339 = vector.load %arg21[%338, %c0_167, %c0_168] : memref<8x16x32xf32, #tpu.memory_space<vmem>>, vector<1x16x32xf32>
    %340 = vector.shape_cast %339 : vector<1x16x32xf32> to vector<16x32xf32>
    %341 = arith.addf %337, %340 : vector<16x32xf32>
    %342 = arith.index_cast %c4_i32_164 : i32 to index
    %c0_169 = arith.constant 0 : index
    %c0_170 = arith.constant 0 : index
    %343 = vector.load %arg21[%342, %c0_169, %c0_170] : memref<8x16x32xf32, #tpu.memory_space<vmem>>, vector<1x16x32xf32>
    %344 = vector.shape_cast %343 : vector<1x16x32xf32> to vector<16x32xf32>
    %345 = vector.shape_cast %341 : vector<16x32xf32> to vector<1x16x32xf32>
    tpu.vector_store %arg21[%342, %c0_169, %c0_170], %345 {strides = array<i32>} : memref<8x16x32xf32, #tpu.memory_space<vmem>>, vector<1x16x32xf32>,
    %c5_i32_171 = arith.constant 5 : i32
    %346 = arith.index_cast %c5_i32_171 : i32 to index
    %c0_172 = arith.constant 0 : index
    %c0_173 = arith.constant 0 : index
    %347 = vector.load %arg19[%346, %c0_172, %c0_173] : memref<8x16x32xf32, #tpu.memory_space<vmem>>, vector<1x16x32xf32>
    %348 = vector.shape_cast %347 : vector<1x16x32xf32> to vector<16x32xf32>
    %349 = arith.mulf %348, %341 : vector<16x32xf32>
    %350 = arith.index_cast %c5_i32_171 : i32 to index
    %c0_174 = arith.constant 0 : index
    %c0_175 = arith.constant 0 : index
    %351 = vector.load %arg21[%350, %c0_174, %c0_175] : memref<8x16x32xf32, #tpu.memory_space<vmem>>, vector<1x16x32xf32>
    %352 = vector.shape_cast %351 : vector<1x16x32xf32> to vector<16x32xf32>
    %353 = arith.addf %349, %352 : vector<16x32xf32>
    %354 = arith.index_cast %c5_i32_171 : i32 to index
    %c0_176 = arith.constant 0 : index
    %c0_177 = arith.constant 0 : index
    %355 = vector.load %arg21[%354, %c0_176, %c0_177] : memref<8x16x32xf32, #tpu.memory_space<vmem>>, vector<1x16x32xf32>
    %356 = vector.shape_cast %355 : vector<1x16x32xf32> to vector<16x32xf32>
    %357 = vector.shape_cast %353 : vector<16x32xf32> to vector<1x16x32xf32>
    tpu.vector_store %arg21[%354, %c0_176, %c0_177], %357 {strides = array<i32>} : memref<8x16x32xf32, #tpu.memory_space<vmem>>, vector<1x16x32xf32>,
    %c6_i32_178 = arith.constant 6 : i32
    %358 = arith.index_cast %c6_i32_178 : i32 to index
    %c0_179 = arith.constant 0 : index
    %c0_180 = arith.constant 0 : index
    %359 = vector.load %arg19[%358, %c0_179, %c0_180] : memref<8x16x32xf32, #tpu.memory_space<vmem>>, vector<1x16x32xf32>
    %360 = vector.shape_cast %359 : vector<1x16x32xf32> to vector<16x32xf32>
    %361 = arith.mulf %360, %353 : vector<16x32xf32>
    %362 = arith.index_cast %c6_i32_178 : i32 to index
    %c0_181 = arith.constant 0 : index
    %c0_182 = arith.constant 0 : index
    %363 = vector.load %arg21[%362, %c0_181, %c0_182] : memref<8x16x32xf32, #tpu.memory_space<vmem>>, vector<1x16x32xf32>
    %364 = vector.shape_cast %363 : vector<1x16x32xf32> to vector<16x32xf32>
    %365 = arith.addf %361, %364 : vector<16x32xf32>
    %366 = arith.index_cast %c6_i32_178 : i32 to index
    %c0_183 = arith.constant 0 : index
    %c0_184 = arith.constant 0 : index
    %367 = vector.load %arg21[%366, %c0_183, %c0_184] : memref<8x16x32xf32, #tpu.memory_space<vmem>>, vector<1x16x32xf32>
    %368 = vector.shape_cast %367 : vector<1x16x32xf32> to vector<16x32xf32>
    %369 = vector.shape_cast %365 : vector<16x32xf32> to vector<1x16x32xf32>
    tpu.vector_store %arg21[%366, %c0_183, %c0_184], %369 {strides = array<i32>} : memref<8x16x32xf32, #tpu.memory_space<vmem>>, vector<1x16x32xf32>,
    %c7_i32_185 = arith.constant 7 : i32
    %370 = arith.index_cast %c7_i32_185 : i32 to index
    %c0_186 = arith.constant 0 : index
    %c0_187 = arith.constant 0 : index
    %371 = vector.load %arg19[%370, %c0_186, %c0_187] : memref<8x16x32xf32, #tpu.memory_space<vmem>>, vector<1x16x32xf32>
    %372 = vector.shape_cast %371 : vector<1x16x32xf32> to vector<16x32xf32>
    %373 = arith.mulf %372, %365 : vector<16x32xf32>
    %374 = arith.index_cast %c7_i32_185 : i32 to index
    %c0_188 = arith.constant 0 : index
    %c0_189 = arith.constant 0 : index
    %375 = vector.load %arg21[%374, %c0_188, %c0_189] : memref<8x16x32xf32, #tpu.memory_space<vmem>>, vector<1x16x32xf32>
    %376 = vector.shape_cast %375 : vector<1x16x32xf32> to vector<16x32xf32>
    %377 = arith.addf %373, %376 : vector<16x32xf32>
    %378 = arith.index_cast %c7_i32_185 : i32 to index
    %c0_190 = arith.constant 0 : index
    %c0_191 = arith.constant 0 : index
    %379 = vector.load %arg21[%378, %c0_190, %c0_191] : memref<8x16x32xf32, #tpu.memory_space<vmem>>, vector<1x16x32xf32>
    %380 = vector.shape_cast %379 : vector<1x16x32xf32> to vector<16x32xf32>
    %381 = vector.shape_cast %377 : vector<16x32xf32> to vector<1x16x32xf32>
    tpu.vector_store %arg21[%378, %c0_190, %c0_191], %381 {strides = array<i32>} : memref<8x16x32xf32, #tpu.memory_space<vmem>>, vector<1x16x32xf32>,
    %c8_i32_192 = arith.constant 8 : i32
    %c0_193 = arith.constant 0 : index
    %c0_194 = arith.constant 0 : index
    %382 = vector.load %arg23[%c0_193, %c0_194] : memref<16x32xf32, #tpu.memory_space<vmem>>, vector<16x32xf32>
    tpu.vector_store %arg23[%c0_193, %c0_194], %377 {strides = array<i32>} : memref<16x32xf32, #tpu.memory_space<vmem>>, vector<16x32xf32>,
    %c0_195 = arith.constant 0 : index
    %c0_196 = arith.constant 0 : index
    %c0_197 = arith.constant 0 : index
    %383 = vector.load %arg20[%c0_195, %c0_196, %c0_197] : memref<8x16x32xf32, #tpu.memory_space<vmem>>, vector<8x16x32xf32>
    %384 = vector.shape_cast %139 : vector<8x16xf32> to vector<8x16x1xf32>
    %385 = vector.broadcast %384 : vector<8x16x1xf32> to vector<8x16x32xf32>
    %386 = arith.mulf %383, %385 : vector<8x16x32xf32>
    %cst_198 = arith.constant dense<0.000000e+00> : vector<8x32xf32>
    %387 = vector.multi_reduction <add>, %386, %cst_198 [1] : vector<8x16x32xf32> to vector<8x32xf32>
    %388 = arith.addf %387, %155 : vector<8x32xf32>
    %c0_199 = arith.constant 0 : index
    %c0_200 = arith.constant 0 : index
    %c0_201 = arith.constant 0 : index
    %389 = vector.load %arg21[%c0_199, %c0_200, %c0_201] : memref<8x16x32xf32, #tpu.memory_space<vmem>>, vector<8x16x32xf32>
    %390 = vector.shape_cast %170 : vector<8x16xf32> to vector<8x16x1xf32>
    %391 = vector.broadcast %390 : vector<8x16x1xf32> to vector<8x16x32xf32>
    %392 = arith.mulf %389, %391 : vector<8x16x32xf32>
    %cst_202 = arith.constant dense<0.000000e+00> : vector<8x32xf32>
    %393 = vector.multi_reduction <add>, %392, %cst_202 [1] : vector<8x16x32xf32> to vector<8x32xf32>
    %394 = arith.addf %393, %186 : vector<8x32xf32>
    %cst_203 = arith.constant dense<0.000000e+00> : vector<8x32xf32>
    %395 = tpu.matmul %114, %394, %cst_203 {dimension_numbers = #tpu.dot_dimension_numbers<[1], [0], [0], [1], [0, 0, 1, 1], [], []>} : vector<8x8xf32>, vector<8x32xf32>, vector<8x32xf32> -> vector<8x32xf32>
    %c0_i32_204 = arith.constant 0 : i32
    %396 = arith.subi %c0_i32_204, %120 : i32
    %397 = tpu.assume_multiple %396, 8 : i32
    %398 = arith.index_cast %120 : i32 to index
    %c0_205 = arith.constant 0 : index
    %399 = vector.load %arg24[%398, %c0_205] : memref<8x64xf32, #tpu.memory_space<vmem>>, vector<8x32xf32>
    tpu.vector_store %arg24[%398, %c0_205], %388 {strides = array<i32>} : memref<8x64xf32, #tpu.memory_space<vmem>>, vector<8x32xf32>,
    %400 = arith.index_cast %397 : i32 to index
    %c32 = arith.constant 32 : index
    %401 = vector.load %arg24[%400, %c32] : memref<8x64xf32, #tpu.memory_space<vmem>>, vector<8x32xf32>
    tpu.vector_store %arg24[%400, %c32], %395 {strides = array<i32>} : memref<8x64xf32, #tpu.memory_space<vmem>>, vector<8x32xf32>,
    %c1_i32_206 = arith.constant 1 : i32
    %c0_207 = arith.constant 0 : index
    %c0_208 = arith.constant 0 : index
    %c0_209 = arith.constant 0 : index
    %402 = vector.load %arg1[%c0_207, %c0_208, %c0_209] : memref<1x8x32xbf16, #tpu.memory_space<vmem>>, vector<1x8x32xbf16>
    %403 = vector.shape_cast %402 : vector<1x8x32xbf16> to vector<8x32xbf16>
    %c0_210 = arith.constant 0 : index
    %c0_211 = arith.constant 0 : index
    %404 = vector.load %arg3[%c0_210, %c0_211] : memref<64x32xbf16, #tpu.memory_space<vmem>>, vector<64x32xbf16>
    %cst_212 = arith.constant dense<0.000000e+00> : vector<8x64xf32>
    %405 = tpu.matmul %403, %404, %cst_212 {dimension_numbers = #tpu.dot_dimension_numbers<[1], [1], [0], [0], [0, 0, 1, 0], [], []>} : vector<8x32xbf16>, vector<64x32xbf16>, vector<8x64xf32> -> vector<8x64xf32>
    %c0_213 = arith.constant 0 : index
    %c0_214 = arith.constant 0 : index
    %406 = vector.load %arg24[%c0_213, %c0_214] : memref<8x64xf32, #tpu.memory_space<vmem>>, vector<8x64xf32>
    %c0_215 = arith.constant 0 : index
    %c0_216 = arith.constant 0 : index
    %407 = vector.load %arg13[%c0_215, %c0_216] : memref<64x64xbf16, #tpu.memory_space<vmem>>, vector<64x64xbf16>
    %408 = arith.truncf %406 : vector<8x64xf32> to vector<8x64xbf16>
    %cst_217 = arith.constant dense<0.000000e+00> : vector<8x64xf32>
    %409 = tpu.matmul %408, %407, %cst_217 {dimension_numbers = #tpu.dot_dimension_numbers<[1], [1], [0], [0], [0, 0, 1, 0], [], []>} : vector<8x64xbf16>, vector<64x64xbf16>, vector<8x64xf32> -> vector<8x64xf32>
    %cst_218 = arith.constant 0.000000e+00 : f32
    %410 = vector.broadcast %cst_218 : f32 to vector<8x64xf32>
    %411 = arith.subf %410, %405 : vector<8x64xf32>
    %412 = math.exp %411 : vector<8x64xf32>
    %cst_219 = arith.constant 1.000000e+00 : f32
    %413 = vector.broadcast %cst_219 : f32 to vector<8x64xf32>
    %414 = arith.addf %413, %412 : vector<8x64xf32>
    %415 = arith.divf %405, %414 : vector<8x64xf32>
    %416 = arith.mulf %409, %415 : vector<8x64xf32>
    %c0_220 = arith.constant 0 : index
    %c0_221 = arith.constant 0 : index
    %417 = vector.load %arg14[%c0_220, %c0_221] : memref<32x64xbf16, #tpu.memory_space<vmem>>, vector<32x64xbf16>
    %418 = arith.truncf %416 : vector<8x64xf32> to vector<8x64xbf16>
    %cst_222 = arith.constant dense<0.000000e+00> : vector<8x32xf32>
    %419 = tpu.matmul %418, %417, %cst_222 {dimension_numbers = #tpu.dot_dimension_numbers<[1], [1], [0], [0], [0, 0, 1, 0], [], []>} : vector<8x64xbf16>, vector<32x64xbf16>, vector<8x32xf32> -> vector<8x32xf32>
    %c0_223 = arith.constant 0 : index
    %c0_224 = arith.constant 0 : index
    %c0_225 = arith.constant 0 : index
    %420 = vector.load %arg15[%c0_223, %c0_224, %c0_225] : memref<1x8x32xf32, #tpu.memory_space<vmem>>, vector<1x8x32xf32>
    %421 = vector.shape_cast %420 : vector<1x8x32xf32> to vector<8x32xf32>
    %422 = vector.shape_cast %419 : vector<8x32xf32> to vector<1x8x32xf32>
    tpu.vector_store %arg15[%c0_223, %c0_224, %c0_225], %422 {strides = array<i32>} : memref<1x8x32xf32, #tpu.memory_space<vmem>>, vector<1x8x32xf32>,
    return
  }
  func.func @transform_0(%arg0: i32) -> (i32, i32, i32) {
    %c0_i32 = arith.constant 0 : i32
    %c0_i32_0 = arith.constant 0 : i32
    %c0_i32_1 = arith.constant 0 : i32
    return %arg0, %c0_i32, %c0_i32_0 : i32, i32, i32
  }
  func.func @transform_1(%arg0: i32) -> (i32, i32) {
    %c0_i32 = arith.constant 0 : i32
    %c0_i32_0 = arith.constant 0 : i32
    %c0_i32_1 = arith.constant 0 : i32
    return %c0_i32, %c0_i32_0 : i32, i32
  }
  func.func @transform_2(%arg0: i32) -> (i32, i32) {
    %c0_i32 = arith.constant 0 : i32
    %c0_i32_0 = arith.constant 0 : i32
    %c0_i32_1 = arith.constant 0 : i32
    return %c0_i32, %c0_i32_0 : i32, i32
  }
  func.func @transform_3(%arg0: i32) -> (i32, i32) {
    %c0_i32 = arith.constant 0 : i32
    %c0_i32_0 = arith.constant 0 : i32
    %c0_i32_1 = arith.constant 0 : i32
    return %c0_i32, %c0_i32_0 : i32, i32
  }
  func.func @transform_4(%arg0: i32) -> (i32, i32) {
    %c0_i32 = arith.constant 0 : i32
    %c0_i32_0 = arith.constant 0 : i32
    %c0_i32_1 = arith.constant 0 : i32
    return %c0_i32, %c0_i32_0 : i32, i32
  }
  func.func @transform_5(%arg0: i32) -> (i32, i32) {
    %c0_i32 = arith.constant 0 : i32
    %c0_i32_0 = arith.constant 0 : i32
    %c0_i32_1 = arith.constant 0 : i32
    return %c0_i32, %c0_i32_0 : i32, i32
  }
  func.func @transform_6(%arg0: i32) -> (i32, i32) {
    %c0_i32 = arith.constant 0 : i32
    %c0_i32_0 = arith.constant 0 : i32
    %c0_i32_1 = arith.constant 0 : i32
    return %c0_i32, %c0_i32_0 : i32, i32
  }
  func.func @transform_7(%arg0: i32) -> (i32, i32) {
    %c0_i32 = arith.constant 0 : i32
    %c0_i32_0 = arith.constant 0 : i32
    %c0_i32_1 = arith.constant 0 : i32
    return %c0_i32, %c0_i32_0 : i32, i32
  }
  func.func @transform_8(%arg0: i32) -> (i32, i32) {
    %c0_i32 = arith.constant 0 : i32
    %c0_i32_0 = arith.constant 0 : i32
    %c0_i32_1 = arith.constant 0 : i32
    return %c0_i32, %c0_i32_0 : i32, i32
  }
  func.func @transform_9(%arg0: i32) -> (i32, i32) {
    %c0_i32 = arith.constant 0 : i32
    %c0_i32_0 = arith.constant 0 : i32
    %c0_i32_1 = arith.constant 0 : i32
    return %c0_i32, %c0_i32_0 : i32, i32
  }
  func.func @transform_10(%arg0: i32) -> (i32, i32) {
    %c0_i32 = arith.constant 0 : i32
    %c0_i32_0 = arith.constant 0 : i32
    %c0_i32_1 = arith.constant 0 : i32
    return %c0_i32, %c0_i32_0 : i32, i32
  }
  func.func @transform_11(%arg0: i32) -> (i32, i32) {
    %c0_i32 = arith.constant 0 : i32
    %c0_i32_0 = arith.constant 0 : i32
    %c0_i32_1 = arith.constant 0 : i32
    return %c0_i32, %c0_i32_0 : i32, i32
  }
  func.func @transform_12(%arg0: i32) -> (i32, i32) {
    %c0_i32 = arith.constant 0 : i32
    %c0_i32_0 = arith.constant 0 : i32
    %c0_i32_1 = arith.constant 0 : i32
    return %c0_i32, %c0_i32_0 : i32, i32
  }
  func.func @transform_13(%arg0: i32) -> (i32, i32) {
    %c0_i32 = arith.constant 0 : i32
    %c0_i32_0 = arith.constant 0 : i32
    %c0_i32_1 = arith.constant 0 : i32
    return %c0_i32, %c0_i32_0 : i32, i32
  }
  func.func @transform_14(%arg0: i32) -> (i32, i32, i32) {
    %c0_i32 = arith.constant 0 : i32
    %c0_i32_0 = arith.constant 0 : i32
    %c0_i32_1 = arith.constant 0 : i32
    return %arg0, %c0_i32, %c0_i32_0 : i32, i32, i32
  }
}

</mosaic_0001>

<bundles_post_ra>
// kernel: tpu_custom_call.1
= control target key start
LH: loop header
LB: loop body
LE: loop exit
PB: predicated region body
PF: predicated region fallthrough
CT: control target
= control target key end

     0   :  { %s4230_s0 = inlined_call_operand.vmem [shape: bf16[2,8,32], index: 0, kind: input, shape index: {}]   ;;  %s4231_s1 = inlined_call_operand.vmem [shape: bf16[32,32], index: 1, kind: input, shape index: {}]   ;;  %s4232_s2 = inlined_call_operand.vmem [shape: bf16[64,32], index: 2, kind: input, shape index: {}]   ;;  %s4233_s3 = inlined_call_operand.vmem [shape: f32[4,32], index: 3, kind: input, shape index: {}]   ;;  %s4234_s4 = inlined_call_operand.vmem [shape: f32[1,32], index: 4, kind: input, shape index: {}]   ;;  %s4235_s5 = inlined_call_operand.vmem [shape: f32[4,32], index: 5, kind: input, shape index: {}]   ;;  %s4236_s6 = inlined_call_operand.vmem [shape: f32[1,32], index: 6, kind: input, shape index: {}]   ;;  %s4237_s7 = inlined_call_operand.vmem [shape: bf16[128,32], index: 7, kind: input, shape index: {}]   ;;  %s4238_s8 = inlined_call_operand.vmem [shape: f32[32,2], index: 8, kind: input, shape index: {}]   ;;  %s4239_s9 = inlined_call_operand.vmem [shape: f32[1,32], index: 9, kind: input, shape index: {}]   ;;  %s4240_s10 = inlined_call_operand.vmem [shape: f32[16,32], index: 10, kind: input, shape index: {}]   ;;  %s4241_s11 = inlined_call_operand.vmem [shape: f32[1,32], index: 11, kind: input, shape index: {}]   ;;  %s4242_s12 = inlined_call_operand.vmem [shape: bf16[64,64], index: 12, kind: input, shape index: {}]   ;;  %s4243_s13 = inlined_call_operand.vmem [shape: bf16[32,64], index: 13, kind: input, shape index: {}]   ;;  %s4244_s14 = inlined_call_operand.hbm [shape: f32[2,8,32], index: 14, kind: output, shape index: {}]  }
   0x1   :  { %4250 = sst [smem:[#allocation28_spill]] %s4230_s0 }
   0x2   :  { %4251 = sst [smem:[#allocation29_spill]] %s4231_s1 }
   0x3   :  { %4252 = sst [smem:[#allocation30_spill]] %s4232_s2 }
   0x4   :  { %4253 = sst [smem:[#allocation31_spill]] %s4233_s3 }
   0x5   :  { %19 = vsyncpa [#allocation12], 0 }
   0x6   :  { %21 = vsyncpa [#allocation12 + $0x1], 0  ;;  %s3304_s29 = smov 0   ;;  %s3306_s30 = smov 0  }
   0x7   :  { %s3308_s15 = smov 0   ;;  %s3310_s16 = smov 0  }
   0x8 LB: > { %s3325_s17 = sadd.s32 4294967295, %s3222_s16   ;;  %s2804_s18 = sadd.s32 4294967294, %s3222_s16   ;;  %s3222_s16 = sphi %s3310_s16, %s4301_s16   ;;  %s3218_s15 = sphi %s3308_s15, %s4300_s15   ;;  %s3214_s30 = sphi %s3306_s30, %s4299_s30   ;;  %s3210_s29 = sphi %s3304_s29, %s4298_s29  }
   0x9   : > { %s3329_s19 = sadd.s32 1, %s3222_s16   ;;  %s333_s20 = sadd.s32 1, %s3218_s15 }
   0xa   : > { %s330_s21 = ssub.s32 %s3222_s16, %s3329_s19  ;;  %p343_p0 = scmp.ne.s32.totalorder %s3218_s15, %s3214_s30 }
   0xb   : > { %p331_p1 = scmp.eq.s32.totalorder %s330_s21, 0  ;;  %p344_p2 = scmp.eq.s32.totalorder %s3325_s17, 1 }
   0xc   : > { %p349_p3 = scmp.ne.s32.totalorder %s3214_s30, %s3210_s29  ;;  %p350_p4 = scmp.eq.s32.totalorder %s2804_s18, 1 }
   0xd   : > { %s3340_s22 = scalar_select %p331_p1, %s3218_s15, %s333_s20  }
   0xe   : > { %p3342_p5 = por %p344_p2, %p343_p0  ;;  %p3346_p6 = por %p350_p4, %p349_p3 }
   0xf   : > { %p2807_p7 = scmp.ge.s32.totalorder %s3222_s16, 1  ;;  %p414_p8 = scmp.lt.s32.totalorder %s3222_s16, 3 }
  0x11   : > { %p415_p9 = pnand %p2807_p7, %p414_p8 }
  0x13   : > { %418 = sbr.rel (%p415_p9) target bundleno = 1808 (0x710), region = 76 }
  0x18   : > { %s4256_s1 = sld [smem:[#allocation29_spill]]  ;;  %v4245_v1 = vmov 0.0   ;;  %vm479_vm0 = vcmask 261120   ;;  %p459_p10 = scmp.lt.s32.totalorder %s3325_s17, 1  ;;  %v3054_v3 = vld [vmem:[%s4237_s7 + $0x38] sm:$0xff]   ;;  %vm3225_vm1 = vmmov 0   ;;  %v4247_v23 = vlaneseq }
  0x19   : > { %2902 = vmatprep.subr.bf16.mxu0 %v4245_v1  ;;  %2910 = vmatprep.subr.bf16.mxu1 %v4245_v1  ;;  %667 = vst.msk [vmem:[#allocation8] sm:$0xff] %vm479_vm0, %v4245_v1  ;;  %668 = vst.msk [vmem:[#allocation8 + $0x8] sm:$0xff] %vm479_vm0, %v4245_v1  ;;  %v3378_v5 = vsel %vm479_vm0, %v3054_v3, 0  ;;  %s4257_s0 = sld [smem:[#allocation28_spill]]  ;;  %v3055_v8 = vld [vmem:[%s4237_s7 + $0x30] sm:$0xff]   ;;  %v3056_v10 = vld [vmem:[%s4237_s7 + $0x28] sm:$0xff]  }
  0x1a   : > { %669 = vst.msk [vmem:[#allocation9] sm:$0xff] %vm479_vm0, %v4245_v1  ;;  %670 = vst.msk [vmem:[#allocation9 + $0x8] sm:$0xff] %vm479_vm0, %v4245_v1  ;;  %2906 = vmatprep.mubr.msk.bf16.mxu0 %vm3225_vm1, %v4245_v1  ;;  %s460_s21 = scalar_select %p459_p10, %s3325_s17, 1  ;;  %2926 = vmatprep.mubr.msk.bf16.mxu1 %vm3225_vm1, %v4245_v1  ;;  %v3399_v9 = vsel %vm479_vm0, %v3055_v8, 0  ;;  %v3407_v11 = vsel %vm479_vm0, %v3056_v10, 0  ;;  %v3057_v12 = vld [vmem:[%s4237_s7 + $0x20] sm:$0xff]  }
  0x1b   : > { %2911 = vmatpush3.bf16.xpose.msra.mxu1 %v3378_v5  ;;  %v3415_v13 = vsel %vm479_vm0, %v3057_v12, 0  ;;  %v3058_v14 = vld [vmem:[%s4237_s7 + $0x18] sm:$0xff]   ;;  %v3059_v16 = vld [vmem:[%s4237_s7 + $0x10] sm:$0xff]   ;;  %v3060_v18 = vld [vmem:[%s4237_s7 + $0x8] sm:$0xff]   ;;  %vm787_vm2 = vcmask 15360   ;;  %v3467_v25 = vshrl.u32 %v4247_v23, 7 }
  0x1c   : > { %s2809_s25 = sshll.u32 %s460_s21, 2  ;;  %2912 = vmatprep.subr.bf16.mxu1 %v4245_v1  ;;  %v3423_v15 = vsel %vm479_vm0, %v3058_v14, 0  ;;  %v3431_v17 = vsel %vm479_vm0, %v3059_v16, 0  ;;  %v3439_v19 = vsel %vm479_vm0, %v3060_v18, 0  ;;  %v3061_v20 = vld [vmem:[%s4237_s7] sm:$0xff]   ;;  %v3454_v22 = vld [vmem:[%s4238_s8 + $0x18] sm:$0xff] }
  0x1d   : > { %v3447_v21 = vsel %vm479_vm0, %v3061_v20, 0  ;;  %v3462_v24 = vld [vmem:[%s4238_s8 + $0x10] sm:$0xff]  ;;  %4258 = vst [vmem:[#allocation14_spill] sm:$0xff] %v3467_v25  ;;  %v3473_v26 = vld [vmem:[%s4238_s8 + $0x8] sm:$0xff]  ;;  %v3478_v27 = vsub.s32 3, %v3467_v25  ;;  %v3484_v28 = vld [vmem:[%s4238_s8] sm:$0xff] }
  0x1e   : > { %v3052_v0 = vld [vmem:[%s4256_s1 + $0x8] sm:$0xff]   ;;  %v3053_v4 = vld [vmem:[%s4256_s1] sm:$0xff]   ;;  %s4259_s3 = sld [smem:[#allocation31_spill]]  ;;  %v3490_v30 = vsub.s32 2, %v3467_v25  ;;  %v3497_v32 = vsub.s32 1, %v3467_v25  ;;  %vm546_vm3 = vcmp.ge.s32.totalorder %v3467_v25, 1 }
  0x1f   : > { %v487_v2 = vsel %vm479_vm0, %v3052_v0, 0  ;;  %v484_v6 = vsel %vm479_vm0, %v3053_v4, 0  ;;  %s3388_s28 = scalar_lea.vmem %s4257_s0, %s2809_s25  ;;  %v2813_v34 = vld [vmem:[%s4234_s4] ss:$0 sm:$0xff]  ;;  %vm557_vm4 = vcmp.ge.s32.totalorder %v3467_v25, 2  ;;  %v3506_v36 = vsub.s32 0, %v3467_v25 }
  0x20   : > { %2903 = vmatpush3.bf16.xpose.msra.mxu0 %v487_v2  ;;  %v464_v7 = vld [vmem:[%s3388_s28] sm:$0xf]  ;;  %vm568_vm5 = vcmp.ge.s32.totalorder %v3467_v25, 3  ;;  %vm2361_vm10 = vcmask 1041409   ;;  %vm2364_vm11 = vcmask 1042434   ;;  %vm2367_vm12 = vcmask 1043459  }
  0x21   : > { %2904 = vmatprep.subr.bf16.mxu0 %v4245_v1  ;;  %v586_v62 = vld [vmem:[%s4235_s5] sm:$0xf]  ;;  %vm2370_vm13 = vcmask 1044484   ;;  %vm2373_vm14 = vcmask 1045509   ;;  %vm2376_vm15 = vcmask 1046534   ;;  %s4297_s2 = sld [smem:[#allocation30_spill]] }
  0x22   : > { %v591_v63 = vrot.slane %v586_v62, %v3478_v27  ;;  %v2814_v2 = vld [vmem:[%s4236_s6] ss:$0 sm:$0xff]  ;;  %v605_v3 = vrot.slane %v586_v62, %v3490_v30  ;;  %v613_v10 = vrot.slane %v586_v62, %v3497_v32  ;;  %s3227_s18 = smov 32   ;;  %s456_s26 = sand.u32 1, %s3214_s30  }
  0x23   : > { %2913 = vmatpush3.bf16.xpose.msra.mxu1 %v3399_v9  ;;  %s2808_s27 = sshll.u32 %s456_s26, 3  ;;  %s2731_s1 = scalar_lea.sflag [#allocation12], %s456_s26 }
  0x24   : > { %2914 = vmatprep.subr.bf16.mxu1 %v4245_v1  ;;  %v531_v29 = vld [vmem:[%s4259_s3] sm:$0xf]  ;;  %s458_s20 = scalar_lea.vmem [#allocation11], %s2808_s27 }
  0x25   : > { %v536_v31 = vrot.slane %v531_v29, %v3478_v27  ;;  %v553_v35 = vrot.slane %v531_v29, %v3490_v30  ;;  %v564_v41 = vrot.slane %v531_v29, %v3497_v32  ;;  %v575_v47 = vrot.slane %v531_v29, %v3506_v36  ;;  %s2744_s21 = sshll.u32 %s458_s20, 4  ;;  %s4190_s21 = int_to_ptr.vmem [resolvable:$true] %s2744_s21 }
  0x26   : > { %v621_v29 = vrot.slane %v586_v62, %v3506_v36 }
  0x28   : > { %2905 = vmatpush3.bf16.xpose.msra.mxu0 %v484_v6 }
  0x29   : > { %2930 = vmatprep.subr.mxu0 %v4245_v1 }
  0x2b   : > { %2915 = vmatpush3.bf16.xpose.msra.mxu1 %v3407_v11 }
  0x2c   : > { %2916 = vmatprep.subr.bf16.mxu1 %v4245_v1 }
  0x2f   : > { %2907 = vmatmul.mubr.msk.bf16.vlgmr.msra.gmra.mxu0 %vm479_vm0, %v464_v7 }
  0x30   : > { %2938 = vmatprep.mubr.msk.f32.mxu0 %vm3225_vm1, %v4245_v1  ;;  %2931 = vmatpush3.xpose.msk.msra.mxu0 %vm787_vm2, %v3454_v22 }
  0x31   : > { %2932 = vmatprep.subr.mxu0 %v4245_v1 }
  0x33   : > { %2917 = vmatpush3.bf16.xpose.msra.mxu1 %v3415_v13 }
  0x34   : > { %2918 = vmatprep.subr.bf16.mxu1 %v4245_v1  ;;  %2933 = vmatpush3.xpose.msk.msra.mxu0 %vm787_vm2, %v3462_v24 }
  0x35   : > { %2934 = vmatprep.subr.mxu0 %v4245_v1 }
  0x38   : > { %2935 = vmatpush3.xpose.msk.msra.mxu0 %vm787_vm2, %v3473_v26 }
  0x39   : > { %2936 = vmatprep.subr.mxu0 %v4245_v1 }
  0x3b   : > { %2919 = vmatpush3.bf16.xpose.msra.mxu1 %v3423_v15 }
  0x3c   : > { %2920 = vmatprep.subr.bf16.mxu1 %v4245_v1  ;;  %2937 = vmatpush3.xpose.msk.msra.mxu0 %vm787_vm2, %v3484_v28 }
  0x3d   : > { %2941 = vmatprep.subr.bf16.mxu0 %v4245_v1 }
  0x43   : > { %2921 = vmatpush3.bf16.xpose.msra.mxu1 %v3431_v17 }
  0x44   : > { %2922 = vmatprep.subr.bf16.mxu1 %v4245_v1 }
  0x4b   : > { %2923 = vmatpush3.bf16.xpose.msra.mxu1 %v3439_v19 }
  0x4c   : > { %2924 = vmatprep.subr.bf16.mxu1 %v4245_v1 }
  0x53   : > { %2925 = vmatpush3.bf16.xpose.msra.mxu1 %v3447_v21 }
  0x54   : > { %2961 = vmatprep.subr.mxu1 %v4245_v1 }
  0xef   : > { %v523_v33 = vpop.f32.mrf.mxu0 }
  0xf0   : > { %v537_v37 = vmul.f32 %v536_v31, %v523_v33  ;;  %v545_v38 = vrot.slane %v523_v33, 7  ;;  %v556_v39 = vrot.slane %v523_v33, 6  ;;  %v567_v40 = vrot.slane %v523_v33, 5 }
  0xf1   : > { %v2908_v42 = vpop.f32.mrf.mxu0 }
  0xf2   : > { %v544_v43 = vadd.f32 %v2813_v34, %v537_v37  ;;  %v549_v44 = vsel %vm546_vm3, %v545_v38, 0.0  ;;  %v560_v45 = vsel %vm557_vm4, %v556_v39, 0.0  ;;  %v571_v49 = vsel %vm568_vm5, %v567_v40, 0.0 }
  0xf3   : > { %v554_v46 = vmul.f32 %v553_v35, %v549_v44  ;;  %v526_v48 = vpop.f32.mrf.mxu0  ;;  %v565_v51 = vmul.f32 %v564_v41, %v560_v45  ;;  %v576_v54 = vmul.f32 %v575_v47, %v571_v49  ;;  %v1166_v44 = vsub.s32 6, %v3467_v25 }
  0xf4   : > { %v1178_v45 = vsub.s32 7, %v3467_v25 }
  0xf5   : > { %v555_v50 = vadd.f32 %v554_v46, %v544_v43  ;;  %v2909_v52 = vpop.f32.mrf.mxu0  ;;  %v1142_v43 = vsub.s32 4, %v3467_v25 }
  0xf7   : > { %v566_v53 = vadd.f32 %v565_v51, %v555_v50 }
  0xf9   : > { %v577_v55 = vadd.f32 %v576_v54, %v566_v53 }
  0xfb   : > { %v578_v56 = vsub.f32 0.0, %v577_v55 }
  0xfd   : > { %v579_v57 = vmul.f32 1.442695, %v578_v56  ;;  %v632_v56 = vld [vmem:[%s4240_s10 + $0x8] sm:$0xff] }
  0xff   : > { %3072 = vpow2.f32 %v579_v57 }
 0x10c   : > { %v3073_v58 = vpop.eup %3072 }
 0x10d   : > { %v581_v59 = vadd.f32 1.0, %v3073_v58  ;;  %v635_v58 = vmul.f32 1.442695, %v632_v56 }
 0x10f   : > { %3074 = vrcp.f32 %v581_v59  ;;  %v3226_v59 = vmov 1966171168  }
 0x11c   : > { %v3075_v60 = vpop.eup %3074 }
 0x11d   : > { %v583_v61 = vmul.f32 %v3075_v60, %v577_v55  ;;  %v631_v55 = vld [vmem:[%s4240_s10] sm:$0xff]  ;;  %v890_v60 = vunpack.c.l.s4 %v3226_v59 }
 0x11e   : > { %v633_v57 = vmul.f32 1.442695, %v631_v55 }
 0x11f   : > { %584 = vst.msk [vmem:[#allocation2] sm:$0xff] %vm479_vm0, %v583_v61  ;;  %v891_v62 = vunpack.c.0.s8 %v890_v60 }
 0x126   : > { %v3522_v0 = vld [vmem:[#allocation2] sm:$0xff] }
 0x127   : > { %v592_v4 = vmul.f32 %v591_v63, %v3522_v0  ;;  %v600_v6 = vrot.slane %v3522_v0, 7  ;;  %v608_v7 = vrot.slane %v3522_v0, 6  ;;  %v616_v8 = vrot.slane %v3522_v0, 5 }
 0x128   : > { %v673_v12 = vpack.c.bf16 %v3522_v0, %v3522_v0 }
 0x129   : > { %v599_v14 = vadd.f32 %v2814_v2, %v592_v4  ;;  %v601_v16 = vsel %vm546_vm3, %v600_v6, 0.0  ;;  %v609_v18 = vsel %vm557_vm4, %v608_v7, 0.0  ;;  %v617_v31 = vsel %vm568_vm5, %v616_v8, 0.0 }
 0x12a   : > { %v606_v20 = vmul.f32 %v605_v3, %v601_v16  ;;  %2927 = vmatmul.mubr.msk.bf16.vlgmr.msra.gmra.mxu1 %vm479_vm0, %v673_v12  ;;  %v614_v34 = vmul.f32 %v613_v10, %v609_v18  ;;  %v622_v37 = vmul.f32 %v621_v29, %v617_v31  ;;  %v3624_v4 = vsub.s32 %v891_v62, %v3467_v25 }
 0x12b   : > { %2962 = vmatpush3.xpose.msk.msra.mxu1 %vm787_vm2, %v3454_v22  ;;  %2969 = vmatprep.mubr.msk.f32.mxu1 %vm3225_vm1, %v4245_v1  ;;  %vm2382_vm4 = vcmask 64512   ;;  %vm2602_vm5 = vcmask 523264  }
 0x12c   : > { %v607_v33 = vadd.f32 %v606_v20, %v599_v14  ;;  %2963 = vmatprep.subr.mxu1 %v4245_v1 }
 0x12e   : > { %v615_v35 = vadd.f32 %v614_v34, %v607_v33 }
 0x12f   : > { %2964 = vmatpush3.xpose.msk.msra.mxu1 %vm787_vm2, %v3462_v24 }
 0x130   : > { %v623_v38 = vadd.f32 %v622_v37, %v615_v35  ;;  %2965 = vmatprep.subr.mxu1 %v4245_v1 }
 0x132   : > { %v624_v39 = vsub.f32 0.0, %v623_v38 }
 0x133   : > { %2966 = vmatpush3.xpose.msk.msra.mxu1 %vm787_vm2, %v3473_v26  ;;  %v1154_v26 = vsub.s32 5, %v3467_v25 }
 0x134   : > { %v625_v22 = vmul.f32 1.442695, %v624_v39  ;;  %2967 = vmatprep.subr.mxu1 %v4245_v1 }
 0x136   : > { %3076 = vpow2.f32 %v625_v22 }
 0x137   : > { %2968 = vmatpush3.xpose.msk.msra.mxu1 %vm787_vm2, %v3484_v28 }
 0x138   : > { %2972 = vmatprep.subr.mxu1 %v4245_v1 }
 0x143   : > { %v3077_v40 = vpop.eup %3076 }
 0x144   : > { %v627_v41 = vadd.f32 1.0, %v3077_v40 }
 0x146   : > { %3078 = vrcp.f32 %v627_v41 }
 0x153   : > { %v3079_v24 = vpop.eup %3078 }
 0x154   : > { %v629_v42 = vmul.f32 %v3079_v24, %v623_v38 }
 0x156   : > { %630 = vst.msk [vmem:[#allocation3] sm:$0xff] %vm479_vm0, %v629_v42 }
 0x1ea   : > { %v3562_v46 = vpop.f32.mrf.mxu1 }
 0x1eb   : > { %2939 = vmatmul.mubr.msk.f32.vlgmr.msra.gmra.mxu0 %vm787_vm2, %v3562_v46  ;;  %v3572_v47 = vrot.slane %v3562_v46, %v1142_v43  ;;  %v3577_v48 = vrot.slane %v3562_v46, %v1154_v26  ;;  %v3582_v49 = vrot.slane %v3562_v46, %v1166_v44 }
 0x1ec   : > { %2942 = vmatpush3.bf16.xpose.msra.mxu0 %v3378_v5  ;;  %v2928_v28 = vpop.f32.mrf.mxu1  ;;  %2957 = vmatprep.mubr.msk.bf16.mxu0 %vm3225_vm1, %v4245_v1  ;;  %v3588_v5 = vrot.slane %v3562_v46, %v1178_v45 }
 0x1ed   : > { %2943 = vmatprep.subr.bf16.mxu0 %v4245_v1 }
 0x1ee   : > { %v778_v50 = vpop.f32.mrf.mxu1 }
 0x1f0   : > { %v2929_v51 = vpop.f32.mrf.mxu1 }
 0x1f4   : > { %2944 = vmatpush3.bf16.xpose.msra.mxu0 %v3399_v9  ;;  %v3604_v9 = vld [vmem:[#allocation3] sm:$0xff] }
 0x1f5   : > { %2945 = vmatprep.subr.bf16.mxu0 %v4245_v1 }
 0x1fc   : > { %2946 = vmatpush3.bf16.xpose.msra.mxu0 %v3407_v11  ;;  %v1267_v11 = vpack.c.bf16 %v3604_v9, %v3604_v9 }
 0x1fd   : > { %2947 = vmatprep.subr.bf16.mxu0 %v4245_v1 }
 0x204   : > { %2948 = vmatpush3.bf16.xpose.msra.mxu0 %v3415_v13  ;;  %v3614_v13 = vld [vmem:[%s4239_s9] ss:$0 sm:$0xff] }
 0x205   : > { %2949 = vmatprep.subr.bf16.mxu0 %v4245_v1 }
 0x20c   : > { %2950 = vmatpush3.bf16.xpose.msra.mxu0 %v3423_v15 }
 0x20d   : > { %2951 = vmatprep.subr.bf16.mxu0 %v4245_v1 }
 0x214   : > { %2952 = vmatpush3.bf16.xpose.msra.mxu0 %v3431_v17 }
 0x215   : > { %2953 = vmatprep.subr.bf16.mxu0 %v4245_v1 }
 0x21c   : > { %2954 = vmatpush3.bf16.xpose.msra.mxu0 %v3439_v19 }
 0x21d   : > { %2955 = vmatprep.subr.bf16.mxu0 %v4245_v1 }
 0x224   : > { %2956 = vmatpush3.bf16.xpose.msra.mxu0 %v3447_v21 }
 0x225   : > { %2989 = vmatprep.subr.bf16.mxu0 %v4245_v1 }
 0x22b   : > { %2958 = vmatmul.mubr.msk.bf16.vlgmr.msra.gmra.mxu0 %vm479_vm0, %v1267_v11 }
 0x22c   : > { %2997 = vmatprep.mubr.msk.bf16.mxu0 %vm3225_vm1, %v4245_v1 }
 0x2ab   : > { %v869_v15 = vpop.f32.mrf.mxu0 }
 0x2ac   : > { %v870_v17 = vadd.f32 %v3614_v13, %v869_v15 }
 0x2ad   : > { %v2940_v19 = vpop.f32.mrf.mxu0 }
 0x2ae   : > { %v874_v21 = vmin.f32 %v870_v17, 20.0  ;;  %vm873_vm7 = vcmp.gt.f32.partialorder %v870_v17, 20.0 }
 0x2b0   : > { %v875_v52 = vmul.f32 1.442695, %v874_v21 }
 0x2b2   : > { %3080 = vpow2.f32 %v875_v52 }
 0x2bf   : > { %v3081_v53 = vpop.eup %3080 }
 0x2c0   : > { %v877_v54 = vadd.f32 1.0, %v3081_v53  ;;  %v880_v61 = vmul.f32 -0.5, %v3081_v53  ;;  %v883_v2 = vand.u32 2147483647, %v3081_v53 }
 0x2c2   : > { %3082 = vlog2.f32 %v877_v54  ;;  %v881_v63 = vadd.f32 1.0, %v880_v61  ;;  %vm884_vm6 = vcmp.lt.f32.partialorder %v883_v2, 0.0004427343 }
 0x2c3   : > { %3084 = vpow2.f32 %v633_v57 }
 0x2c4   : > { %3086 = vpow2.f32 %v635_v58  ;;  %v882_v7 = vmul.f32 %v3081_v53, %v881_v63 }
 0x2cf   : > { %v3083_v3 = vpop.eup %3082 }
 0x2d0   : > { %v879_v6 = vmul.f32 0.6931472, %v3083_v3  ;;  %v3085_v16 = vpop.eup %3084 }
 0x2d1   : > { %v3087_v18 = vpop.eup %3086  ;;  %v3634_v33 = vsub.f32 0.0, %v3085_v16 }
 0x2d2   : > { %v885_v8 = vsel %vm884_vm6, %v882_v7, %v879_v6  ;;  %v3637_v38 = vsub.f32 0.0, %v3087_v18 }
 0x2d3   : > { %v3626_v10 = vsel %vm873_vm7, %v870_v17, %v885_v8 }
 0x2d4   : > { %v888_v12 = vcombine.high %v3626_v10, %v3626_v10  ;;  %v895_v14 = vrot.slane %v3626_v10, %v3624_v4 }
 0x2d6   : > { %v902_v20 = vrot.slane %v888_v12, %v3624_v4  ;;  %v903_v29 = vcombine.high %v895_v14, %v895_v14  ;;  %v911_v31 = vrot.slane %v895_v14, %v3624_v4 }
 0x2d8   : > { %v904_v34 = vcombine.high %v902_v20, %v902_v20  ;;  %v925_v35 = vrot.slane %v903_v29, %v3624_v4  ;;  %v933_v37 = vcombine.high %v911_v31, %v911_v31  ;;  %v940_v39 = vrot.slane %v911_v31, %v3506_v36 }
 0x2d9   : > { %v918_v22 = vrot.slane %v902_v20, %v3624_v4 }
 0x2da   : > { %v935_v40 = vcombine.high %v925_v35, %v925_v35  ;;  %v944_v41 = vrot.slane %v925_v35, %v3506_v36  ;;  %v948_v24 = vrot.slane %v933_v37, %v3506_v36  ;;  %v932_v42 = vrot.slane %v904_v34, %v3624_v4 }
 0x2db   : > { %v977_v50 = vmul.f32 %v940_v39, %v3634_v33  ;;  %v978_v51 = vmul.f32 %v940_v39, %v3637_v38  ;;  %v934_v17 = vcombine.high %v918_v22, %v918_v22  ;;  %v956_v19 = vrot.slane %v918_v22, %v3506_v36 }
 0x2dc   : > { %v952_v28 = vrot.slane %v935_v40, %v3506_v36  ;;  %v979_v11 = vmul.f32 %v944_v41, %v3634_v33  ;;  %v980_v15 = vmul.f32 %v944_v41, %v3637_v38  ;;  %v981_v21 = vmul.f32 %v948_v24, %v3634_v33 }
 0x2dd   : > { %v982_v52 = vmul.f32 %v948_v24, %v3637_v38  ;;  %v936_v53 = vcombine.high %v932_v42, %v932_v42  ;;  %v960_v54 = vrot.slane %v932_v42, %v3506_v36  ;;  %v993_v56 = vmul.f32 1.442695, %v977_v50 }
 0x2de   : > { %v983_v55 = vmul.f32 %v952_v28, %v3634_v33  ;;  %v984_v57 = vmul.f32 %v952_v28, %v3637_v38  ;;  %v995_v58 = vmul.f32 1.442695, %v978_v51  ;;  %v997_v59 = vmul.f32 1.442695, %v979_v11 }
 0x2df   : > { %v999_v60 = vmul.f32 1.442695, %v980_v15  ;;  %v964_v61 = vrot.slane %v934_v17, %v3506_v36  ;;  %v985_v62 = vmul.f32 %v956_v19, %v3634_v33  ;;  %3088 = vpow2.f32 %v993_v56 }
 0x2e0   : > { %v1001_v63 = vmul.f32 1.442695, %v981_v21  ;;  %v986_v2 = vmul.f32 %v956_v19, %v3637_v38  ;;  %3090 = vpow2.f32 %v995_v58  ;;  %v1003_v3 = vmul.f32 1.442695, %v982_v52 }
 0x2e1   : > { %v968_v6 = vrot.slane %v936_v53, %v3506_v36  ;;  %v987_v7 = vmul.f32 %v960_v54, %v3634_v33  ;;  %3092 = vpow2.f32 %v997_v59  ;;  %v1005_v8 = vmul.f32 1.442695, %v983_v55 }
 0x2e2   : > { %v988_v12 = vmul.f32 %v960_v54, %v3637_v38  ;;  %3094 = vpow2.f32 %v999_v60  ;;  %v1007_v14 = vmul.f32 1.442695, %v984_v57  ;;  %v989_v16 = vmul.f32 %v964_v61, %v3634_v33 }
 0x2e3   : > { %3096 = vpow2.f32 %v1001_v63  ;;  %v1009_v18 = vmul.f32 1.442695, %v985_v62  ;;  %v990_v20 = vmul.f32 %v964_v61, %v3637_v38  ;;  %v1011_v29 = vmul.f32 1.442695, %v986_v2 }
 0x2e4   : > { %3098 = vpow2.f32 %v1003_v3  ;;  %v991_v31 = vmul.f32 %v968_v6, %v3634_v33  ;;  %v1013_v34 = vmul.f32 1.442695, %v987_v7  ;;  %v992_v35 = vmul.f32 %v968_v6, %v3637_v38 }
 0x2e5   : > { %3100 = vpow2.f32 %v1005_v8  ;;  %v1015_v37 = vmul.f32 1.442695, %v988_v12  ;;  %v1017_v39 = vmul.f32 1.442695, %v989_v16  ;;  %v1019_v22 = vmul.f32 1.442695, %v990_v20 }
 0x2e6   : > { %3102 = vpow2.f32 %v1007_v14  ;;  %v1021_v41 = vmul.f32 1.442695, %v991_v31  ;;  %v1023_v28 = vmul.f32 1.442695, %v992_v35  ;;  %v1131_v12 = vrot.slane %v3562_v46, %v3478_v27 }
 0x2e7   : > { %3104 = vpow2.f32 %v1009_v18 }
 0x2e8   : > { %3106 = vpow2.f32 %v1011_v29 }
 0x2e9   : > { %3108 = vpow2.f32 %v1013_v34 }
 0x2ea   : > { %3110 = vpow2.f32 %v1015_v37 }
 0x2eb   : > { %v3665_v40 = vpop.f32.mrf.mxu0  ;;  %3112 = vpow2.f32 %v1017_v39 }
 0x2ec   : > { %2970 = vmatmul.mubr.msk.f32.vlgmr.msra.gmra.mxu1 %vm787_vm2, %v3665_v40  ;;  %v3671_v24 = vrot.slane %v3665_v40, %v3497_v32  ;;  %v3675_v42 = vrot.slane %v3665_v40, %v3506_v36  ;;  %v3089_v51 = vpop.eup %3088  ;;  %3114 = vpow2.f32 %v1019_v22  ;;  %v1630_v54 = vrot.slane %v3665_v40, %v3490_v30 }
 0x2ed   : > { %v2959_v50 = vpop.f32.mrf.mxu0  ;;  %2974 = vmatprep.mubr.msk.f32.mxu1 %vm3225_vm1, %v4245_v1  ;;  %v3091_v15 = vpop.eup %3090  ;;  %3116 = vpow2.f32 %v1021_v41  ;;  %1025 = vst.msk [vmem:[#allocation4] sm:$0xff] %vm479_vm0, %v3089_v51  ;;  %v1642_v59 = vrot.slane %v3665_v40, %v3478_v27  ;;  %v1654_v2 = vrot.slane %v3665_v40, %v1142_v43  ;;  %v1666_v7 = vrot.slane %v3665_v40, %v1154_v26 }
 0x2ee   : > { %1621 = vbcast.lane.b32.xlu1 %v3671_v24, 258  ;;  %1609 = vbcast.lane.b32.xlu0 %v3675_v42, 258  ;;  %v3093_v17 = vpop.eup %3092  ;;  %3118 = vpow2.f32 %v1023_v28  ;;  %1026 = vst.msk [vmem:[#allocation4 + $0x8] sm:$0xff] %vm479_vm0, %v3091_v15  ;;  %v1678_v43 = vrot.slane %v3665_v40, %v1166_v44  ;;  %v1690_v8 = vrot.slane %v3665_v40, %v1178_v45  ;;  %vm2379_vm2 = vcmask 1047559  }
 0x2ef   : > { %v1308_v11 = vpop.f32.mrf.mxu0  ;;  %v3095_v21 = vpop.eup %3094  ;;  %1027 = vst.msk [vmem:[#allocation4 + $0x10] sm:$0xff] %vm479_vm0, %v3093_v17  ;;  %v1095_v26 = vrot.slane %v3562_v46, %v3506_v36  ;;  %v1107_v44 = vrot.slane %v3562_v46, %v3497_v32  ;;  %v1119_v45 = vrot.slane %v3562_v46, %v3490_v30 }
 0x2f0   : > { %v3097_v52 = vpop.eup %3096  ;;  %1028 = vst.msk [vmem:[#allocation4 + $0x18] sm:$0xff] %vm479_vm0, %v3095_v21  ;;  %v1041_v11 = vmul.f32 %v3626_v10, %v3522_v0 }
 0x2f1   : > { %v2960_v19 = vpop.f32.mrf.mxu0  ;;  %v3099_v53 = vpop.eup %3098  ;;  %1029 = vst.msk [vmem:[#allocation4 + $0x20] sm:$0xff] %vm479_vm0, %v3097_v52 }
 0x2f2   : > { %1625 = vbcast.lane.b32.xlu1 %v3671_v24, 266  ;;  %1613 = vbcast.lane.b32.xlu0 %v3675_v42, 266  ;;  %v3101_v55 = vpop.eup %3100  ;;  %1030 = vst.msk [vmem:[#allocation4 + $0x28] sm:$0xff] %vm479_vm0, %v3099_v53  ;;  %v1050_v19 = vrot.slane %v1041_v11, %v3624_v4 }
 0x2f3   : > { %v3103_v56 = vpop.eup %3102  ;;  %1031 = vst.msk [vmem:[#allocation4 + $0x30] sm:$0xff] %vm479_vm0, %v3101_v55 }
 0x2f4   : > { %v3105_v57 = vpop.eup %3104  ;;  %1032 = vst.msk [vmem:[#allocation4 + $0x38] sm:$0xff] %vm479_vm0, %v3103_v56  ;;  %v1066_v53 = vrot.slane %v1050_v19, %v3624_v4 }
 0x2f5   : > { %v3107_v58 = vpop.eup %3106  ;;  %1033 = vst.msk [vmem:[#allocation4 + $0x40] sm:$0xff] %vm479_vm0, %v3105_v57 }
 0x2f6   : > { %1637 = vbcast.lane.b32.xlu1 %v1630_v54, 266  ;;  %1633 = vbcast.lane.b32.xlu0 %v1630_v54, 258  ;;  %v3109_v60 = vpop.eup %3108  ;;  %1034 = vst.msk [vmem:[#allocation4 + $0x48] sm:$0xff] %vm479_vm0, %v3107_v58  ;;  %v1191_v57 = vrot.slane %v1066_v53, %v3506_v36 }
 0x2f7   : > { %v3111_v61 = vpop.eup %3110  ;;  %1035 = vst.msk [vmem:[#allocation4 + $0x50] sm:$0xff] %vm479_vm0, %v3109_v60 }
 0x2f8   : > { %v3113_v62 = vpop.eup %3112  ;;  %1036 = vst.msk [vmem:[#allocation4 + $0x58] sm:$0xff] %vm479_vm0, %v3111_v61  ;;  %v1043_v61 = vcombine.high %v1041_v11, %v1041_v11 }
 0x2f9   : > { %v3115_v63 = vpop.eup %3114  ;;  %1037 = vst.msk [vmem:[#allocation4 + $0x60] sm:$0xff] %vm479_vm0, %v3113_v62 }
 0x2fa   : > { %1649 = vbcast.lane.b32.xlu1 %v1642_v59, 266  ;;  %1645 = vbcast.lane.b32.xlu0 %v1642_v59, 258  ;;  %v3117_v3 = vpop.eup %3116  ;;  %1038 = vst.msk [vmem:[#allocation4 + $0x68] sm:$0xff] %vm479_vm0, %v3115_v63  ;;  %v1088_v63 = vcombine.high %v1066_v53, %v1066_v53 }
 0x2fb   : > { %v3119_v6 = vpop.eup %3118  ;;  %1039 = vst.msk [vmem:[#allocation4 + $0x70] sm:$0xff] %vm479_vm0, %v3117_v3 }
 0x2fc   : > { %1040 = vst.msk [vmem:[#allocation4 + $0x78] sm:$0xff] %vm479_vm0, %v3119_v6  ;;  %v1773_v6 = vld [vmem:[#allocation8 + $0x8] sm:$0xff] }
 0x2fe   : > { %1661 = vbcast.lane.b32.xlu1 %v1654_v2, 266  ;;  %1657 = vbcast.lane.b32.xlu0 %v1654_v2, 258 }
 0x302   : > { %1673 = vbcast.lane.b32.xlu1 %v1666_v7, 266  ;;  %1669 = vbcast.lane.b32.xlu0 %v1666_v7, 258 }
 0x306   : > { %1685 = vbcast.lane.b32.xlu1 %v1678_v43, 266  ;;  %1681 = vbcast.lane.b32.xlu0 %v1678_v43, 258 }
 0x30a   : > { %1697 = vbcast.lane.b32.xlu1 %v1690_v8, 266  ;;  %1693 = vbcast.lane.b32.xlu0 %v1690_v8, 258 }
 0x30e   : > { %2190 = vbcast.lane.b32.xlu1 %v3671_v24, 282  ;;  %2186 = vbcast.lane.b32.xlu0 %v3671_v24, 274 }
 0x312   : > { %2198 = vbcast.lane.b32.xlu1 %v1630_v54, 282  ;;  %2194 = vbcast.lane.b32.xlu0 %v1630_v54, 274  ;;  %v1058_v54 = vcombine.high %v1050_v19, %v1050_v19 }
 0x314   : > { %v1080_v0 = vrot.slane %v1058_v54, %v3624_v4 }
 0x316   : > { %2182 = vbcast.lane.b32.xlu1 %v3675_v42, 282  ;;  %2178 = vbcast.lane.b32.xlu0 %v3675_v42, 274  ;;  %v1195_v62 = vrot.slane %v1080_v0, %v3506_v36  ;;  %v1090_v11 = vcombine.high %v1080_v0, %v1080_v0 }
 0x31a   : > { %2206 = vbcast.lane.b32.xlu1 %v1642_v59, 282  ;;  %2202 = vbcast.lane.b32.xlu0 %v1642_v59, 274 }
 0x31e   : > { %2214 = vbcast.lane.b32.xlu1 %v1654_v2, 282  ;;  %2210 = vbcast.lane.b32.xlu0 %v1654_v2, 274 }
 0x322   : > { %2222 = vbcast.lane.b32.xlu1 %v1666_v7, 282  ;;  %2218 = vbcast.lane.b32.xlu0 %v1666_v7, 274 }
 0x326   : > { %2230 = vbcast.lane.b32.xlu1 %v1678_v43, 282  ;;  %2226 = vbcast.lane.b32.xlu0 %v1678_v43, 274 }
 0x32a   : > { %2238 = vbcast.lane.b32.xlu1 %v1690_v8, 282  ;;  %2234 = vbcast.lane.b32.xlu0 %v1690_v8, 274  ;;  %v1775_v8 = vld [vmem:[#allocation4 + $0x8] sm:$0xff] }
 0x32b   : > { %v1777_v53 = vmul.f32 %v1775_v8, %v1773_v6 }
 0x32e   : > { %1102 = vbcast.lane.b32.xlu1 %v1095_v26, 266  ;;  %1098 = vbcast.lane.b32.xlu0 %v1095_v26, 258 }
 0x332   : > { %1114 = vbcast.lane.b32.xlu1 %v1107_v44, 266  ;;  %1110 = vbcast.lane.b32.xlu0 %v1107_v44, 258 }
 0x336   : > { %1126 = vbcast.lane.b32.xlu1 %v1119_v45, 266  ;;  %1122 = vbcast.lane.b32.xlu0 %v1119_v45, 258 }
 0x33a   : > { %1138 = vbcast.lane.b32.xlu1 %v1131_v12, 266  ;;  %1134 = vbcast.lane.b32.xlu0 %v1131_v12, 258 }
 0x33e   : > { %1150 = vbcast.lane.b32.xlu1 %v3572_v47, 266  ;;  %1146 = vbcast.lane.b32.xlu0 %v3572_v47, 258 }
 0x342   : > { %1162 = vbcast.lane.b32.xlu1 %v3577_v48, 266  ;;  %1158 = vbcast.lane.b32.xlu0 %v3577_v48, 258 }
 0x346   : > { %1174 = vbcast.lane.b32.xlu1 %v3582_v49, 266  ;;  %1170 = vbcast.lane.b32.xlu0 %v3582_v49, 258 }
 0x34a   : > { %1186 = vbcast.lane.b32.xlu1 %v3588_v5, 266  ;;  %1182 = vbcast.lane.b32.xlu0 %v3588_v5, 258 }
 0x34e   : > { %1998 = vbcast.lane.b32.xlu1 %v1107_v44, 282  ;;  %1994 = vbcast.lane.b32.xlu0 %v1107_v44, 274  ;;  %v1774_v44 = vld [vmem:[#allocation4] sm:$0xff] }
 0x352   : > { %2006 = vbcast.lane.b32.xlu1 %v1119_v45, 282  ;;  %2002 = vbcast.lane.b32.xlu0 %v1119_v45, 274  ;;  %v1057_v45 = vrot.slane %v1043_v61, %v3624_v4 }
 0x354   : > { %v1059_v0 = vcombine.high %v1057_v45, %v1057_v45 }
 0x356   : > { %1990 = vbcast.lane.b32.xlu1 %v1095_v26, 282  ;;  %1986 = vbcast.lane.b32.xlu0 %v1095_v26, 274  ;;  %v1772_v26 = vld [vmem:[#allocation8] sm:$0xff] }
 0x35a   : > { %2014 = vbcast.lane.b32.xlu1 %v1131_v12, 282  ;;  %2010 = vbcast.lane.b32.xlu0 %v1131_v12, 274  ;;  %v1199_v12 = vrot.slane %v1088_v63, %v3506_v36  ;;  %v1203_v63 = vrot.slane %v1090_v11, %v3506_v36 }
 0x35e   : > { %2022 = vbcast.lane.b32.xlu1 %v3572_v47, 282  ;;  %2018 = vbcast.lane.b32.xlu0 %v3572_v47, 274 }
 0x360   : > { %v3737_v27 = vpop.permute.xlu1 %1621  ;;  %v3739_v30 = vpop.permute.xlu0 %1609 }
 0x362   : > { %2030 = vbcast.lane.b32.xlu1 %v3577_v48, 282  ;;  %2026 = vbcast.lane.b32.xlu0 %v3577_v48, 274 }
 0x364   : > { %v3743_v32 = vpop.permute.xlu1 %1625  ;;  %v3745_v46 = vpop.permute.xlu0 %1613 }
 0x366   : > { %2038 = vbcast.lane.b32.xlu1 %v3582_v49, 282  ;;  %2034 = vbcast.lane.b32.xlu0 %v3582_v49, 274 }
 0x368   : > { %v3749_v14 = vpop.permute.xlu1 %1637  ;;  %v3751_v16 = vpop.permute.xlu0 %1633 }
 0x36a   : > { %2046 = vbcast.lane.b32.xlu1 %v3588_v5, 282  ;;  %2042 = vbcast.lane.b32.xlu0 %v3588_v5, 274 }
 0x36c   : > { %v3755_v47 = vpop.permute.xlu1 %1649  ;;  %v3757_v18 = vpop.permute.xlu0 %1645 }
 0x370   : > { %v3759_v48 = vpop.permute.xlu1 %1661  ;;  %v3761_v20 = vpop.permute.xlu0 %1657 }
 0x374   : > { %v3763_v29 = vpop.permute.xlu1 %1673  ;;  %v3765_v31 = vpop.permute.xlu0 %1669 }
 0x378   : > { %v3767_v49 = vpop.permute.xlu1 %1685  ;;  %v3769_v34 = vpop.permute.xlu0 %1681 }
 0x37c   : > { %v3771_v35 = vpop.permute.xlu1 %1697  ;;  %v3773_v37 = vpop.permute.xlu0 %1693 }
 0x380   : > { %v3775_v5 = vpop.permute.xlu1 %2190  ;;  %v3777_v39 = vpop.permute.xlu0 %2186 }
 0x384   : > { %v3779_v22 = vpop.permute.xlu1 %2198  ;;  %v3781_v40 = vpop.permute.xlu0 %2194 }
 0x385   : > { %4260 = vst [vmem:[#allocation15_spill] sm:$0xff] %v3779_v22  ;;  %4261 = vst [vmem:[#allocation16_spill] sm:$0xff] %v3781_v40 }
 0x388   : > { %v3783_v41 = vpop.permute.xlu1 %2182  ;;  %v3785_v24 = vpop.permute.xlu0 %2178 }
 0x38c   : > { %v3787_v42 = vpop.permute.xlu1 %2206  ;;  %v3789_v28 = vpop.permute.xlu0 %2202 }
 0x38d   : > { %4262 = vst [vmem:[#allocation17_spill] sm:$0xff] %v3787_v42  ;;  %4263 = vst [vmem:[#allocation18_spill] sm:$0xff] %v3789_v28 }
 0x390   : > { %v3791_v50 = vpop.permute.xlu1 %2214  ;;  %v3793_v51 = vpop.permute.xlu0 %2210 }
 0x391   : > { %4264 = vst [vmem:[#allocation19_spill] sm:$0xff] %v3791_v50  ;;  %4265 = vst [vmem:[#allocation20_spill] sm:$0xff] %v3793_v51 }
 0x394   : > { %v3797_v15 = vpop.permute.xlu1 %2222  ;;  %v3799_v17 = vpop.permute.xlu0 %2218 }
 0x395   : > { %4266 = vst [vmem:[#allocation21_spill] sm:$0xff] %v3797_v15  ;;  %4267 = vst [vmem:[#allocation22_spill] sm:$0xff] %v3799_v17 }
 0x398   : > { %v3802_v21 = vpop.permute.xlu1 %2230  ;;  %v3804_v52 = vpop.permute.xlu0 %2226 }
 0x399   : > { %4268 = vst [vmem:[#allocation23_spill] sm:$0xff] %v3802_v21  ;;  %4269 = vst [vmem:[#allocation24_spill] sm:$0xff] %v3804_v52 }
 0x39c   : > { %v3807_v55 = vpop.permute.xlu1 %2238  ;;  %v3809_v56 = vpop.permute.xlu0 %2234 }
 0x39d   : > { %4270 = vst [vmem:[#allocation25_spill] sm:$0xff] %v3807_v55  ;;  %4271 = vst [vmem:[#allocation26_spill] sm:$0xff] %v3809_v56 }
 0x3a0   : > { %v1103_v10 = vpop.permute.xlu1 %1102  ;;  %v1099_v58 = vpop.permute.xlu0 %1098 }
 0x3a1   : > { %v1229_v59 = vmul.f32 %v1191_v57, %v1103_v10  ;;  %v1228_v60 = vmul.f32 %v1191_v57, %v1099_v58  ;;  %v1776_v57 = vmul.f32 %v1774_v44, %v1772_v26 }
 0x3a3   : > { %1245 = vst.msk [vmem:[#allocation6 + $0x8] sm:$0xff] %vm479_vm0, %v1229_v59  ;;  %1244 = vst.msk [vmem:[#allocation6] sm:$0xff] %vm479_vm0, %v1228_v60 }
 0x3a4   : > { %v1115_v2 = vpop.permute.xlu1 %1114  ;;  %v1111_v3 = vpop.permute.xlu0 %1110 }
 0x3a5   : > { %v1231_v7 = vmul.f32 %v1195_v62, %v1115_v2  ;;  %v1230_v43 = vmul.f32 %v1195_v62, %v1111_v3  ;;  %v3821_v62 = vrot.slane %v1057_v45, %v3624_v4  ;;  %v1786_v3 = vld [vmem:[#allocation4 + $0x18] sm:$0xff] }
 0x3a7   : > { %1247 = vst.msk [vmem:[#allocation6 + $0x18] sm:$0xff] %vm479_vm0, %v1231_v7  ;;  %1246 = vst.msk [vmem:[#allocation6 + $0x10] sm:$0xff] %vm479_vm0, %v1230_v43  ;;  %v1785_v7 = vld [vmem:[#allocation4 + $0x10] sm:$0xff] }
 0x3a8   : > { %v1127_v19 = vpop.permute.xlu1 %1126  ;;  %v1123_v54 = vpop.permute.xlu0 %1122 }
 0x3a9   : > { %v1233_v10 = vmul.f32 %v1199_v12, %v1127_v19  ;;  %v1232_v58 = vmul.f32 %v1199_v12, %v1123_v54 }
 0x3aa   : > { %v1779_v59 = vld [vmem:[#allocation6 + $0x8] sm:$0xff]  ;;  %v1778_v60 = vld [vmem:[#allocation6] sm:$0xff] }
 0x3ab   : > { %v1781_v2 = vadd.f32 %v1779_v59, %v1777_v53  ;;  %v1780_v61 = vadd.f32 %v1778_v60, %v1776_v57  ;;  %1249 = vst.msk [vmem:[#allocation6 + $0x28] sm:$0xff] %vm479_vm0, %v1233_v10  ;;  %1248 = vst.msk [vmem:[#allocation6 + $0x20] sm:$0xff] %vm479_vm0, %v1232_v58  ;;  %v1207_v58 = vrot.slane %v3821_v62, %v3506_v36  ;;  %v1798_v60 = vld [vmem:[#allocation4 + $0x28] sm:$0xff] }
 0x3ac   : > { %v1139_v6 = vpop.permute.xlu1 %1138  ;;  %v1135_v43 = vpop.permute.xlu0 %1134  ;;  %v1087_v59 = vrot.slane %v1059_v0, %v3624_v4 }
 0x3ad   : > { %1783 = vst.msk [vmem:[#allocation6 + $0x8] sm:$0xff] %vm479_vm0, %v1781_v2  ;;  %1782 = vst.msk [vmem:[#allocation6] sm:$0xff] %vm479_vm0, %v1780_v61  ;;  %v1788_v8 = vmul.f32 %v1786_v3, %v1781_v2  ;;  %v1787_v26 = vmul.f32 %v1785_v7, %v1780_v61  ;;  %v1235_v44 = vmul.f32 %v1203_v63, %v1139_v6  ;;  %v1380_v19 = vpop.f32.mrf.mxu1  ;;  %v1797_v2 = vld [vmem:[#allocation4 + $0x20] sm:$0xff] }
 0x3ae   : > { %v1234_v12 = vmul.f32 %v1203_v63, %v1135_v43  ;;  %v1791_v54 = vld [vmem:[#allocation6 + $0x18] sm:$0xff]  ;;  %v1790_v53 = vld [vmem:[#allocation6 + $0x10] sm:$0xff]  ;;  %v3829_v57 = vadd.f32 %v3614_v13, %v1380_v19  ;;  %v1211_v0 = vrot.slane %v1087_v59, %v3506_v36 }
 0x3af   : > { %v1793_v11 = vadd.f32 %v1791_v54, %v1788_v8  ;;  %v1792_v45 = vadd.f32 %v1790_v53, %v1787_v26  ;;  %1251 = vst.msk [vmem:[#allocation6 + $0x38] sm:$0xff] %vm479_vm0, %v1235_v44  ;;  %v2971_v10 = vpop.f32.mrf.mxu1  ;;  %v1089_v54 = vcombine.high %v3821_v62, %v3821_v62  ;;  %v1810_v53 = vld [vmem:[#allocation4 + $0x38] sm:$0xff] }
 0x3b0   : > { %1250 = vst.msk [vmem:[#allocation6 + $0x30] sm:$0xff] %vm479_vm0, %v1234_v12  ;;  %v1385_v61 = vmin.f32 %v3829_v57, 20.0  ;;  %v1151_v63 = vpop.permute.xlu1 %1150  ;;  %v1147_v3 = vpop.permute.xlu0 %1146  ;;  %v1809_v10 = vld [vmem:[#allocation4 + $0x30] sm:$0xff]  ;;  %vm1384_vm9 = vcmp.gt.f32.partialorder %v3829_v57, 20.0 }
 0x3b1   : > { %1795 = vst.msk [vmem:[#allocation6 + $0x18] sm:$0xff] %vm479_vm0, %v1793_v11  ;;  %1794 = vst.msk [vmem:[#allocation6 + $0x10] sm:$0xff] %vm479_vm0, %v1792_v45  ;;  %v1800_v13 = vmul.f32 %v1798_v60, %v1793_v11  ;;  %v1799_v7 = vmul.f32 %v1797_v2, %v1792_v45  ;;  %v1237_v6 = vmul.f32 %v1207_v58, %v1151_v63 }
 0x3b2   : > { %v1236_v43 = vmul.f32 %v1207_v58, %v1147_v3  ;;  %v1803_v8 = vld [vmem:[#allocation6 + $0x28] sm:$0xff]  ;;  %v1802_v26 = vld [vmem:[#allocation6 + $0x20] sm:$0xff]  ;;  %v1386_v44 = vmul.f32 1.442695, %v1385_v61  ;;  %v1215_v62 = vrot.slane %v1089_v54, %v3506_v36  ;;  %v1834_v54 = vld [vmem:[#allocation4 + $0x58] sm:$0xff] }
 0x3b3   : > { %v1805_v12 = vadd.f32 %v1803_v8, %v1800_v13  ;;  %v1804_v19 = vadd.f32 %v1802_v26, %v1799_v7  ;;  %1253 = vst.msk [vmem:[#allocation6 + $0x48] sm:$0xff] %vm479_vm0, %v1237_v6  ;;  %v1091_v6 = vcombine.high %v1087_v59, %v1087_v59  ;;  %v1821_v8 = vld [vmem:[#allocation4 + $0x40] sm:$0xff] }
 0x3b4   : > { %1252 = vst.msk [vmem:[#allocation6 + $0x40] sm:$0xff] %vm479_vm0, %v1236_v43  ;;  %3120 = vpow2.f32 %v1386_v44  ;;  %v1163_v11 = vpop.permute.xlu1 %1162  ;;  %v1159_v45 = vpop.permute.xlu0 %1158  ;;  %v1822_v43 = vld [vmem:[#allocation4 + $0x48] sm:$0xff] }
 0x3b5   : > { %1807 = vst.msk [vmem:[#allocation6 + $0x28] sm:$0xff] %vm479_vm0, %v1805_v12  ;;  %1806 = vst.msk [vmem:[#allocation6 + $0x20] sm:$0xff] %vm479_vm0, %v1804_v19  ;;  %v1812_v58 = vmul.f32 %v1810_v53, %v1805_v12  ;;  %v1811_v60 = vmul.f32 %v1809_v10, %v1804_v19  ;;  %v1239_v2 = vmul.f32 %v1211_v0, %v1163_v11 }
 0x3b6   : > { %v1238_v61 = vmul.f32 %v1211_v0, %v1159_v45  ;;  %v1815_v63 = vld [vmem:[#allocation6 + $0x38] sm:$0xff]  ;;  %v1219_v59 = vrot.slane %v1091_v6, %v3506_v36  ;;  %v1846_v6 = vld [vmem:[#allocation4 + $0x68] sm:$0xff] }
 0x3b7   : > { %v1814_v3 = vld [vmem:[#allocation6 + $0x30] sm:$0xff]  ;;  %v1817_v13 = vadd.f32 %v1815_v63, %v1812_v58  ;;  %1255 = vst.msk [vmem:[#allocation6 + $0x58] sm:$0xff] %vm479_vm0, %v1239_v2 }
 0x3b8   : > { %v1816_v7 = vadd.f32 %v1814_v3, %v1811_v60  ;;  %1254 = vst.msk [vmem:[#allocation6 + $0x50] sm:$0xff] %vm479_vm0, %v1238_v61  ;;  %v1175_v26 = vpop.permute.xlu1 %1174  ;;  %v1171_v44 = vpop.permute.xlu0 %1170  ;;  %v1833_v60 = vld [vmem:[#allocation4 + $0x50] sm:$0xff] }
 0x3b9   : > { %1819 = vst.msk [vmem:[#allocation6 + $0x38] sm:$0xff] %vm479_vm0, %v1817_v13  ;;  %v1824_v12 = vmul.f32 %v1822_v43, %v1817_v13  ;;  %v1241_v0 = vmul.f32 %v1215_v62, %v1175_v26  ;;  %v1240_v53 = vmul.f32 %v1215_v62, %v1171_v44  ;;  %v1845_v44 = vld [vmem:[#allocation4 + $0x60] sm:$0xff] }
 0x3ba   : > { %1818 = vst.msk [vmem:[#allocation6 + $0x30] sm:$0xff] %vm479_vm0, %v1816_v7  ;;  %v1823_v19 = vmul.f32 %v1821_v8, %v1816_v7  ;;  %v1827_v10 = vld [vmem:[#allocation6 + $0x48] sm:$0xff] }
 0x3bb   : > { %v1826_v11 = vld [vmem:[#allocation6 + $0x40] sm:$0xff]  ;;  %v1829_v45 = vadd.f32 %v1827_v10, %v1824_v12  ;;  %1257 = vst.msk [vmem:[#allocation6 + $0x68] sm:$0xff] %vm479_vm0, %v1241_v0  ;;  %1256 = vst.msk [vmem:[#allocation6 + $0x60] sm:$0xff] %vm479_vm0, %v1240_v53  ;;  %v1971_v12 = vld [vmem:[#allocation6 + $0x18] sm:$0xff] }
 0x3bc   : > { %v1828_v58 = vadd.f32 %v1826_v11, %v1823_v19  ;;  %v1187_v2 = vpop.permute.xlu1 %1186  ;;  %v1183_v61 = vpop.permute.xlu0 %1182  ;;  %v1970_v0 = vld [vmem:[#allocation6 + $0x10] sm:$0xff]  ;;  %v1973_v1 = vld [vmem:[#allocation6 + $0x28] sm:$0xff] }
 0x3bd   : > { %1831 = vst.msk [vmem:[#allocation6 + $0x48] sm:$0xff] %vm479_vm0, %v1829_v45  ;;  %v1836_v63 = vmul.f32 %v1834_v54, %v1829_v45  ;;  %v1243_v13 = vmul.f32 %v1219_v59, %v1187_v2  ;;  %v1242_v7 = vmul.f32 %v1219_v59, %v1183_v61 }
 0x3be   : > { %1830 = vst.msk [vmem:[#allocation6 + $0x40] sm:$0xff] %vm479_vm0, %v1828_v58  ;;  %v1835_v3 = vmul.f32 %v1833_v60, %v1828_v58  ;;  %v1839_v62 = vld [vmem:[#allocation6 + $0x58] sm:$0xff] }
 0x3bf   : > { %v1838_v43 = vld [vmem:[#allocation6 + $0x50] sm:$0xff]  ;;  %v1841_v8 = vadd.f32 %v1839_v62, %v1836_v63  ;;  %1259 = vst.msk [vmem:[#allocation6 + $0x78] sm:$0xff] %vm479_vm0, %v1243_v13  ;;  %1258 = vst.msk [vmem:[#allocation6 + $0x70] sm:$0xff] %vm479_vm0, %v1242_v7  ;;  %v1858_v62 = vld [vmem:[#allocation4 + $0x78] sm:$0xff] }
 0x3c0   : > { %v1840_v26 = vadd.f32 %v1838_v43, %v1835_v3  ;;  %v1999_v19 = vpop.permute.xlu1 %1998  ;;  %v1995_v53 = vpop.permute.xlu0 %1994  ;;  %v1857_v3 = vld [vmem:[#allocation4 + $0x70] sm:$0xff] }
 0x3c1   : > { %v3858_v10 = vpop.eup %3120  ;;  %1843 = vst.msk [vmem:[#allocation6 + $0x58] sm:$0xff] %vm479_vm0, %v1841_v8  ;;  %v1848_v11 = vmul.f32 %v1846_v6, %v1841_v8  ;;  %v2051_v58 = vmul.f32 %v1999_v19, %v1971_v12  ;;  %v2050_v59 = vmul.f32 %v1995_v53, %v1970_v0  ;;  %v1972_v8 = vld [vmem:[#allocation6 + $0x20] sm:$0xff] }
 0x3c2   : > { %1842 = vst.msk [vmem:[#allocation6 + $0x50] sm:$0xff] %vm479_vm0, %v1840_v26  ;;  %v1847_v45 = vmul.f32 %v1845_v44, %v1840_v26  ;;  %v1388_v54 = vadd.f32 1.0, %v3858_v10  ;;  %v1851_v60 = vld [vmem:[#allocation6 + $0x68] sm:$0xff]  ;;  %v1850_v2 = vld [vmem:[#allocation6 + $0x60] sm:$0xff] }
 0x3c3   : > { %v1853_v61 = vadd.f32 %v1851_v60, %v1848_v11  ;;  %v2074_v13 = vsel %vm479_vm0, %v2051_v58, 0.0  ;;  %v2073_v7 = vsel %vm479_vm0, %v2050_v59, 0.0 }
 0x3c4   : > { %v1852_v63 = vadd.f32 %v1850_v2, %v1847_v45  ;;  %3122 = vlog2.f32 %v1388_v54  ;;  %v2075_v43 = vadd.f32 %v2074_v13, %v2073_v7  ;;  %v2007_v23 = vpop.permute.xlu1 %2006  ;;  %v2003_v26 = vpop.permute.xlu0 %2002  ;;  %v1969_v2 = vld [vmem:[#allocation6 + $0x8] sm:$0xff]  ;;  %v1968_v7 = vld [vmem:[#allocation6] sm:$0xff] }
 0x3c5   : > { %1855 = vst.msk [vmem:[#allocation6 + $0x68] sm:$0xff] %vm479_vm0, %v1853_v61  ;;  %v1860_v44 = vmul.f32 %v1858_v62, %v1853_v61  ;;  %v2053_v12 = vmul.f32 %v2007_v23, %v1973_v1  ;;  %v2052_v19 = vmul.f32 %v2003_v26, %v1972_v8  ;;  %v3872_v61 = vld [vmem:[%s4241_s11] ss:$0 sm:$0xff] }
 0x3c6   : > { %1854 = vst.msk [vmem:[#allocation6 + $0x60] sm:$0xff] %vm479_vm0, %v1852_v63  ;;  %v1859_v6 = vmul.f32 %v1857_v3, %v1852_v63  ;;  %v1863_v0 = vld [vmem:[#allocation6 + $0x78] sm:$0xff]  ;;  %v1862_v53 = vld [vmem:[#allocation6 + $0x70] sm:$0xff]  ;;  %v2076_v11 = vrot.slane %v2075_v43, 4  ;;  %4272 = vst [vmem:[#allocation27_spill] sm:$0xff] %v3872_v61  ;;  %v1391_v63 = vmul.f32 -0.5, %v3858_v10 }
 0x3c7   : > { %v1865_v45 = vadd.f32 %v1863_v0, %v1860_v44  ;;  %v2083_v59 = vsel %vm479_vm0, %v2053_v12, 0.0  ;;  %v2082_v54 = vsel %vm479_vm0, %v2052_v19, 0.0  ;;  %v3160_v26 = vld [vmem:[#allocation2] sm:$0xff]  ;;  %v1975_v12 = vld [vmem:[#allocation6 + $0x38] sm:$0xff] }
 0x3c8   : > { %v1864_v58 = vadd.f32 %v1862_v53, %v1859_v6  ;;  %v2077_v60 = vadd.f32 %v2076_v11, %v2075_v43  ;;  %v1991_v13 = vpop.permute.xlu1 %1990  ;;  %v1987_v25 = vpop.permute.xlu0 %1986  ;;  %v2084_v3 = vadd.f32 %v2083_v59, %v2082_v54  ;;  %v3882_v44 = vmul.f32 %v3160_v26, %v3872_v61  ;;  %v1974_v0 = vld [vmem:[#allocation6 + $0x30] sm:$0xff]  ;;  %v1976_v26 = vld [vmem:[#allocation6 + $0x40] sm:$0xff] }
 0x3c9   : > { %1867 = vst.msk [vmem:[#allocation6 + $0x78] sm:$0xff] %vm479_vm0, %v1865_v45  ;;  %1869 = vst.msk [vmem:[#allocation8 + $0x8] sm:$0xff] %vm479_vm0, %v1865_v45  ;;  %v2049_v1 = vmul.f32 %v1991_v13, %v1969_v2  ;;  %v2048_v23 = vmul.f32 %v1987_v25, %v1968_v7  ;;  %v1392_v25 = vadd.f32 1.0, %v1391_v63 }
 0x3ca   : > { %1866 = vst.msk [vmem:[#allocation6 + $0x70] sm:$0xff] %vm479_vm0, %v1864_v58  ;;  %1868 = vst.msk [vmem:[#allocation8] sm:$0xff] %vm479_vm0, %v1864_v58  ;;  %v2078_v62 = vrot.slane %v2077_v60, 2  ;;  %v1394_v58 = vand.u32 2147483647, %v3858_v10  ;;  %v2085_v59 = vrot.slane %v2084_v3, 4 }
 0x3cb   : > { %v2065_v43 = vsel %vm479_vm0, %v2049_v1, 0.0  ;;  %v2064_v8 = vsel %vm479_vm0, %v2048_v23, 0.0 }
 0x3cc   : > { %v2066_v6 = vadd.f32 %v2065_v43, %v2064_v8  ;;  %v2015_v19 = vpop.permute.xlu1 %2014  ;;  %v2011_v53 = vpop.permute.xlu0 %2010  ;;  %v2079_v2 = vadd.f32 %v2078_v62, %v2077_v60  ;;  %v1977_v43 = vld [vmem:[#allocation6 + $0x48] sm:$0xff]  ;;  %v1393_v60 = vmul.f32 %v3858_v10, %v1392_v25  ;;  %vm1395_vm8 = vcmp.lt.f32.partialorder %v1394_v58, 0.0004427343 }
 0x3cd   : > { %v2055_v11 = vmul.f32 %v2015_v19, %v1975_v12  ;;  %v2054_v45 = vmul.f32 %v2011_v53, %v1974_v0  ;;  %v3890_v62 = vadd.f32 %v2085_v59, %v2084_v3 }
 0x3ce   : > { %v2067_v54 = vrot.slane %v2066_v6, 4 }
 0x3cf   : > { %v2092_v13 = vsel %vm479_vm0, %v2055_v11, 0.0  ;;  %v2091_v7 = vsel %vm479_vm0, %v2054_v45, 0.0  ;;  %v2080_v11 = vrot.slane %v2079_v2, 1 }
 0x3d0   : > { %v2093_v23 = vadd.f32 %v2092_v13, %v2091_v7  ;;  %v2023_v8 = vpop.permute.xlu1 %2022  ;;  %v2019_v55 = vpop.permute.xlu0 %2018  ;;  %v2068_v63 = vadd.f32 %v2067_v54, %v2066_v6 }
 0x3d1   : > { %v3123_v61 = vpop.eup %3122  ;;  %v2057_v19 = vmul.f32 %v2023_v8, %v1977_v43  ;;  %v2056_v0 = vmul.f32 %v2019_v55, %v1976_v26  ;;  %v3903_v8 = vadd.f32 %v2080_v11, %v2079_v2 }
 0x3d2   : > { %v1390_v53 = vmul.f32 0.6931472, %v3123_v61  ;;  %v2094_v45 = vrot.slane %v2093_v23, 4  ;;  %v2069_v61 = vrot.slane %v2068_v63, 2 }
 0x3d3   : > { %v2101_v13 = vsel %vm479_vm0, %v2057_v19, 0.0  ;;  %v2100_v7 = vsel %vm479_vm0, %v2056_v0, 0.0 }
 0x3d4   : > { %v1396_v1 = vsel %vm1395_vm8, %v1393_v60, %v1390_v53  ;;  %v2095_v10 = vadd.f32 %v2094_v45, %v2093_v23  ;;  %v3898_v25 = vadd.f32 %v2101_v13, %v2100_v7  ;;  %v2031_v54 = vpop.permute.xlu1 %2030  ;;  %v1979_v60 = vld [vmem:[#allocation6 + $0x58] sm:$0xff]  ;;  %v3951_v22 = vpop.permute.xlu0 %2026 }
 0x3d5   : > { %v1397_v55 = vsel %vm1384_vm9, %v3829_v57, %v1396_v1  ;;  %v3915_v11 = vmul.f32 %v2031_v54, %v1979_v60 }
 0x3d6   : > { %v1399_v3 = vcombine.high %v1397_v55, %v1397_v55  ;;  %v1406_v58 = vrot.slane %v1397_v55, %v3624_v4  ;;  %v1552_v59 = vmul.f32 %v1397_v55, %v3604_v9  ;;  %v2096_v19 = vrot.slane %v2095_v10, 2 }
 0x3d7   : > { %v3912_v9 = vadd.f32 %v2069_v61, %v2068_v63 }
 0x3d8   : > { %v1413_v57 = vrot.slane %v1399_v3, %v3624_v4  ;;  %v1414_v1 = vcombine.high %v1406_v58, %v1406_v58  ;;  %v1422_v23 = vrot.slane %v1406_v58, %v3624_v4  ;;  %v1554_v53 = vcombine.high %v1552_v59, %v1552_v59 }
 0x3d9   : > { %v3910_v45 = vrot.slane %v1552_v59, %v3624_v4  ;;  %v3923_v43 = vadd.f32 %v2096_v19, %v2095_v10 }
 0x3da   : > { %v1415_v13 = vcombine.high %v1413_v57, %v1413_v57  ;;  %v1429_v7 = vrot.slane %v1413_v57, %v3624_v4  ;;  %v1436_v55 = vrot.slane %v1414_v1, %v3624_v4  ;;  %v1444_v3 = vcombine.high %v1422_v23, %v1422_v23 }
 0x3db   : > { %v1451_v0 = vrot.slane %v1422_v23, %v3506_v36  ;;  %v1568_v58 = vrot.slane %v1554_v53, %v3624_v4  ;;  %v1569_v59 = vcombine.high %v3910_v45, %v3910_v45  ;;  %v1577_v23 = vrot.slane %v3910_v45, %v3624_v4 }
 0x3dc   : > { %v1443_v63 = vrot.slane %v1415_v13, %v3624_v4  ;;  %v1445_v61 = vcombine.high %v1429_v7, %v1429_v7  ;;  %v1446_v54 = vcombine.high %v1436_v55, %v1436_v55  ;;  %v1455_v60 = vrot.slane %v1436_v55, %v3506_v36 }
 0x3dd   : > { %v1459_v57 = vrot.slane %v1444_v3, %v3506_v36  ;;  %v1467_v1 = vrot.slane %v1429_v7, %v3506_v36  ;;  %v1488_v6 = vmul.f32 %v1451_v0, %v3634_v33  ;;  %v1489_v13 = vmul.f32 %v1451_v0, %v3637_v38 }
 0x3de   : > { %v1447_v53 = vcombine.high %v1443_v63, %v1443_v63  ;;  %v1463_v12 = vrot.slane %v1446_v54, %v3506_v36  ;;  %v1471_v10 = vrot.slane %v1443_v63, %v3506_v36  ;;  %v1475_v19 = vrot.slane %v1445_v61, %v3506_v36 }
 0x3df   : > { %v1490_v55 = vmul.f32 %v1455_v60, %v3634_v33  ;;  %v1491_v3 = vmul.f32 %v1455_v60, %v3637_v38  ;;  %v1492_v7 = vmul.f32 %v1459_v57, %v3634_v33  ;;  %v1493_v26 = vmul.f32 %v1459_v57, %v3637_v38 }
 0x3e0   : > { %v1479_v2 = vrot.slane %v1447_v53, %v3506_v36  ;;  %v1494_v45 = vmul.f32 %v1463_v12, %v3634_v33  ;;  %v1495_v54 = vmul.f32 %v1463_v12, %v3637_v38  ;;  %v1496_v63 = vmul.f32 %v1467_v1, %v3634_v33 }
 0x3e1   : > { %v1497_v61 = vmul.f32 %v1467_v1, %v3637_v38  ;;  %v1498_v0 = vmul.f32 %v1471_v10, %v3634_v33  ;;  %v1499_v56 = vmul.f32 %v1471_v10, %v3637_v38  ;;  %v1500_v60 = vmul.f32 %v1475_v19, %v3634_v33 }
 0x3e2   : > { %v1501_v21 = vmul.f32 %v1475_v19, %v3637_v38  ;;  %v1502_v53 = vmul.f32 %v1479_v2, %v3634_v33  ;;  %v1504_v52 = vmul.f32 1.442695, %v1488_v6  ;;  %v1503_v57 = vmul.f32 %v1479_v2, %v3637_v38 }
 0x3e3   : > { %v1506_v15 = vmul.f32 1.442695, %v1489_v13  ;;  %v1508_v17 = vmul.f32 1.442695, %v1490_v55  ;;  %v1510_v12 = vmul.f32 1.442695, %v1491_v3  ;;  %v1570_v1 = vcombine.high %v1568_v58, %v1568_v58 }
 0x3e4   : > { %3124 = vpow2.f32 %v1504_v52  ;;  %v1512_v50 = vmul.f32 1.442695, %v1492_v7  ;;  %v1514_v51 = vmul.f32 1.442695, %v1493_v26  ;;  %v1516_v42 = vmul.f32 1.442695, %v1494_v45  ;;  %v3960_v45 = vpop.permute.xlu1 %2038 }
 0x3e5   : > { %3126 = vpow2.f32 %v1506_v15  ;;  %v1518_v28 = vmul.f32 1.442695, %v1495_v54  ;;  %v1520_v10 = vmul.f32 1.442695, %v1496_v63  ;;  %v1522_v19 = vmul.f32 1.442695, %v1497_v61 }
 0x3e6   : > { %3128 = vpow2.f32 %v1508_v17  ;;  %v1524_v40 = vmul.f32 1.442695, %v1498_v0  ;;  %v1526_v33 = vmul.f32 1.442695, %v1499_v56  ;;  %v1528_v6 = vmul.f32 1.442695, %v1500_v60 }
 0x3e7   : > { %3130 = vpow2.f32 %v1510_v12  ;;  %v1530_v38 = vmul.f32 1.442695, %v1501_v21  ;;  %v1532_v2 = vmul.f32 1.442695, %v1502_v53  ;;  %v1584_v52 = vrot.slane %v1568_v58, %v3624_v4 }
 0x3e8   : > { %3132 = vpow2.f32 %v1512_v50  ;;  %v1591_v26 = vrot.slane %v1569_v59, %v3624_v4  ;;  %v1598_v15 = vrot.slane %v1570_v1, %v3624_v4  ;;  %v1534_v13 = vmul.f32 1.442695, %v1503_v57  ;;  %v3962_v59 = vpop.permute.xlu0 %2034 }
 0x3e9   : > { %3134 = vpow2.f32 %v1514_v51  ;;  %v1599_v55 = vcombine.high %v1577_v23, %v1577_v23  ;;  %v1702_v3 = vrot.slane %v1577_v23, %v3506_v36  ;;  %v1600_v17 = vcombine.high %v1584_v52, %v1584_v52 }
 0x3ea   : > { %3136 = vpow2.f32 %v1516_v42  ;;  %v1601_v7 = vcombine.high %v1591_v26, %v1591_v26  ;;  %v1602_v56 = vcombine.high %v1598_v15, %v1598_v15  ;;  %v1706_v21 = vrot.slane %v1591_v26, %v3506_v36 }
 0x3eb   : > { %3138 = vpow2.f32 %v1518_v28  ;;  %v1710_v50 = vrot.slane %v1599_v55, %v3506_v36  ;;  %v1718_v58 = vrot.slane %v1584_v52, %v3506_v36  ;;  %v1722_v51 = vrot.slane %v1598_v15, %v3506_v36 }
 0x3ec   : > { %3140 = vpow2.f32 %v1520_v10  ;;  %v1714_v4 = vrot.slane %v1601_v7, %v3506_v36  ;;  %v1726_v42 = vrot.slane %v1600_v17, %v3506_v36  ;;  %v1730_v28 = vrot.slane %v1602_v56, %v3506_v36  ;;  %v1980_v10 = vld [vmem:[#allocation6 + $0x60] sm:$0xff] }
 0x3ed   : > { %3142 = vpow2.f32 %v1522_v19  ;;  %v1739_v23 = vmul.f32 %v1702_v3, %v3739_v30  ;;  %v1740_v54 = vmul.f32 %v1702_v3, %v3745_v46  ;;  %v1741_v63 = vmul.f32 %v1706_v21, %v3737_v27  ;;  %v1983_v19 = vld [vmem:[#allocation6 + $0x78] sm:$0xff] }
 0x3ee   : > { %3144 = vpow2.f32 %v1524_v40  ;;  %v1742_v61 = vmul.f32 %v1706_v21, %v3743_v32  ;;  %v1743_v0 = vmul.f32 %v1710_v50, %v3751_v16  ;;  %v1744_v60 = vmul.f32 %v1710_v50, %v3749_v14  ;;  %v1981_v40 = vld [vmem:[#allocation6 + $0x68] sm:$0xff]  ;;  %v1870_v50 = vld [vmem:[#allocation9] sm:$0xff] }
 0x3ef   : > { %3146 = vpow2.f32 %v1526_v33  ;;  %v1745_v53 = vmul.f32 %v1714_v4, %v3757_v18  ;;  %v1746_v57 = vmul.f32 %v1714_v4, %v3755_v47  ;;  %1755 = vst.msk [vmem:[#allocation7] sm:$0xff] %vm479_vm0, %v1739_v23  ;;  %1756 = vst.msk [vmem:[#allocation7 + $0x8] sm:$0xff] %vm479_vm0, %v1740_v54  ;;  %v1747_v36 = vmul.f32 %v1718_v58, %v3761_v20  ;;  %v2047_v47 = vpop.permute.xlu1 %2046  ;;  %v2043_v18 = vpop.permute.xlu0 %2042  ;;  %v1982_v33 = vld [vmem:[#allocation6 + $0x70] sm:$0xff] }
 0x3f0   : > { %3148 = vpow2.f32 %v1528_v6  ;;  %v1748_v27 = vmul.f32 %v1718_v58, %v3759_v48  ;;  %v1749_v30 = vmul.f32 %v1722_v51, %v3765_v31  ;;  %1757 = vst.msk [vmem:[#allocation7 + $0x10] sm:$0xff] %vm479_vm0, %v1741_v63  ;;  %1758 = vst.msk [vmem:[#allocation7 + $0x18] sm:$0xff] %vm479_vm0, %v1742_v61  ;;  %v1750_v46 = vmul.f32 %v1722_v51, %v3763_v29 }
 0x3f1   : > { %1759 = vst.msk [vmem:[#allocation7 + $0x20] sm:$0xff] %vm479_vm0, %v1743_v0  ;;  %v3125_v32 = vpop.eup %3124  ;;  %3150 = vpow2.f32 %v1530_v38  ;;  %v1751_v14 = vmul.f32 %v1726_v42, %v3769_v34  ;;  %v1752_v16 = vmul.f32 %v1726_v42, %v3767_v49  ;;  %1760 = vst.msk [vmem:[#allocation7 + $0x28] sm:$0xff] %vm479_vm0, %v1744_v60  ;;  %v1753_v20 = vmul.f32 %v1730_v28, %v3773_v37  ;;  %v1978_v34 = vld [vmem:[#allocation6 + $0x50] sm:$0xff]  ;;  %v1871_v42 = vld [vmem:[#allocation9 + $0x8] sm:$0xff] }
 0x3f2   : > { %1761 = vst.msk [vmem:[#allocation7 + $0x30] sm:$0xff] %vm479_vm0, %v1745_v53  ;;  %1762 = vst.msk [vmem:[#allocation7 + $0x38] sm:$0xff] %vm479_vm0, %v1746_v57  ;;  %v3127_v48 = vpop.eup %3126  ;;  %3152 = vpow2.f32 %v1532_v2  ;;  %v1754_v29 = vmul.f32 %v1730_v28, %v3771_v35  ;;  %v4273_v31 = vrot.slane %v3890_v62, 2  ;;  %v4274_v35 = vrot.slane %v3898_v25, 4 }
 0x3f3   : > { %1536 = vst.msk [vmem:[#allocation5] sm:$0xff] %vm479_vm0, %v3125_v32  ;;  %1763 = vst.msk [vmem:[#allocation7 + $0x40] sm:$0xff] %vm479_vm0, %v1747_v36  ;;  %v3129_v12 = vpop.eup %3128  ;;  %3154 = vpow2.f32 %v1534_v13  ;;  %v2058_v1 = vmul.f32 %v3951_v22, %v1978_v34  ;;  %v2061_v38 = vmul.f32 %v3960_v45, %v1981_v40  ;;  %v2060_v2 = vmul.f32 %v3962_v59, %v1980_v10 }
 0x3f4   : > { %1764 = vst.msk [vmem:[#allocation7 + $0x48] sm:$0xff] %vm479_vm0, %v1748_v27  ;;  %1765 = vst.msk [vmem:[#allocation7 + $0x50] sm:$0xff] %vm479_vm0, %v1749_v30  ;;  %v3999_v49 = vadd.f32 %v4273_v31, %v3890_v62  ;;  %v2104_v37 = vadd.f32 %v4274_v35, %v3898_v25  ;;  %v2110_v62 = vsel %vm479_vm0, %v3915_v11, 0.0  ;;  %v3131_v6 = vpop.eup %3130  ;;  %v2063_v25 = vmul.f32 %v2047_v47, %v1983_v19 }
 0x3f5   : > { %1537 = vst.msk [vmem:[#allocation5 + $0x8] sm:$0xff] %vm479_vm0, %v3127_v48  ;;  %1766 = vst.msk [vmem:[#allocation7 + $0x58] sm:$0xff] %vm479_vm0, %v1750_v46  ;;  %v2062_v52 = vmul.f32 %v2043_v18, %v1982_v33  ;;  %v3133_v26 = vpop.eup %3132  ;;  %v2071_v22 = vrot.slane %v3912_v9, 1  ;;  %v2098_v11 = vrot.slane %v3923_v43, 1  ;;  %v2109_v13 = vsel %vm479_vm0, %v2058_v1, 0.0 }
 0x3f6   : > { %1767 = vst.msk [vmem:[#allocation7 + $0x60] sm:$0xff] %vm479_vm0, %v1751_v14  ;;  %1768 = vst.msk [vmem:[#allocation7 + $0x68] sm:$0xff] %vm479_vm0, %v1752_v16  ;;  %v2105_v15 = vrot.slane %v2104_v37, 2  ;;  %v3135_v55 = vpop.eup %3134  ;;  %v2111_v3 = vadd.f32 %v2110_v62, %v2109_v13  ;;  %v2119_v17 = vsel %vm479_vm0, %v2061_v38, 0.0  ;;  %v2118_v7 = vsel %vm479_vm0, %v2060_v2, 0.0  ;;  %v1876_v48 = vld [vmem:[#allocation7] sm:$0xff] }
 0x3f7   : > { %1538 = vst.msk [vmem:[#allocation5 + $0x10] sm:$0xff] %vm479_vm0, %v3129_v12  ;;  %1769 = vst.msk [vmem:[#allocation7 + $0x70] sm:$0xff] %vm479_vm0, %v1753_v20  ;;  %v2128_v56 = vsel %vm479_vm0, %v2063_v25, 0.0  ;;  %v3137_v21 = vpop.eup %3136  ;;  %v2089_v58 = vrot.slane %v3999_v49, 1  ;;  %v2120_v59 = vadd.f32 %v2119_v17, %v2118_v7  ;;  %v2127_v4 = vsel %vm479_vm0, %v2062_v52, 0.0  ;;  %v1877_v31 = vld [vmem:[#allocation7 + $0x8] sm:$0xff] }
 0x3f8   : > { %1770 = vst.msk [vmem:[#allocation7 + $0x78] sm:$0xff] %vm479_vm0, %v1754_v29  ;;  %1539 = vst.msk [vmem:[#allocation5 + $0x18] sm:$0xff] %vm479_vm0, %v3131_v6  ;;  %v2106_v45 = vadd.f32 %v2105_v15, %v2104_v37  ;;  %v3139_v51 = vpop.eup %3138  ;;  %v2112_v28 = vrot.slane %v2111_v3, 4  ;;  %v2129_v23 = vadd.f32 %v2128_v56, %v2127_v4  ;;  %v2143_v54 = vrot.slane %v3882_v44, 7  ;;  %v1889_v7 = vld [vmem:[#allocation7 + $0x18] sm:$0xff] }
 0x3f9   : > { %1540 = vst.msk [vmem:[#allocation5 + $0x20] sm:$0xff] %vm479_vm0, %v3133_v26  ;;  %1541 = vst.msk [vmem:[#allocation5 + $0x28] sm:$0xff] %vm479_vm0, %v3135_v55  ;;  %v3141_v63 = vpop.eup %3140  ;;  %v4275_v0 = vrot.slane %v3882_v44, 1  ;;  %v2072_v53 = vadd.f32 %v2071_v22, %v3912_v9  ;;  %v2121_v36 = vrot.slane %v2120_v59, 4  ;;  %v2099_v46 = vadd.f32 %v2098_v11, %v3923_v43  ;;  %v1888_v22 = vld [vmem:[#allocation7 + $0x10] sm:$0xff] }
 0x3fa   : > { %1542 = vst.msk [vmem:[#allocation5 + $0x30] sm:$0xff] %vm479_vm0, %v3137_v21  ;;  %1543 = vst.msk [vmem:[#allocation5 + $0x38] sm:$0xff] %vm479_vm0, %v3139_v51  ;;  %v1872_v61 = vld [vmem:[#allocation5] sm:$0xff]  ;;  %v2107_v57 = vrot.slane %v2106_v45, 1  ;;  %v3143_v27 = vpop.eup %3142  ;;  %v2113_v14 = vadd.f32 %v2112_v28, %v2111_v3  ;;  %v2130_v16 = vrot.slane %v2129_v23, 4  ;;  %v4276_v6 = vrot.slane %v3882_v44, 3 }
 0x3fb   : > { %v2153_v60 = vadd.f32 %v4275_v0, %v3903_v8  ;;  %1544 = vst.msk [vmem:[#allocation5 + $0x40] sm:$0xff] %vm479_vm0, %v3141_v63  ;;  %v1874_v32 = vmul.f32 %v1872_v61, %v1870_v50  ;;  %v3145_v47 = vpop.eup %3144  ;;  %1545 = vst.msk [vmem:[#allocation5 + $0x48] sm:$0xff] %vm479_vm0, %v3143_v27  ;;  %v2090_v8 = vadd.f32 %v2089_v58, %v3999_v49  ;;  %v4277_v11 = vrot.slane %v3882_v44, 2  ;;  %v1900_v0 = vld [vmem:[#allocation7 + $0x20] sm:$0xff] }
 0x3fc   : > { %v1873_v30 = vld [vmem:[#allocation5 + $0x8] sm:$0xff]  ;;  %v2108_v20 = vadd.f32 %v2107_v57, %v2106_v45  ;;  %v2122_v9 = vadd.f32 %v2121_v36, %v2120_v59  ;;  %v3147_v29 = vpop.eup %3146  ;;  %1546 = vst.msk [vmem:[#allocation5 + $0x50] sm:$0xff] %vm479_vm0, %v3145_v47  ;;  %v2114_v40 = vrot.slane %v2113_v14, 2  ;;  %v2131_v12 = vadd.f32 %v2130_v16, %v2129_v23 }
 0x3fd   : > { %v1875_v18 = vmul.f32 %v1873_v30, %v1871_v42  ;;  %v1878_v34 = vadd.f32 %v1876_v48, %v1874_v32  ;;  %v3149_v43 = vpop.eup %3148  ;;  %1547 = vst.msk [vmem:[#allocation5 + $0x58] sm:$0xff] %vm479_vm0, %v3147_v29  ;;  %v2465_v62 = vrot.slane %v2153_v60, 7  ;;  %v2152_v1 = vadd.f32 %v2072_v53, %v3882_v44  ;;  %v1901_v36 = vld [vmem:[#allocation7 + $0x28] sm:$0xff] }
 0x3fe   : > { %v1883_v37 = vld [vmem:[#allocation5 + $0x10] sm:$0xff]  ;;  %v2123_v10 = vrot.slane %v2122_v9, 2  ;;  %v3151_v49 = vpop.eup %3150  ;;  %1548 = vst.msk [vmem:[#allocation5 + $0x60] sm:$0xff] %vm479_vm0, %v3149_v43  ;;  %v2155_v38 = vadd.f32 %v4276_v6, %v2099_v46  ;;  %v2115_v2 = vadd.f32 %v2114_v40, %v2113_v14  ;;  %v2132_v25 = vrot.slane %v2131_v12, 2 }
 0x3ff   : > { %v1879_v35 = vadd.f32 %v1877_v31, %v1875_v18  ;;  %1880 = vst.msk [vmem:[#allocation7] sm:$0xff] %vm479_vm0, %v1878_v34  ;;  %v1884_v19 = vld [vmem:[#allocation5 + $0x18] sm:$0xff]  ;;  %v1885_v33 = vmul.f32 %v1883_v37, %v1878_v34  ;;  %v3153_v52 = vpop.eup %3152  ;;  %1549 = vst.msk [vmem:[#allocation5 + $0x68] sm:$0xff] %vm479_vm0, %v3151_v49  ;;  %v2154_v15 = vadd.f32 %v4277_v11, %v2090_v8  ;;  %v4278_v13 = vrot.slane %v3882_v44, 4  ;;  %v1912_v40 = vld [vmem:[#allocation7 + $0x30] sm:$0xff] }
 0x400   : > { %v2124_v3 = vadd.f32 %v2123_v10, %v2122_v9  ;;  %v3155_v17 = vpop.eup %3154  ;;  %1550 = vst.msk [vmem:[#allocation5 + $0x70] sm:$0xff] %vm479_vm0, %v3153_v52  ;;  %v2116_v21 = vrot.slane %v2115_v2, 1  ;;  %v2133_v50 = vadd.f32 %v2132_v25, %v2131_v12  ;;  %v1895_v45 = vld [vmem:[#allocation5 + $0x20] sm:$0xff]  ;;  %v2466_v59 = vsel %vm2361_vm10, %v2465_v62, %v2152_v1  ;;  %v1896_v51 = vld [vmem:[#allocation5 + $0x28] sm:$0xff] }
 0x401   : > { %1881 = vst.msk [vmem:[#allocation7 + $0x8] sm:$0xff] %vm479_vm0, %v1879_v35  ;;  %v1886_v26 = vmul.f32 %v1884_v19, %v1879_v35  ;;  %v2156_v55 = vadd.f32 %v4278_v13, %v2108_v20  ;;  %v1890_v56 = vadd.f32 %v1888_v22, %v1885_v33  ;;  %1551 = vst.msk [vmem:[#allocation5 + $0x78] sm:$0xff] %vm479_vm0, %v3155_v17  ;;  %v2469_v28 = vrot.slane %v2155_v38, 5  ;;  %v1907_v16 = vld [vmem:[#allocation5 + $0x30] sm:$0xff]  ;;  %v1908_v8 = vld [vmem:[#allocation5 + $0x38] sm:$0xff] }
 0x402   : > { %v2125_v4 = vrot.slane %v2124_v3, 1  ;;  %v2117_v23 = vadd.f32 %v2116_v21, %v2115_v2  ;;  %v2134_v63 = vrot.slane %v2133_v50, 1  ;;  %v2467_v60 = vrot.slane %v2154_v15, 6  ;;  %v1913_v35 = vld [vmem:[#allocation7 + $0x38] sm:$0xff]  ;;  %v1920_v6 = vld [vmem:[#allocation5 + $0x48] sm:$0xff]  ;;  %v1924_v22 = vld [vmem:[#allocation7 + $0x40] sm:$0xff] }
 0x403   : > { %v1891_v58 = vadd.f32 %v1889_v7, %v1886_v26  ;;  %1892 = vst.msk [vmem:[#allocation7 + $0x10] sm:$0xff] %vm479_vm0, %v1890_v56  ;;  %v1897_v42 = vmul.f32 %v1895_v45, %v1890_v56  ;;  %v2471_v53 = vrot.slane %v2156_v55, 4  ;;  %v4279_v30 = vrot.slane %v3882_v44, 5  ;;  %v1925_v55 = vld [vmem:[#allocation7 + $0x48] sm:$0xff] }
 0x404   : > { %v2126_v57 = vadd.f32 %v2125_v4, %v2124_v3  ;;  %v2135_v46 = vadd.f32 %v2134_v63, %v2133_v50  ;;  %v4280_v47 = vrot.slane %v3882_v44, 6  ;;  %v2468_v48 = vsel %vm2364_vm11, %v2467_v60, %v2466_v59  ;;  %v1919_v44 = vld [vmem:[#allocation5 + $0x40] sm:$0xff]  ;;  %v1932_v50 = vld [vmem:[#allocation5 + $0x58] sm:$0xff]  ;;  %v4281_v45 = vld [vmem:[#allocation16_spill] sm:$0xff] }
 0x405   : > { %1893 = vst.msk [vmem:[#allocation7 + $0x18] sm:$0xff] %vm479_vm0, %v1891_v58  ;;  %v1898_v61 = vmul.f32 %v1896_v51, %v1891_v58  ;;  %v1902_v27 = vadd.f32 %v1900_v0, %v1897_v42  ;;  %v2157_v32 = vadd.f32 %v4279_v30, %v2117_v23  ;;  %v2470_v31 = vsel %vm2367_vm12, %v2469_v28, %v2468_v48  ;;  %v1936_v4 = vld [vmem:[#allocation7 + $0x50] sm:$0xff]  ;;  %v4282_v51 = vld [vmem:[#allocation15_spill] sm:$0xff]  ;;  %v1937_v63 = vld [vmem:[#allocation7 + $0x58] sm:$0xff] }
 0x406   : > { %v2158_v18 = vadd.f32 %v4280_v47, %v2126_v57  ;;  %v2159_v29 = vadd.f32 %v2143_v54, %v2135_v46  ;;  %v2472_v12 = vsel %vm2370_vm13, %v2471_v53, %v2470_v31  ;;  %v2160_v62 = vld [vmem:[#allocation7] sm:$0xff]  ;;  %v1944_v30 = vld [vmem:[#allocation5 + $0x68] sm:$0xff] }
 0x407   : > { %v1903_v14 = vadd.f32 %v1901_v36, %v1898_v61  ;;  %1904 = vst.msk [vmem:[#allocation7 + $0x20] sm:$0xff] %vm479_vm0, %v1902_v27  ;;  %v1909_v20 = vmul.f32 %v1907_v16, %v1902_v27  ;;  %v2473_v9 = vrot.slane %v2157_v32, 3  ;;  %v2240_v11 = vmul.f32 %v3785_v24, %v2160_v62  ;;  %v1943_v53 = vld [vmem:[#allocation5 + $0x60] sm:$0xff] }
 0x408   : > { %v2475_v43 = vrot.slane %v2158_v18, 2  ;;  %v2161_v1 = vld [vmem:[#allocation7 + $0x8] sm:$0xff]  ;;  %v2477_v49 = vrot.slane %v2159_v29, 1  ;;  %v1948_v48 = vld [vmem:[#allocation7 + $0x60] sm:$0xff] }
 0x409   : > { %1905 = vst.msk [vmem:[#allocation7 + $0x28] sm:$0xff] %vm479_vm0, %v1903_v14  ;;  %v1910_v34 = vmul.f32 %v1908_v8, %v1903_v14  ;;  %v1914_v37 = vadd.f32 %v1912_v40, %v1909_v20  ;;  %v2474_v10 = vsel %vm2373_vm14, %v2473_v9, %v2472_v12  ;;  %v2241_v15 = vmul.f32 %v3783_v41, %v2161_v1  ;;  %v4283_v14 = vld [vmem:[#allocation18_spill] sm:$0xff]  ;;  %v4284_v8 = vld [vmem:[#allocation17_spill] sm:$0xff]  ;;  %v1949_v29 = vld [vmem:[#allocation7 + $0x68] sm:$0xff] }
 0x40a   : > { %v2162_v54 = vld [vmem:[#allocation7 + $0x10] sm:$0xff]  ;;  %v2476_v33 = vsel %vm2376_vm15, %v2475_v43, %v2474_v10  ;;  %v2256_v28 = vsel %vm479_vm0, %v2240_v11, 0.0  ;;  %v1956_v1 = vld [vmem:[#allocation5 + $0x78] sm:$0xff] }
 0x40b   : > { %v1915_v19 = vadd.f32 %v1913_v35, %v1910_v34  ;;  %1916 = vst.msk [vmem:[#allocation7 + $0x30] sm:$0xff] %vm479_vm0, %v1914_v37  ;;  %v1921_v38 = vmul.f32 %v1919_v44, %v1914_v37  ;;  %v2242_v25 = vmul.f32 %v3777_v39, %v2162_v54  ;;  %v2478_v52 = vsel %vm2379_vm2, %v2477_v49, %v2476_v33  ;;  %v1931_v39 = vld [vmem:[#allocation5 + $0x50] sm:$0xff] }
 0x40c   : > { %v2163_v2 = vld [vmem:[#allocation7 + $0x18] sm:$0xff]  ;;  %2480 = vst.msk [vmem:[#allocation10] sm:$0xff] %vm479_vm0, %v2478_v52  ;;  %v2257_v23 = vsel %vm479_vm0, %v2241_v15, 0.0  ;;  %v1955_v12 = vld [vmem:[#allocation5 + $0x70] sm:$0xff] }
 0x40d   : > { %1917 = vst.msk [vmem:[#allocation7 + $0x38] sm:$0xff] %vm479_vm0, %v1915_v19  ;;  %v1922_v26 = vmul.f32 %v1920_v6, %v1915_v19  ;;  %v2243_v13 = vmul.f32 %v3775_v5, %v2163_v2  ;;  %v1926_v3 = vadd.f32 %v1924_v22, %v1921_v38  ;;  %v2265_v17 = vsel %vm479_vm0, %v2242_v25, 0.0  ;;  %v4285_v19 = vld [vmem:[#allocation20_spill] sm:$0xff]  ;;  %v1960_v6 = vld [vmem:[#allocation7 + $0x70] sm:$0xff]  ;;  %v4286_v38 = vld [vmem:[#allocation19_spill] sm:$0xff] }
 0x40e   : > { %v2164_v56 = vld [vmem:[#allocation7 + $0x20] sm:$0xff]  ;;  %v2258_v47 = vadd.f32 %v2257_v23, %v2256_v28 }
 0x40f   : > { %v1927_v7 = vadd.f32 %v1925_v55, %v1922_v26  ;;  %v2266_v21 = vsel %vm479_vm0, %v2243_v13, 0.0  ;;  %1928 = vst.msk [vmem:[#allocation7 + $0x40] sm:$0xff] %vm479_vm0, %v1926_v3  ;;  %v1933_v58 = vmul.f32 %v1931_v39, %v1926_v3  ;;  %v2244_v41 = vmul.f32 %v4281_v45, %v2164_v56  ;;  %v1961_v26 = vld [vmem:[#allocation7 + $0x78] sm:$0xff] }
 0x410   : > { %v2165_v24 = vld [vmem:[#allocation7 + $0x28] sm:$0xff]  ;;  %v2267_v59 = vadd.f32 %v2266_v21, %v2265_v17  ;;  %v2259_v54 = vrot.slane %v2258_v47, 4  ;;  %v4287_v39 = vld [vmem:[#allocation22_spill] sm:$0xff] }
 0x411   : > { %1929 = vst.msk [vmem:[#allocation7 + $0x48] sm:$0xff] %vm479_vm0, %v1927_v7  ;;  %v1934_v5 = vmul.f32 %v1932_v50, %v1927_v7  ;;  %v2245_v42 = vmul.f32 %v4282_v51, %v2165_v24  ;;  %v1938_v61 = vadd.f32 %v1936_v4, %v1933_v58  ;;  %v2274_v0 = vsel %vm479_vm0, %v2244_v41, 0.0  ;;  %v4288_v50 = vld [vmem:[#allocation21_spill] sm:$0xff] }
 0x412   : > { %v2166_v57 = vld [vmem:[#allocation7 + $0x30] sm:$0xff]  ;;  %v2268_v36 = vrot.slane %v2267_v59, 4  ;;  %v2260_v24 = vadd.f32 %v2259_v54, %v2258_v47 }
 0x413   : > { %v1939_v60 = vadd.f32 %v1937_v63, %v1934_v5  ;;  %v2275_v27 = vsel %vm479_vm0, %v2245_v42, 0.0  ;;  %1940 = vst.msk [vmem:[#allocation7 + $0x50] sm:$0xff] %vm479_vm0, %v1938_v61  ;;  %v1945_v32 = vmul.f32 %v1943_v53, %v1938_v61  ;;  %v2246_v16 = vmul.f32 %v4283_v14, %v2166_v57  ;;  %v4289_v63 = vld [vmem:[#allocation24_spill] sm:$0xff]  ;;  %v4290_v53 = vld [vmem:[#allocation23_spill] sm:$0xff] }
 0x414   : > { %v2167_v46 = vld [vmem:[#allocation7 + $0x38] sm:$0xff]  ;;  %v2276_v9 = vadd.f32 %v2275_v27, %v2274_v0  ;;  %v2269_v35 = vadd.f32 %v2268_v36, %v2267_v59  ;;  %v2261_v36 = vrot.slane %v2260_v24, 2 }
 0x415   : > { %1941 = vst.msk [vmem:[#allocation7 + $0x58] sm:$0xff] %vm479_vm0, %v1939_v60  ;;  %v1946_v18 = vmul.f32 %v1944_v30, %v1939_v60  ;;  %v2247_v20 = vmul.f32 %v4284_v8, %v2167_v46  ;;  %v1950_v31 = vadd.f32 %v1948_v48, %v1945_v32  ;;  %v2283_v34 = vsel %vm479_vm0, %v2246_v16, 0.0  ;;  %v4291_v8 = vld [vmem:[#allocation26_spill] sm:$0xff] }
 0x416   : > { %v2168_v43 = vld [vmem:[#allocation7 + $0x40] sm:$0xff]  ;;  %v2277_v37 = vrot.slane %v2276_v9, 4  ;;  %v2270_v55 = vrot.slane %v2269_v35, 2 }
 0x417   : > { %v1951_v40 = vadd.f32 %v1949_v29, %v1946_v18  ;;  %v2284_v62 = vsel %vm479_vm0, %v2247_v20, 0.0  ;;  %1952 = vst.msk [vmem:[#allocation7 + $0x60] sm:$0xff] %vm479_vm0, %v1950_v31  ;;  %v1957_v10 = vmul.f32 %v1955_v12, %v1950_v31  ;;  %v2248_v44 = vmul.f32 %v4285_v19, %v2168_v43  ;;  %v4293_v43 = vld [vmem:[#allocation25_spill] sm:$0xff] }
 0x418   : > { %v2169_v49 = vld [vmem:[#allocation7 + $0x48] sm:$0xff]  ;;  %v2278_v25 = vadd.f32 %v2277_v37, %v2276_v9  ;;  %v2285_v52 = vadd.f32 %v2284_v62, %v2283_v34  ;;  %v2271_v51 = vadd.f32 %v2270_v55, %v2269_v35  ;;  %v3161_v34 = vld [vmem:[#allocation3] sm:$0xff]  ;;  %v2262_v37 = vadd.f32 %v2261_v36, %v2260_v24 }
 0x419   : > { %1953 = vst.msk [vmem:[#allocation7 + $0x68] sm:$0xff] %vm479_vm0, %v1951_v40  ;;  %v1958_v33 = vmul.f32 %v1956_v1, %v1951_v40  ;;  %v2249_v2 = vmul.f32 %v4286_v38, %v2169_v49  ;;  %v1962_v22 = vadd.f32 %v1960_v6, %v1957_v10  ;;  %v2292_v11 = vsel %vm479_vm0, %v2248_v44, 0.0  ;;  %v4292_v40 = vld [vmem:[#allocation27_spill] sm:$0xff] }
 0x41a   : > { %v2170_v13 = vld [vmem:[#allocation7 + $0x50] sm:$0xff]  ;;  %v2286_v3 = vrot.slane %v2285_v52, 4  ;;  %v2279_v45 = vrot.slane %v2278_v25, 2  ;;  %v2272_v47 = vrot.slane %v2271_v51, 1  ;;  %v1771_v12 = vmul.f32 %v3161_v34, %v4292_v40 }
 0x41b   : > { %v1963_v15 = vadd.f32 %v1961_v26, %v1958_v33  ;;  %v2293_v17 = vsel %vm479_vm0, %v2249_v2, 0.0  ;;  %1964 = vst.msk [vmem:[#allocation7 + $0x70] sm:$0xff] %vm479_vm0, %v1962_v22  ;;  %1966 = vst.msk [vmem:[#allocation9] sm:$0xff] %vm479_vm0, %v1962_v22  ;;  %v2250_v56 = vmul.f32 %v4287_v39, %v2170_v13 }
 0x41c   : > { %v2171_v7 = vld [vmem:[#allocation7 + $0x58] sm:$0xff]  ;;  %v2294_v21 = vadd.f32 %v2293_v17, %v2292_v11  ;;  %v2287_v41 = vadd.f32 %v2286_v3, %v2285_v52  ;;  %v2280_v27 = vadd.f32 %v2279_v45, %v2278_v25  ;;  %v2273_v33 = vadd.f32 %v2272_v47, %v2271_v51 }
 0x41d   : > { %1965 = vst.msk [vmem:[#allocation7 + $0x78] sm:$0xff] %vm479_vm0, %v1963_v15  ;;  %1967 = vst.msk [vmem:[#allocation9 + $0x8] sm:$0xff] %vm479_vm0, %v1963_v15  ;;  %v2251_v58 = vmul.f32 %v4288_v50, %v2171_v7  ;;  %v2301_v5 = vsel %vm479_vm0, %v2250_v56, 0.0  ;;  %v2263_v25 = vrot.slane %v2262_v37, 1  ;;  %v2329_v26 = vrot.slane %v1771_v12, 1 }
 0x41e   : > { %v2295_v59 = vrot.slane %v2294_v21, 4  ;;  %v2172_v4 = vld [vmem:[#allocation7 + $0x60] sm:$0xff]  ;;  %v2288_v42 = vrot.slane %v2287_v41, 2  ;;  %v2281_v62 = vrot.slane %v2280_v27, 1  ;;  %v2330_v3 = vrot.slane %v1771_v12, 2 }
 0x41f   : > { %v2302_v28 = vsel %vm479_vm0, %v2251_v58, 0.0  ;;  %v2252_v61 = vmul.f32 %v4289_v63, %v2172_v4  ;;  %v2331_v17 = vrot.slane %v1771_v12, 3  ;;  %v2332_v50 = vrot.slane %v1771_v12, 4 }
 0x420   : > { %v2173_v23 = vld [vmem:[#allocation7 + $0x68] sm:$0xff]  ;;  %v2296_v0 = vadd.f32 %v2295_v59, %v2294_v21  ;;  %v2303_v60 = vadd.f32 %v2302_v28, %v2301_v5  ;;  %v2289_v30 = vadd.f32 %v2288_v42, %v2287_v41  ;;  %v2282_v52 = vadd.f32 %v2281_v62, %v2280_v27 }
 0x421   : > { %v2253_v57 = vmul.f32 %v4290_v53, %v2173_v23  ;;  %v2310_v14 = vsel %vm479_vm0, %v2252_v61, 0.0  ;;  %v2345_v21 = vadd.f32 %v2329_v26, %v2273_v33  ;;  %v2333_v58 = vrot.slane %v1771_v12, 5  ;;  %v4295_v53 = vld [vmem:[#allocation14_spill] sm:$0xff]  ;;  %v3066_v62 = vld [vmem:[%s4242_s12 + $0x18] sm:$0xff]   ;;  %v2488_v26 = vld [vmem:[%s3388_s28] sm:$0xf] }
 0x422   : > { %v2297_v32 = vrot.slane %v2296_v0, 2  ;;  %v2304_v46 = vrot.slane %v2303_v60, 4  ;;  %v2174_v16 = vld [vmem:[#allocation7 + $0x70] sm:$0xff]  ;;  %v2290_v1 = vrot.slane %v2289_v30, 1  ;;  %v2346_v24 = vadd.f32 %v2330_v3, %v2282_v52  ;;  %v3064_v33 = vld [vmem:[%s4297_s2 + $0x8] sm:$0xff]  }
 0x423   : > { %v2311_v18 = vsel %vm479_vm0, %v2253_v57, 0.0  ;;  %v2254_v20 = vmul.f32 %v4291_v8, %v2174_v16  ;;  %v4294_v45 = vlaneseq  ;;  %v2264_v59 = vadd.f32 %v2263_v25, %v2262_v37  ;;  %v3062_v37 = vld [vmem:[%s4297_s2 + $0x18] sm:$0xff]   ;;  %v3065_v25 = vld [vmem:[%s4297_s2] sm:$0xff]  }
 0x424   : > { %v2175_v48 = vld [vmem:[#allocation7 + $0x78] sm:$0xff]  ;;  %v2298_v9 = vadd.f32 %v2297_v32, %v2296_v0  ;;  %v2305_v29 = vadd.f32 %v2304_v46, %v2303_v60  ;;  %v2312_v31 = vadd.f32 %v2311_v18, %v2310_v14  ;;  %v2291_v22 = vadd.f32 %v2290_v1, %v2289_v30 }
 0x425   : > { %v2255_v35 = vmul.f32 %v4293_v43, %v2175_v48  ;;  %v2319_v19 = vsel %vm479_vm0, %v2254_v20, 0.0  ;;  %v662_v41 = vand.u32 127, %v4294_v45  ;;  %v2334_v42 = vrot.slane %v1771_v12, 6 }
 0x426   : > { %v2306_v10 = vrot.slane %v2305_v29, 2  ;;  %v2313_v49 = vrot.slane %v2312_v31, 4  ;;  %v2299_v44 = vrot.slane %v2298_v9, 1  ;;  %v2347_v51 = vadd.f32 %v2331_v17, %v2291_v22  ;;  %v3069_v22 = vld [vmem:[%s4242_s12] sm:$0xff]  }
 0x427   : > { %v2320_v54 = vsel %vm479_vm0, %v2255_v35, 0.0  ;;  %v2360_v0 = vrot.slane %v2345_v21, 7  ;;  %v2363_v60 = vrot.slane %v2346_v24, 6  ;;  %v663_v57 = vadd.s32 %v662_v41, %v4295_v53  ;;  %v3071_v17 = vld [vmem:[%s4243_s13] sm:$0xff]  }
 0x428   : > { %v2307_v6 = vadd.f32 %v2306_v10, %v2305_v29  ;;  %v2314_v38 = vadd.f32 %v2313_v49, %v2312_v31  ;;  %v2321_v2 = vadd.f32 %v2320_v54, %v2319_v19  ;;  %v2300_v55 = vadd.f32 %v2299_v44, %v2298_v9  ;;  %v3063_v49 = vld [vmem:[%s4297_s2 + $0x10] sm:$0xff]   ;;  %s3162_s2 = scalar_lea.vmem %s4190_s21, 128 }
 0x429   : > { %v2344_v27 = vadd.f32 %v2264_v59, %v1771_v12  ;;  %v2366_v32 = vrot.slane %v2347_v51, 5  ;;  %v2335_v16 = vrot.slane %v1771_v12, 7  ;;  %vm664_vm3 = vcmp.eq.s32.totalorder %v663_v57, 7  ;;  %v3067_v19 = vld [vmem:[%s4242_s12 + $0x10] sm:$0xff]   ;;  %p3163_p11 = scmp.ne.s32.totalorder %s4190_s21, %s3162_s2 }
 0x42a   : > { %v2308_v11 = vrot.slane %v2307_v6, 1  ;;  %v2315_v15 = vrot.slane %v2314_v38, 2  ;;  %v2322_v13 = vrot.slane %v2321_v2, 4  ;;  %v2348_v28 = vadd.f32 %v2332_v50, %v2300_v55  ;;  %v3070_v55 = vld [vmem:[%s4243_s13 + $0x8] sm:$0xff]  }
 0x42b   : > { %v2362_v47 = vsel %vm2361_vm10, %v2360_v0, %v2344_v27  ;;  %v4296_v43 = vmov 0.0   ;;  %v2530_v1 = vsel %vm479_vm0, %v3062_v37, 0  ;;  %v2616_v10 = vsel %vm2602_vm5, %v3066_v62, 0  ;;  %p3164_p12 = pnand %p3163_p11, %p3342_p5 }
 0x42c   : > { %v2309_v7 = vadd.f32 %v2308_v11, %v2307_v6  ;;  %v2316_v39 = vadd.f32 %v2315_v15, %v2314_v38  ;;  %v2323_v56 = vadd.f32 %v2322_v13, %v2321_v2  ;;  %v2369_v46 = vrot.slane %v2348_v28, 4  ;;  %2990 = vmatpush3.bf16.xpose.msra.mxu0 %v2616_v10  ;;  %v3068_v6 = vld [vmem:[%s4242_s12 + $0x8] sm:$0xff]  }
 0x42d   : > { %v2365_v48 = vsel %vm2364_vm11, %v2363_v60, %v2362_v47  ;;  %v2815_v35 = vsel %vm664_vm3, 1.0, %v4296_v43  ;;  %2991 = vmatprep.subr.bf16.mxu0 %v4296_v43  ;;  %v2527_v44 = vsel %vm479_vm0, %v3063_v49, 0  ;;  %v2613_v54 = vsel %vm2602_vm5, %v3067_v19, 0  ;;  %p3165_p13 = pneg %p3164_p12 }
 0x42e   : > { %v2317_v5 = vrot.slane %v2316_v39, 1  ;;  %v2324_v4 = vrot.slane %v2323_v56, 2  ;;  %v2349_v61 = vadd.f32 %v2333_v58, %v2309_v7  ;;  %v2368_v9 = vsel %vm2367_vm12, %v2366_v32, %v2365_v48 }
 0x42f   : > { %v2371_v29 = vsel %vm2370_vm13, %v2369_v46, %v2368_v9  ;;  %v2524_v38 = vsel %vm479_vm0, %v3064_v33, 0  ;;  %v2610_v2 = vsel %vm2602_vm5, %v3068_v6, 0  ;;  %v2521_v52 = vsel %vm479_vm0, %v3065_v25, 0 }
 0x430   : > { %v2318_v23 = vadd.f32 %v2317_v5, %v2316_v39  ;;  %v2325_v63 = vadd.f32 %v2324_v4, %v2323_v56  ;;  %v2372_v18 = vrot.slane %v2349_v61, 3  ;;  %v2607_v11 = vsel %vm2602_vm5, %v3069_v22, 0 }
 0x431   : > { %v2687_v3 = vsel %vm2602_vm5, %v3070_v55, 0  ;;  %v2684_v7 = vsel %vm2602_vm5, %v3071_v17, 0 }
 0x432   : > { %v2326_v36 = vrot.slane %v2325_v63, 1  ;;  %v2350_v30 = vadd.f32 %v2334_v42, %v2318_v23  ;;  %v2374_v31 = vsel %vm2373_vm14, %v2372_v18, %v2371_v29 }
 0x434   : > { %v2327_v14 = vadd.f32 %v2326_v36, %v2325_v63  ;;  %v2375_v8 = vrot.slane %v2350_v30, 2  ;;  %2992 = vmatpush3.bf16.xpose.msra.mxu0 %v2613_v54 }
 0x435   : > { %2993 = vmatprep.subr.bf16.mxu0 %v4296_v43 }
 0x436   : > { %v2351_v20 = vadd.f32 %v2335_v16, %v2327_v14  ;;  %v2377_v40 = vsel %vm2376_vm15, %v2375_v8, %v2374_v31 }
 0x438   : > { %v2378_v34 = vrot.slane %v2351_v20, 1 }
 0x43a   : > { %v2380_v12 = vsel %vm2379_vm2, %v2378_v34, %v2377_v40 }
 0x43b   : > { %2973 = vmatpush3.msra.mxu1 %v2380_v12 }
 0x43c   : > { %2975 = vmatmul.mubr.msk.f32.vlgmr.msra.gmra.mxu1 %vm2382_vm4, %v2815_v35  ;;  %2977 = vmatprep.subr.bf16.mxu1 %v4296_v43 }
 0x43d   : > { %2985 = vmatprep.mubr.msk.bf16.mxu1 %vm3225_vm1, %v4296_v43  ;;  %2978 = vmatpush3.bf16.xpose.msra.mxu1 %v2530_v1 }
 0x43e   : > { %2979 = vmatprep.subr.bf16.mxu1 %v4296_v43  ;;  %2994 = vmatpush3.bf16.xpose.msra.mxu0 %v2610_v2 }
 0x43f   : > { %2995 = vmatprep.subr.bf16.mxu0 %v4296_v43 }
 0x445   : > { %2980 = vmatpush3.bf16.xpose.msra.mxu1 %v2527_v44 }
 0x446   : > { %2981 = vmatprep.subr.bf16.mxu1 %v4296_v43  ;;  %2996 = vmatpush3.bf16.xpose.msra.mxu0 %v2607_v11 }
 0x44d   : > { %2982 = vmatpush3.bf16.xpose.msra.mxu1 %v2524_v38 }
 0x44e   : > { %2983 = vmatprep.subr.bf16.mxu1 %v4296_v43 }
 0x455   : > { %2984 = vmatpush3.bf16.xpose.msra.mxu1 %v2521_v52 }
 0x456   : > { %3001 = vmatprep.subr.bf16.mxu1 %v4296_v43 }
 0x45c   : > { %2986 = vmatmul.mubr.msk.bf16.vlgmr.msra.gmra.mxu1 %vm479_vm0, %v2488_v26 }
 0x45d   : > { %3005 = vmatprep.mubr.msk.bf16.mxu1 %vm3225_vm1, %v4296_v43  ;;  %3002 = vmatpush3.bf16.xpose.msra.mxu1 %v2687_v3  ;;  %vm2486_vm1 = vcmask 523520  }
 0x45e   : > { %3003 = vmatprep.subr.bf16.mxu1 %v4296_v43 }
 0x465   : > { %3004 = vmatpush3.bf16.xpose.msra.mxu1 %v2684_v7 }
 0x4fc   : > { %v2452_v15 = vpop.f32.mrf.mxu1 }
 0x4fd   : > { %2482 = vrot.lane.b32.xlu0 %v2452_v15, %s3227_s18  ;;  %s2853_s18 = sshll.u32 %s3325_s17, 7  ;;  %s3228_s17 = smov [#allocation11]  }
 0x4fe   : > { %v2976_v13 = vpop.f32.mrf.mxu1  ;;  %s4188_s0 = scalar_lea.hbm %s4244_s14, %s2853_s18  ;;  %s3166_s27 = sshll.u32 %s3228_s17, 4  ;;  %s3167_s27 = int_to_ptr.vmem [resolvable:$false] %s3166_s27 }
 0x4ff   : > { %s3168_s18 = scalar_lea.vmem %s3167_s27, 256  ;;  %p3169_p0 = scmp.lt.s32.totalorder %s4190_s21, %s3167_s27 }
 0x500   : > { %p3170_p1 = scmp.lt.s32.totalorder %s3168_s18, %s3162_s2 }
 0x502   : > { %p3171_p2 = por %p3170_p1, %p3169_p0 }
 0x504   : > { %p3172_p3 = pnand %p3171_p2, %p3165_p13 }
 0x51c   : > { %v2566_v39 = vpop.f32.mrf.mxu1 }
 0x51d   : > { %v2658_v41 = vsub.f32 0.0, %v2566_v39 }
 0x51e   : > { %v2987_v56 = vpop.f32.mrf.mxu1 }
 0x51f   : > { %v2659_v59 = vmul.f32 1.442695, %v2658_v41 }
 0x520   : > { %v2569_v21 = vpop.f32.mrf.mxu1 }
 0x521   : > { %3156 = vpow2.f32 %v2659_v59 }
 0x522   : > { %v2988_v50 = vpop.f32.mrf.mxu1 }
 0x52e   : > { %v3157_v5 = vpop.eup %3156 }
 0x52f   : > { %v2661_v4 = vadd.f32 1.0, %v3157_v5 }
 0x531   : > { %3158 = vrcp.f32 %v2661_v4 }
 0x53e   : > { %v3159_v51 = vpop.eup %3158 }
 0x53f   : > { %v2663_v42 = vmul.f32 %v3159_v51, %v2566_v39 }
 0x56f   : > { %v2483_v58 = vpop.permute.xlu0 %2482 }
 0x570   : > { %2487 = vst.msk [vmem:[#allocation10] sm:$0xff] %vm2486_vm1, %v2483_v58 }
 0x577   : > { %v2572_v24 = vld [vmem:[#allocation10] sm:$0xff] }
 0x578   : > { %v2581_v45 = vpack.c.bf16 %v2572_v24, %v2572_v24 }
 0x57a   : > { %2998 = vmatmul.mubr.msk.bf16.vlgmr.msra.gmra.mxu0 %vm2602_vm5, %v2581_v45 }
 0x63a   : > { %v2652_v28 = vpop.f32.mrf.mxu0 }
 0x63b   : > { %v2664_v23 = vmul.f32 %v2663_v42, %v2652_v28 }
 0x63c   : > { %v2999_v63 = vpop.f32.mrf.mxu0 }
 0x63d   : > { %v2669_v61 = vpack.c.bf16 %v2664_v23, %v2664_v23 }
 0x63e   : > { %v2655_v0 = vpop.f32.mrf.mxu0 }
 0x63f   : > { %3006 = vmatmul.mubr.msk.bf16.vlgmr.msra.gmra.mxu1 %vm2602_vm5, %v2669_v61 }
 0x640   : > { %v3000_v60 = vpop.f32.mrf.mxu0 }
 0x6ff   : > { %v2723_v53 = vpop.f32.mrf.mxu1 }
 0x700   : > { %2729 = vst.msk [vmem:[%s458_s20] sm:$0xff] %vm479_vm0, %v2723_v53 }
 0x701   : > { %v3007_v57 = vpop.f32.mrf.mxu1 }
 0x702   : > { %3175 = shalt.err (!%p3172_p3)
}
 0x703   : > { %s3176_s20 = scalar_lea.hbm %s4188_s0, 128  ;;  %s3180_s25 = scalar_lea.hbm %s4244_s14, 256 }
 0x704   : > { %p3177_p4 = scmp.ne.s32.totalorder %s4188_s0, %s3176_s20  ;;  %p3181_p9 = scmp.lt.s32.totalorder %s4188_s0, %s4244_s14 }
 0x705   : > { %p3182_p10 = scmp.lt.s32.totalorder %s3180_s25, %s3176_s20 }
 0x706   : > { %p3178_p7 = pnand %p3177_p4, %p3342_p5 }
 0x707   : > { %p3183_p11 = por %p3182_p10, %p3181_p9 }
 0x708   : > { %p3179_p8 = pneg %p3178_p7 }
 0x70a   : > { %p3184_p12 = pnand %p3183_p11, %p3179_p8 }
 0x70c   : > { %3187 = shalt.err (!%p3184_p12)
}
 0x70d   : > { %3009 = dma.vmem_to_hbm [thread:$0]  (%p3342_p5), %s4190_s21, 128, %s4188_s0, %s2731_s1   ;;  %v2726_v36 = vpop.f32.mrf.mxu1 }
 0x70f   : > { %v3008_v27 = vpop.f32.mrf.mxu1 }
 0x710 PF: > { %p3015_p13 = scmp.ge.s32.totalorder %s3222_s16, 2  ;;  %s2756_s2 = sand.u32 1, %s3210_s29  }
 0x711   : > { %s2757_s3 = scalar_lea.sflag [#allocation12], %s2756_s2 }
 0x712   : > { %p3012_p0 = pnand %p3015_p13, %p3346_p6 }
 0x714   : > { %p3013_p1 = pneg %p3012_p0 }
 0x716   : > { %3205 = dma.done.wait (%p3013_p1), %s2757_s3, 128  }
 0x717   : > { %3207 = vsyncadd (%p3013_p1), %s2757_s3, 4294967168  ;;  %p24_p5 = scmp.ge.s32.totalorder %s3329_s19, 4   ;;  %s4298_s29 = smov %s3214_s30 }
 0x718   : > { %s4299_s30 = smov %s3218_s15  ;;  %s4300_s15 = smov %s3340_s22 }
 0x719   : > { %s4301_s16 = smov %s3329_s19  ;;  %26 = sbr.rel (!%p24_p5) target bundleno = 8 (0x8), region = 140 }
 0x71e   :  { %2762 = vsyncpa [#allocation12], 1 }
 0x71f   :  { %2764 = vsyncpa [#allocation12 + $0x1], 1 }

</bundles_post_ra>
